<compile_context>
chip_gen: v6e
topology: v6e:2x2x1
jax: 0.10.0
libtpu: 0.0.40
codegen_flags: <defaults>
</compile_context>

<pallas_src>
import math
import functools

import jax
import jax.numpy as jnp
from jax import lax
from jax.experimental import pallas as pl
from jax.experimental.pallas import tpu as pltpu


# ----------------------------- Pallas kernel ------------------------------- #

def _encoder_stack_kernel(x_ref,
                          wqkv_ref, bqkv_ref, wo_ref, bo_ref,
                          w1_ref, b1_ref, w2_ref, b2_ref,
                          g1_ref, beta1_ref, g2_ref, beta2_ref,
                          o_ref, *, num_layers, nhead, seq_len, batch_per_block):
    """All encoder layers, one grid step = one (batch_per_block*S, E) slab."""
    S = seq_len
    B = batch_per_block
    xm = x_ref[...]                              # (M, E) f32, M = B*S
    M, E = xm.shape
    Dh = E // nhead

    def _ln(v, g, b):
        mu = jnp.mean(v, axis=-1, keepdims=True)
        vc = v - mu
        var = jnp.mean(vc * vc, axis=-1, keepdims=True)
        return vc * lax.rsqrt(var + 1e-5) * g + b

    for l in range(num_layers):                  # unrolled: weights stay resident
        # --- QKV projection over the whole slab (bf16 MXU, f32 accumulate) ---
        qkv = jnp.dot(xm.astype(jnp.bfloat16), wqkv_ref[l],
                      preferred_element_type=jnp.float32) + bqkv_ref[l]   # (M, 3E)
        qkv_b = qkv.astype(jnp.bfloat16)         # single cast; q-scale pre-folded

        # --- multi-head attention: short per-batch / per-head unrolled loop ---
        attn_blocks = []
        for b in range(B):
            r0 = b * S
            acc = None
            for h in range(nhead):
                qh = qkv_b[r0:r0 + S, h * Dh:(h + 1) * Dh]
                kh = qkv_b[r0:r0 + S, E + h * Dh:E + (h + 1) * Dh]
                vh = qkv_b[r0:r0 + S, 2 * E + h * Dh:2 * E + (h + 1) * Dh]
                s = lax.dot_general(qh, kh, (((1,), (1,)), ((), ())),
                                    preferred_element_type=jnp.float32)   # (S, S)
                s = s - jnp.max(s, axis=-1, keepdims=True)
                p = jnp.exp(s)
                p = p * pl.reciprocal(jnp.sum(p, axis=-1, keepdims=True),
                                      approx=True)
                oh = jnp.dot(p.astype(jnp.bfloat16), vh,
                             preferred_element_type=jnp.float32)          # (S, Dh)
                # heads merged by summing per-head out-projections (no lane concat)
                contrib = jnp.dot(oh.astype(jnp.bfloat16),
                                  wo_ref[l, h * Dh:(h + 1) * Dh, :],
                                  preferred_element_type=jnp.float32)     # (S, E)
                acc = contrib if acc is None else acc + contrib
            attn_blocks.append(acc)
        attn = jnp.concatenate(attn_blocks, axis=0) + bo_ref[l]           # (M, E)

        # --- residual + LayerNorm 1 ---
        x1 = _ln(xm + attn, g1_ref[l], beta1_ref[l])

        # --- feed-forward (whole slab, M = B*S) ---
        hmid = jnp.dot(x1.astype(jnp.bfloat16), w1_ref[l],
                       preferred_element_type=jnp.float32) + b1_ref[l]
        hmid = jnp.maximum(hmid, 0.0)
        ff = jnp.dot(hmid.astype(jnp.bfloat16), w2_ref[l],
                     preferred_element_type=jnp.float32) + b2_ref[l]

        # --- residual + LayerNorm 2 ---
        xm = _ln(x1 + ff, g2_ref[l], beta2_ref[l])

    o_ref[...] = xm


def encoder_stack_fused(h, enc, *, nhead):
    """Run ALL encoder layers on a (B, S, E) slab in a single pallas_call."""
    B, S, E = h.shape
    num_layers = enc["wqkv_t"].shape[0]

    # Fold batch into the matmul M dimension.  Keep a 2-wide "parallel" grid
    # when possible so both v7x TensorCores get work (neutral on v5e/v6e).
    grid_b = 2 if (B % 2 == 0 and B >= 2) else 1
    Bb = B // grid_b
    Mb = Bb * S

    hm = h.reshape(B * S, E)                     # lane-dense (M, 128) slab
    x_spec = pl.BlockSpec((Mb, E), lambda g: (g, 0))

    def wspec(a):
        nd = a.ndim
        return pl.BlockSpec(a.shape, lambda g, _nd=nd: (0,) * _nd)   # VMEM-resident

    w_args = (enc["wqkv_t"], enc["bqkv"], enc["wo_t"], enc["bo"],
              enc["w1_t"], enc["b1"], enc["w2_t"], enc["b2"],
              enc["g1"], enc["beta1"], enc["g2"], enc["beta2"])

    # VMEM sanity: fused weights must stay tiny relative to v7x's 64 MiB.
    total_w_bytes = sum(int(a.size) * a.dtype.itemsize for a in w_args)
    assert total_w_bytes < 16 * 1024 * 1024, total_w_bytes

    out = pl.pallas_call(
        functools.partial(_encoder_stack_kernel, num_layers=num_layers,
                          nhead=nhead, seq_len=S, batch_per_block=Bb),
        grid=(grid_b,),
        in_specs=[x_spec] + [wspec(a) for a in w_args],
        out_specs=x_spec,
        out_shape=jax.ShapeDtypeStruct((B * S, E), jnp.float32),
        compiler_params=pltpu.CompilerParams(
            dimension_semantics=("parallel",)),
    )(hm, *w_args)
    return out.reshape(B, S, E)


# ------------------------------- model glue -------------------------------- #

def make_positional_encoding(max_len, d_model):
    position = jnp.arange(max_len, dtype=jnp.float32)[:, None]
    div_term = jnp.exp(jnp.arange(0, d_model, 2, dtype=jnp.float32)
                       * (-math.log(10000.0) / d_model))
    pe = jnp.zeros((max_len, d_model), dtype=jnp.float32)
    pe = pe.at[:, 0::2].set(jnp.sin(position * div_term))
    pe = pe.at[:, 1::2].set(jnp.cos(position * div_term))
    return pe


def transformer_model_2_forward(x, params):
    """Forward pass of TransformerModel_2 (eval-mode, sequence_lens=[])."""
    eff_hist_c = params["eff_hist_c"]
    eff_hist_nc = params["eff_hist_nc"]
    d_model = params["d_model"]
    nhead = params["nhead"]
    N, _, L = x.shape

    # Layout transforms + tiny-K embedding + PE stay in plain XLA (one fusion);
    # the transformer stack itself is a single Pallas launch.
    x_c = jnp.transpose(x[:, :, :L - eff_hist_nc], (0, 2, 1))            # (N, S_c, C)
    x_nc = jnp.transpose(x[:, :, eff_hist_c:][:, :, ::-1], (0, 2, 1))    # (N, S_nc, C)
    S_c, S_nc = x_c.shape[1], x_nc.shape[1]

    scale = math.sqrt(d_model)
    h_c = (x_c @ params["w_c_t"] + params["b_c"]) * scale + params["pe"][:S_c]
    h_nc = (x_nc @ params["w_nc_t"] + params["b_nc"]) * scale + params["pe"][:S_nc]

    enc = params["enc"]
    if S_c == S_nc:
        # shared encoder weights: both streams stacked along batch -> ONE launch
        h = encoder_stack_fused(jnp.concatenate([h_c, h_nc], axis=0), enc,
                                nhead=nhead)
        h_c, h_nc = h[:N], h[N:]
    else:
        h_c = encoder_stack_fused(h_c, enc, nhead=nhead)
        h_nc = encoder_stack_fused(h_nc, enc, nhead=nhead)

    # y1 = per-batch concat of memory[eff_hist:, i]  == batch-major flattening
    y1_c = h_c[:, eff_hist_c:, :].reshape(-1, d_model)
    y1_nc = h_nc[:, eff_hist_nc:, :].reshape(-1, d_model)
    # output head: K = 2E, N = output_size (= 3) — too small to pay a launch.
    return (y1_c @ params["w_out_c_t"] + y1_nc @ params["w_out_nc_t"]
            + params["b_out"])


# ------------------------------- param init -------------------------------- #

def init_params(key, *, input_size_c, input_size_nc, output_size,
                d_model=128, nhead=2, num_encoder_layers=3,
                dim_feedforward=512, eff_hist_c=4, eff_hist_nc=4,
                max_len=10000):
    ks = list(jax.random.split(key, 8 + 8 * num_encoder_layers))
    kit = iter(ks)
    nrm = lambda shape, s: s * jax.random.normal(next(kit), shape, jnp.float32)

    initrange = 0.01                                   # matches init_weights()
    out_w = nrm((output_size, 2 * d_model), initrange)  # PyTorch (out, 2E)
    Dh = d_model // nhead
    qscale = 1.0 / math.sqrt(Dh)

    params = {
        "d_model": d_model, "nhead": nhead,
        "eff_hist_c": eff_hist_c, "eff_hist_nc": eff_hist_nc,
        "pe": make_positional_encoding(max_len, d_model),
        # embedding linears: pre-transposed to (in_features, d_model), f32 (tiny K)
        "w_c_t": nrm((d_model, input_size_c), initrange).T,
        "b_c": nrm((d_model,), initrange).reshape(1, d_model),
        "w_nc_t": nrm((d_model, input_size_nc), initrange).T,
        "b_nc": nrm((d_model,), initrange).reshape(1, d_model),
        # output head: split along the 2E input features (causal | non-causal)
        "w_out_c_t": out_w[:, :d_model].T,
        "w_out_nc_t": out_w[:, d_model:].T,
        "b_out": nrm((output_size,), initrange).reshape(1, output_size),
    }

    wqkv_l, bqkv_l, wo_l, bo_l = [], [], [], []
    w1_l, b1_l, w2_l, b2_l = [], [], [], []
    g1_l, be1_l, g2_l, be2_l = [], [], [], []
    for _ in range(num_encoder_layers):
        wqkv = nrm((3 * d_model, d_model), 0.05)       # PyTorch (3E, E)
        wo = nrm((d_model, d_model), 0.05)
        w1 = nrm((dim_feedforward, d_model), 0.05)
        w2 = nrm((d_model, dim_feedforward), 0.05)

        wqkv_t = wqkv.T                                # (E, 3E)
        # fold 1/sqrt(Dh) q-scale into the Wq columns (and q bias) at init time
        wqkv_t = wqkv_t.at[:, :d_model].multiply(qscale)
        bqkv = jnp.zeros((3 * d_model,), jnp.float32)  # PyTorch MHA inits to 0
        bqkv = bqkv.at[:d_model].multiply(qscale)

        wqkv_l.append(wqkv_t)
        bqkv_l.append(bqkv.reshape(1, 3 * d_model))
        wo_l.append(wo.T)                              # (E, E); rows = per-head blocks
        bo_l.append(jnp.zeros((1, d_model), jnp.float32))
        w1_l.append(w1.T)                              # (E, F)
        b1_l.append(nrm((dim_feedforward,), 0.01).reshape(1, dim_feedforward))
        w2_l.append(w2.T)                              # (F, E)
        b2_l.append(nrm((d_model,), 0.01).reshape(1, d_model))
        g1_l.append(jnp.ones((1, d_model), jnp.float32))
        be1_l.append(jnp.zeros((1, d_model), jnp.float32))
        g2_l.append(jnp.ones((1, d_model), jnp.float32))
        be2_l.append(jnp.zeros((1, d_model), jnp.float32))

    params["enc"] = {
        # matmul weights: pre-transposed, layer-stacked, stored bf16 (f32 acc in-kernel)
        "wqkv_t": jnp.stack(wqkv_l).astype(jnp.bfloat16),   # (L, E, 3E)
        "bqkv": jnp.stack(bqkv_l),                          # (L, 1, 3E)
        "wo_t": jnp.stack(wo_l).astype(jnp.bfloat16),        # (L, E, E)
        "bo": jnp.stack(bo_l),
        "w1_t": jnp.stack(w1_l).astype(jnp.bfloat16),        # (L, E, F)
        "b1": jnp.stack(b1_l),
        "w2_t": jnp.stack(w2_l).astype(jnp.bfloat16),        # (L, F, E)
        "b2": jnp.stack(b2_l),
        "g1": jnp.stack(g1_l), "beta1": jnp.stack(be1_l),
        "g2": jnp.stack(g2_l), "beta2": jnp.stack(be2_l),
    }
    return params


# ---------------------------------- main ------------------------------------ #

if __name__ == "__main__":
    key = jax.random.PRNGKey(0)
    k_param, k_x = jax.random.split(key)

    # small, forward-consistent shapes
    N, C, L = 2, 6, 20                 # batch, input channels, time
    eff_hist_c = eff_hist_nc = 4       # -> S_c = S_nc = 16, L_out = 12
    output_size = 3

    params = init_params(
        k_param,
        input_size_c=C, input_size_nc=C, output_size=output_size,
        d_model=128, nhead=2, num_encoder_layers=3, dim_feedforward=512,
        eff_hist_c=eff_hist_c, eff_hist_nc=eff_hist_nc, max_len=256,
    )
    x = jax.random.normal(k_x, (N, C, L), jnp.float32)

    fwd = jax.jit(lambda inp: transformer_model_2_forward(inp, params))
    out = jax.block_until_ready(fwd(x))

    L_out = L - eff_hist_c - eff_hist_nc
    assert out.shape == (N * L_out, output_size), out.shape
    assert bool(jnp.all(jnp.isfinite(out)))
    print("KERNEL_OK")
</pallas_src>

<mosaic_0001>
module attributes {stable_mosaic.version = 11 : i64} {
  func.func @_encoder_stack_kernel(%arg0: i32, %arg1: memref<32x128xf32, #tpu.memory_space<vmem>>, %arg2: memref<3x128x384xbf16, #tpu.memory_space<vmem>>, %arg3: memref<3x1x384xf32, #tpu.memory_space<vmem>>, %arg4: memref<3x128x128xbf16, #tpu.memory_space<vmem>>, %arg5: memref<3x1x128xf32, #tpu.memory_space<vmem>>, %arg6: memref<3x128x512xbf16, #tpu.memory_space<vmem>>, %arg7: memref<3x1x512xf32, #tpu.memory_space<vmem>>, %arg8: memref<3x512x128xbf16, #tpu.memory_space<vmem>>, %arg9: memref<3x1x128xf32, #tpu.memory_space<vmem>>, %arg10: memref<3x1x128xf32, #tpu.memory_space<vmem>>, %arg11: memref<3x1x128xf32, #tpu.memory_space<vmem>>, %arg12: memref<3x1x128xf32, #tpu.memory_space<vmem>>, %arg13: memref<3x1x128xf32, #tpu.memory_space<vmem>>, %arg14: memref<32x128xf32, #tpu.memory_space<vmem>>) attributes {dimension_semantics = [#tpu.dimension_semantics<parallel>], iteration_bounds = array<i64: 2>, scalar_prefetch = 0 : i64, scratch_operands = 0 : i64, tpu.core_type = #tpu.core_type<tc>, window_params = [{transform_indices = @transform_0, window_bounds = array<i64: 32, 128>}, {pipeline_mode = #tpu.pipeline_mode<synchronous>, transform_indices = @transform_1, window_bounds = array<i64: 3, 128, 384>}, {pipeline_mode = #tpu.pipeline_mode<synchronous>, transform_indices = @transform_2, window_bounds = array<i64: 3, 1, 384>}, {pipeline_mode = #tpu.pipeline_mode<synchronous>, transform_indices = @transform_3, window_bounds = array<i64: 3, 128, 128>}, {pipeline_mode = #tpu.pipeline_mode<synchronous>, transform_indices = @transform_4, window_bounds = array<i64: 3, 1, 128>}, {pipeline_mode = #tpu.pipeline_mode<synchronous>, transform_indices = @transform_5, window_bounds = array<i64: 3, 128, 512>}, {pipeline_mode = #tpu.pipeline_mode<synchronous>, transform_indices = @transform_6, window_bounds = array<i64: 3, 1, 512>}, {pipeline_mode = #tpu.pipeline_mode<synchronous>, transform_indices = @transform_7, window_bounds = array<i64: 3, 512, 128>}, {pipeline_mode = #tpu.pipeline_mode<synchronous>, transform_indices = @transform_8, window_bounds = array<i64: 3, 1, 128>}, {pipeline_mode = #tpu.pipeline_mode<synchronous>, transform_indices = @transform_9, window_bounds = array<i64: 3, 1, 128>}, {pipeline_mode = #tpu.pipeline_mode<synchronous>, transform_indices = @transform_10, window_bounds = array<i64: 3, 1, 128>}, {pipeline_mode = #tpu.pipeline_mode<synchronous>, transform_indices = @transform_11, window_bounds = array<i64: 3, 1, 128>}, {pipeline_mode = #tpu.pipeline_mode<synchronous>, transform_indices = @transform_12, window_bounds = array<i64: 3, 1, 128>}, {transform_indices = @transform_13, window_bounds = array<i64: 32, 128>}]} {
    %c0 = arith.constant 0 : index
    %c0_0 = arith.constant 0 : index
    %0 = vector.load %arg1[%c0, %c0_0] : memref<32x128xf32, #tpu.memory_space<vmem>>, vector<32x128xf32>
    %1 = arith.truncf %0 : vector<32x128xf32> to vector<32x128xbf16>
    %c0_1 = arith.constant 0 : index
    %c0_2 = arith.constant 0 : index
    %c0_3 = arith.constant 0 : index
    %2 = vector.load %arg2[%c0_1, %c0_2, %c0_3] : memref<3x128x384xbf16, #tpu.memory_space<vmem>>, vector<1x128x384xbf16>
    %3 = vector.shape_cast %2 : vector<1x128x384xbf16> to vector<128x384xbf16>
    %cst = arith.constant dense<0.000000e+00> : vector<32x384xf32>
    %4 = tpu.matmul %1, %3, %cst {dimension_numbers = #tpu.dot_dimension_numbers<[1], [0], [0], [1], [0, 0, 1, 1], [], []>} : vector<32x128xbf16>, vector<128x384xbf16>, vector<32x384xf32> -> vector<32x384xf32>
    %c0_4 = arith.constant 0 : index
    %c0_5 = arith.constant 0 : index
    %c0_6 = arith.constant 0 : index
    %5 = vector.load %arg3[%c0_4, %c0_5, %c0_6] : memref<3x1x384xf32, #tpu.memory_space<vmem>>, vector<1x1x384xf32>
    %6 = vector.shape_cast %5 : vector<1x1x384xf32> to vector<1x384xf32>
    %7 = vector.broadcast %6 : vector<1x384xf32> to vector<32x384xf32>
    %8 = arith.addf %4, %7 : vector<32x384xf32>
    %9 = arith.truncf %8 : vector<32x384xf32> to vector<32x384xbf16>
    %10 = vector.extract_strided_slice %9 {offsets = [0, 0], sizes = [16, 64], strides = [1, 1]} : vector<32x384xbf16> to vector<16x64xbf16>
    %11 = vector.extract_strided_slice %9 {offsets = [0, 128], sizes = [16, 64], strides = [1, 1]} : vector<32x384xbf16> to vector<16x64xbf16>
    %12 = vector.extract_strided_slice %9 {offsets = [0, 256], sizes = [16, 64], strides = [1, 1]} : vector<32x384xbf16> to vector<16x64xbf16>
    %cst_7 = arith.constant dense<0.000000e+00> : vector<16x16xf32>
    %13 = tpu.matmul %10, %11, %cst_7 {dimension_numbers = #tpu.dot_dimension_numbers<[1], [1], [0], [0], [0, 0, 1, 0], [], []>} : vector<16x64xbf16>, vector<16x64xbf16>, vector<16x16xf32> -> vector<16x16xf32>
    %cst_8 = arith.constant dense<0xFF800000> : vector<16xf32>
    %14 = vector.multi_reduction <maximumf>, %13, %cst_8 [1] : vector<16x16xf32> to vector<16xf32>
    %15 = vector.shape_cast %14 : vector<16xf32> to vector<16x1xf32>
    %16 = vector.broadcast %15 : vector<16x1xf32> to vector<16x16xf32>
    %17 = arith.subf %13, %16 : vector<16x16xf32>
    %18 = math.exp %17 : vector<16x16xf32>
    %cst_9 = arith.constant dense<0.000000e+00> : vector<16xf32>
    %19 = vector.multi_reduction <add>, %18, %cst_9 [1] : vector<16x16xf32> to vector<16xf32>
    %20 = vector.shape_cast %19 : vector<16xf32> to vector<16x1xf32>
    %21 = tpu.reciprocal %20 {approx = true} : vector<16x1xf32> -> vector<16x1xf32>
    %22 = vector.broadcast %21 : vector<16x1xf32> to vector<16x16xf32>
    %23 = arith.mulf %18, %22 : vector<16x16xf32>
    %24 = arith.truncf %23 : vector<16x16xf32> to vector<16x16xbf16>
    %cst_10 = arith.constant dense<0.000000e+00> : vector<16x64xf32>
    %25 = tpu.matmul %24, %12, %cst_10 {dimension_numbers = #tpu.dot_dimension_numbers<[1], [0], [0], [1], [0, 0, 1, 1], [], []>} : vector<16x16xbf16>, vector<16x64xbf16>, vector<16x64xf32> -> vector<16x64xf32>
    %26 = arith.truncf %25 : vector<16x64xf32> to vector<16x64xbf16>
    %c0_11 = arith.constant 0 : index
    %c0_12 = arith.constant 0 : index
    %c0_13 = arith.constant 0 : index
    %27 = vector.load %arg4[%c0_11, %c0_12, %c0_13] : memref<3x128x128xbf16, #tpu.memory_space<vmem>>, vector<1x64x128xbf16>
    %28 = vector.shape_cast %27 : vector<1x64x128xbf16> to vector<64x128xbf16>
    %cst_14 = arith.constant dense<0.000000e+00> : vector<16x128xf32>
    %29 = tpu.matmul %26, %28, %cst_14 {dimension_numbers = #tpu.dot_dimension_numbers<[1], [0], [0], [1], [0, 0, 1, 1], [], []>} : vector<16x64xbf16>, vector<64x128xbf16>, vector<16x128xf32> -> vector<16x128xf32>
    %30 = vector.extract_strided_slice %9 {offsets = [0, 64], sizes = [16, 64], strides = [1, 1]} : vector<32x384xbf16> to vector<16x64xbf16>
    %31 = vector.extract_strided_slice %9 {offsets = [0, 192], sizes = [16, 64], strides = [1, 1]} : vector<32x384xbf16> to vector<16x64xbf16>
    %32 = vector.extract_strided_slice %9 {offsets = [0, 320], sizes = [16, 64], strides = [1, 1]} : vector<32x384xbf16> to vector<16x64xbf16>
    %cst_15 = arith.constant dense<0.000000e+00> : vector<16x16xf32>
    %33 = tpu.matmul %30, %31, %cst_15 {dimension_numbers = #tpu.dot_dimension_numbers<[1], [1], [0], [0], [0, 0, 1, 0], [], []>} : vector<16x64xbf16>, vector<16x64xbf16>, vector<16x16xf32> -> vector<16x16xf32>
    %cst_16 = arith.constant dense<0xFF800000> : vector<16xf32>
    %34 = vector.multi_reduction <maximumf>, %33, %cst_16 [1] : vector<16x16xf32> to vector<16xf32>
    %35 = vector.shape_cast %34 : vector<16xf32> to vector<16x1xf32>
    %36 = vector.broadcast %35 : vector<16x1xf32> to vector<16x16xf32>
    %37 = arith.subf %33, %36 : vector<16x16xf32>
    %38 = math.exp %37 : vector<16x16xf32>
    %cst_17 = arith.constant dense<0.000000e+00> : vector<16xf32>
    %39 = vector.multi_reduction <add>, %38, %cst_17 [1] : vector<16x16xf32> to vector<16xf32>
    %40 = vector.shape_cast %39 : vector<16xf32> to vector<16x1xf32>
    %41 = tpu.reciprocal %40 {approx = true} : vector<16x1xf32> -> vector<16x1xf32>
    %42 = vector.broadcast %41 : vector<16x1xf32> to vector<16x16xf32>
    %43 = arith.mulf %38, %42 : vector<16x16xf32>
    %44 = arith.truncf %43 : vector<16x16xf32> to vector<16x16xbf16>
    %cst_18 = arith.constant dense<0.000000e+00> : vector<16x64xf32>
    %45 = tpu.matmul %44, %32, %cst_18 {dimension_numbers = #tpu.dot_dimension_numbers<[1], [0], [0], [1], [0, 0, 1, 1], [], []>} : vector<16x16xbf16>, vector<16x64xbf16>, vector<16x64xf32> -> vector<16x64xf32>
    %46 = arith.truncf %45 : vector<16x64xf32> to vector<16x64xbf16>
    %c0_19 = arith.constant 0 : index
    %c64 = arith.constant 64 : index
    %c0_20 = arith.constant 0 : index
    %47 = vector.load %arg4[%c0_19, %c64, %c0_20] : memref<3x128x128xbf16, #tpu.memory_space<vmem>>, vector<1x64x128xbf16>
    %48 = vector.shape_cast %47 : vector<1x64x128xbf16> to vector<64x128xbf16>
    %cst_21 = arith.constant dense<0.000000e+00> : vector<16x128xf32>
    %49 = tpu.matmul %46, %48, %cst_21 {dimension_numbers = #tpu.dot_dimension_numbers<[1], [0], [0], [1], [0, 0, 1, 1], [], []>} : vector<16x64xbf16>, vector<64x128xbf16>, vector<16x128xf32> -> vector<16x128xf32>
    %50 = arith.addf %29, %49 : vector<16x128xf32>
    %51 = vector.extract_strided_slice %9 {offsets = [16, 0], sizes = [16, 64], strides = [1, 1]} : vector<32x384xbf16> to vector<16x64xbf16>
    %52 = vector.extract_strided_slice %9 {offsets = [16, 128], sizes = [16, 64], strides = [1, 1]} : vector<32x384xbf16> to vector<16x64xbf16>
    %53 = vector.extract_strided_slice %9 {offsets = [16, 256], sizes = [16, 64], strides = [1, 1]} : vector<32x384xbf16> to vector<16x64xbf16>
    %cst_22 = arith.constant dense<0.000000e+00> : vector<16x16xf32>
    %54 = tpu.matmul %51, %52, %cst_22 {dimension_numbers = #tpu.dot_dimension_numbers<[1], [1], [0], [0], [0, 0, 1, 0], [], []>} : vector<16x64xbf16>, vector<16x64xbf16>, vector<16x16xf32> -> vector<16x16xf32>
    %cst_23 = arith.constant dense<0xFF800000> : vector<16xf32>
    %55 = vector.multi_reduction <maximumf>, %54, %cst_23 [1] : vector<16x16xf32> to vector<16xf32>
    %56 = vector.shape_cast %55 : vector<16xf32> to vector<16x1xf32>
    %57 = vector.broadcast %56 : vector<16x1xf32> to vector<16x16xf32>
    %58 = arith.subf %54, %57 : vector<16x16xf32>
    %59 = math.exp %58 : vector<16x16xf32>
    %cst_24 = arith.constant dense<0.000000e+00> : vector<16xf32>
    %60 = vector.multi_reduction <add>, %59, %cst_24 [1] : vector<16x16xf32> to vector<16xf32>
    %61 = vector.shape_cast %60 : vector<16xf32> to vector<16x1xf32>
    %62 = tpu.reciprocal %61 {approx = true} : vector<16x1xf32> -> vector<16x1xf32>
    %63 = vector.broadcast %62 : vector<16x1xf32> to vector<16x16xf32>
    %64 = arith.mulf %59, %63 : vector<16x16xf32>
    %65 = arith.truncf %64 : vector<16x16xf32> to vector<16x16xbf16>
    %cst_25 = arith.constant dense<0.000000e+00> : vector<16x64xf32>
    %66 = tpu.matmul %65, %53, %cst_25 {dimension_numbers = #tpu.dot_dimension_numbers<[1], [0], [0], [1], [0, 0, 1, 1], [], []>} : vector<16x16xbf16>, vector<16x64xbf16>, vector<16x64xf32> -> vector<16x64xf32>
    %67 = arith.truncf %66 : vector<16x64xf32> to vector<16x64xbf16>
    %c0_26 = arith.constant 0 : index
    %c0_27 = arith.constant 0 : index
    %c0_28 = arith.constant 0 : index
    %68 = vector.load %arg4[%c0_26, %c0_27, %c0_28] : memref<3x128x128xbf16, #tpu.memory_space<vmem>>, vector<1x64x128xbf16>
    %69 = vector.shape_cast %68 : vector<1x64x128xbf16> to vector<64x128xbf16>
    %cst_29 = arith.constant dense<0.000000e+00> : vector<16x128xf32>
    %70 = tpu.matmul %67, %69, %cst_29 {dimension_numbers = #tpu.dot_dimension_numbers<[1], [0], [0], [1], [0, 0, 1, 1], [], []>} : vector<16x64xbf16>, vector<64x128xbf16>, vector<16x128xf32> -> vector<16x128xf32>
    %71 = vector.extract_strided_slice %9 {offsets = [16, 64], sizes = [16, 64], strides = [1, 1]} : vector<32x384xbf16> to vector<16x64xbf16>
    %72 = vector.extract_strided_slice %9 {offsets = [16, 192], sizes = [16, 64], strides = [1, 1]} : vector<32x384xbf16> to vector<16x64xbf16>
    %73 = vector.extract_strided_slice %9 {offsets = [16, 320], sizes = [16, 64], strides = [1, 1]} : vector<32x384xbf16> to vector<16x64xbf16>
    %cst_30 = arith.constant dense<0.000000e+00> : vector<16x16xf32>
    %74 = tpu.matmul %71, %72, %cst_30 {dimension_numbers = #tpu.dot_dimension_numbers<[1], [1], [0], [0], [0, 0, 1, 0], [], []>} : vector<16x64xbf16>, vector<16x64xbf16>, vector<16x16xf32> -> vector<16x16xf32>
    %cst_31 = arith.constant dense<0xFF800000> : vector<16xf32>
    %75 = vector.multi_reduction <maximumf>, %74, %cst_31 [1] : vector<16x16xf32> to vector<16xf32>
    %76 = vector.shape_cast %75 : vector<16xf32> to vector<16x1xf32>
    %77 = vector.broadcast %76 : vector<16x1xf32> to vector<16x16xf32>
    %78 = arith.subf %74, %77 : vector<16x16xf32>
    %79 = math.exp %78 : vector<16x16xf32>
    %cst_32 = arith.constant dense<0.000000e+00> : vector<16xf32>
    %80 = vector.multi_reduction <add>, %79, %cst_32 [1] : vector<16x16xf32> to vector<16xf32>
    %81 = vector.shape_cast %80 : vector<16xf32> to vector<16x1xf32>
    %82 = tpu.reciprocal %81 {approx = true} : vector<16x1xf32> -> vector<16x1xf32>
    %83 = vector.broadcast %82 : vector<16x1xf32> to vector<16x16xf32>
    %84 = arith.mulf %79, %83 : vector<16x16xf32>
    %85 = arith.truncf %84 : vector<16x16xf32> to vector<16x16xbf16>
    %cst_33 = arith.constant dense<0.000000e+00> : vector<16x64xf32>
    %86 = tpu.matmul %85, %73, %cst_33 {dimension_numbers = #tpu.dot_dimension_numbers<[1], [0], [0], [1], [0, 0, 1, 1], [], []>} : vector<16x16xbf16>, vector<16x64xbf16>, vector<16x64xf32> -> vector<16x64xf32>
    %87 = arith.truncf %86 : vector<16x64xf32> to vector<16x64xbf16>
    %c0_34 = arith.constant 0 : index
    %c64_35 = arith.constant 64 : index
    %c0_36 = arith.constant 0 : index
    %88 = vector.load %arg4[%c0_34, %c64_35, %c0_36] : memref<3x128x128xbf16, #tpu.memory_space<vmem>>, vector<1x64x128xbf16>
    %89 = vector.shape_cast %88 : vector<1x64x128xbf16> to vector<64x128xbf16>
    %cst_37 = arith.constant dense<0.000000e+00> : vector<16x128xf32>
    %90 = tpu.matmul %87, %89, %cst_37 {dimension_numbers = #tpu.dot_dimension_numbers<[1], [0], [0], [1], [0, 0, 1, 1], [], []>} : vector<16x64xbf16>, vector<64x128xbf16>, vector<16x128xf32> -> vector<16x128xf32>
    %91 = arith.addf %70, %90 : vector<16x128xf32>
    %92 = tpu.concatenate %50, %91 in 0 : vector<16x128xf32>, vector<16x128xf32> -> vector<32x128xf32>
    %c0_38 = arith.constant 0 : index
    %c0_39 = arith.constant 0 : index
    %c0_40 = arith.constant 0 : index
    %93 = vector.load %arg5[%c0_38, %c0_39, %c0_40] : memref<3x1x128xf32, #tpu.memory_space<vmem>>, vector<1x1x128xf32>
    %94 = vector.shape_cast %93 : vector<1x1x128xf32> to vector<1x128xf32>
    %95 = vector.broadcast %94 : vector<1x128xf32> to vector<32x128xf32>
    %96 = arith.addf %92, %95 : vector<32x128xf32>
    %97 = arith.addf %0, %96 : vector<32x128xf32>
    %c0_41 = arith.constant 0 : index
    %c0_42 = arith.constant 0 : index
    %c0_43 = arith.constant 0 : index
    %98 = vector.load %arg10[%c0_41, %c0_42, %c0_43] : memref<3x1x128xf32, #tpu.memory_space<vmem>>, vector<1x1x128xf32>
    %99 = vector.shape_cast %98 : vector<1x1x128xf32> to vector<1x128xf32>
    %c0_44 = arith.constant 0 : index
    %c0_45 = arith.constant 0 : index
    %c0_46 = arith.constant 0 : index
    %100 = vector.load %arg11[%c0_44, %c0_45, %c0_46] : memref<3x1x128xf32, #tpu.memory_space<vmem>>, vector<1x1x128xf32>
    %101 = vector.shape_cast %100 : vector<1x1x128xf32> to vector<1x128xf32>
    %cst_47 = arith.constant dense<0.000000e+00> : vector<32xf32>
    %102 = vector.multi_reduction <add>, %97, %cst_47 [1] : vector<32x128xf32> to vector<32xf32>
    %103 = vector.shape_cast %102 : vector<32xf32> to vector<32x1xf32>
    %cst_48 = arith.constant 1.280000e+02 : f32
    %104 = vector.broadcast %cst_48 : f32 to vector<32x1xf32>
    %105 = arith.divf %103, %104 : vector<32x1xf32>
    %106 = vector.broadcast %105 : vector<32x1xf32> to vector<32x128xf32>
    %107 = arith.subf %97, %106 : vector<32x128xf32>
    %108 = arith.mulf %107, %107 : vector<32x128xf32>
    %cst_49 = arith.constant dense<0.000000e+00> : vector<32xf32>
    %109 = vector.multi_reduction <add>, %108, %cst_49 [1] : vector<32x128xf32> to vector<32xf32>
    %110 = vector.shape_cast %109 : vector<32xf32> to vector<32x1xf32>
    %cst_50 = arith.constant 1.280000e+02 : f32
    %111 = vector.broadcast %cst_50 : f32 to vector<32x1xf32>
    %112 = arith.divf %110, %111 : vector<32x1xf32>
    %cst_51 = arith.constant 9.99999974E-6 : f32
    %113 = vector.broadcast %cst_51 : f32 to vector<32x1xf32>
    %114 = arith.addf %112, %113 : vector<32x1xf32>
    %115 = math.rsqrt %114 : vector<32x1xf32>
    %116 = vector.broadcast %115 : vector<32x1xf32> to vector<32x128xf32>
    %117 = arith.mulf %107, %116 : vector<32x128xf32>
    %118 = vector.broadcast %99 : vector<1x128xf32> to vector<32x128xf32>
    %119 = arith.mulf %117, %118 : vector<32x128xf32>
    %120 = vector.broadcast %101 : vector<1x128xf32> to vector<32x128xf32>
    %121 = arith.addf %119, %120 : vector<32x128xf32>
    %122 = arith.truncf %121 : vector<32x128xf32> to vector<32x128xbf16>
    %c0_52 = arith.constant 0 : index
    %c0_53 = arith.constant 0 : index
    %c0_54 = arith.constant 0 : index
    %123 = vector.load %arg6[%c0_52, %c0_53, %c0_54] : memref<3x128x512xbf16, #tpu.memory_space<vmem>>, vector<1x128x512xbf16>
    %124 = vector.shape_cast %123 : vector<1x128x512xbf16> to vector<128x512xbf16>
    %cst_55 = arith.constant dense<0.000000e+00> : vector<32x512xf32>
    %125 = tpu.matmul %122, %124, %cst_55 {dimension_numbers = #tpu.dot_dimension_numbers<[1], [0], [0], [1], [0, 0, 1, 1], [], []>} : vector<32x128xbf16>, vector<128x512xbf16>, vector<32x512xf32> -> vector<32x512xf32>
    %c0_56 = arith.constant 0 : index
    %c0_57 = arith.constant 0 : index
    %c0_58 = arith.constant 0 : index
    %126 = vector.load %arg7[%c0_56, %c0_57, %c0_58] : memref<3x1x512xf32, #tpu.memory_space<vmem>>, vector<1x1x512xf32>
    %127 = vector.shape_cast %126 : vector<1x1x512xf32> to vector<1x512xf32>
    %128 = vector.broadcast %127 : vector<1x512xf32> to vector<32x512xf32>
    %129 = arith.addf %125, %128 : vector<32x512xf32>
    %cst_59 = arith.constant 0.000000e+00 : f32
    %130 = vector.broadcast %cst_59 : f32 to vector<32x512xf32>
    %131 = arith.maximumf %129, %130 : vector<32x512xf32>
    %132 = arith.truncf %131 : vector<32x512xf32> to vector<32x512xbf16>
    %c0_60 = arith.constant 0 : index
    %c0_61 = arith.constant 0 : index
    %c0_62 = arith.constant 0 : index
    %133 = vector.load %arg8[%c0_60, %c0_61, %c0_62] : memref<3x512x128xbf16, #tpu.memory_space<vmem>>, vector<1x512x128xbf16>
    %134 = vector.shape_cast %133 : vector<1x512x128xbf16> to vector<512x128xbf16>
    %cst_63 = arith.constant dense<0.000000e+00> : vector<32x128xf32>
    %135 = tpu.matmul %132, %134, %cst_63 {dimension_numbers = #tpu.dot_dimension_numbers<[1], [0], [0], [1], [0, 0, 1, 1], [], []>} : vector<32x512xbf16>, vector<512x128xbf16>, vector<32x128xf32> -> vector<32x128xf32>
    %c0_64 = arith.constant 0 : index
    %c0_65 = arith.constant 0 : index
    %c0_66 = arith.constant 0 : index
    %136 = vector.load %arg9[%c0_64, %c0_65, %c0_66] : memref<3x1x128xf32, #tpu.memory_space<vmem>>, vector<1x1x128xf32>
    %137 = vector.shape_cast %136 : vector<1x1x128xf32> to vector<1x128xf32>
    %138 = vector.broadcast %137 : vector<1x128xf32> to vector<32x128xf32>
    %139 = arith.addf %135, %138 : vector<32x128xf32>
    %140 = arith.addf %121, %139 : vector<32x128xf32>
    %c0_67 = arith.constant 0 : index
    %c0_68 = arith.constant 0 : index
    %c0_69 = arith.constant 0 : index
    %141 = vector.load %arg12[%c0_67, %c0_68, %c0_69] : memref<3x1x128xf32, #tpu.memory_space<vmem>>, vector<1x1x128xf32>
    %142 = vector.shape_cast %141 : vector<1x1x128xf32> to vector<1x128xf32>
    %c0_70 = arith.constant 0 : index
    %c0_71 = arith.constant 0 : index
    %c0_72 = arith.constant 0 : index
    %143 = vector.load %arg13[%c0_70, %c0_71, %c0_72] : memref<3x1x128xf32, #tpu.memory_space<vmem>>, vector<1x1x128xf32>
    %144 = vector.shape_cast %143 : vector<1x1x128xf32> to vector<1x128xf32>
    %cst_73 = arith.constant dense<0.000000e+00> : vector<32xf32>
    %145 = vector.multi_reduction <add>, %140, %cst_73 [1] : vector<32x128xf32> to vector<32xf32>
    %146 = vector.shape_cast %145 : vector<32xf32> to vector<32x1xf32>
    %cst_74 = arith.constant 1.280000e+02 : f32
    %147 = vector.broadcast %cst_74 : f32 to vector<32x1xf32>
    %148 = arith.divf %146, %147 : vector<32x1xf32>
    %149 = vector.broadcast %148 : vector<32x1xf32> to vector<32x128xf32>
    %150 = arith.subf %140, %149 : vector<32x128xf32>
    %151 = arith.mulf %150, %150 : vector<32x128xf32>
    %cst_75 = arith.constant dense<0.000000e+00> : vector<32xf32>
    %152 = vector.multi_reduction <add>, %151, %cst_75 [1] : vector<32x128xf32> to vector<32xf32>
    %153 = vector.shape_cast %152 : vector<32xf32> to vector<32x1xf32>
    %cst_76 = arith.constant 1.280000e+02 : f32
    %154 = vector.broadcast %cst_76 : f32 to vector<32x1xf32>
    %155 = arith.divf %153, %154 : vector<32x1xf32>
    %cst_77 = arith.constant 9.99999974E-6 : f32
    %156 = vector.broadcast %cst_77 : f32 to vector<32x1xf32>
    %157 = arith.addf %155, %156 : vector<32x1xf32>
    %158 = math.rsqrt %157 : vector<32x1xf32>
    %159 = vector.broadcast %158 : vector<32x1xf32> to vector<32x128xf32>
    %160 = arith.mulf %150, %159 : vector<32x128xf32>
    %161 = vector.broadcast %142 : vector<1x128xf32> to vector<32x128xf32>
    %162 = arith.mulf %160, %161 : vector<32x128xf32>
    %163 = vector.broadcast %144 : vector<1x128xf32> to vector<32x128xf32>
    %164 = arith.addf %162, %163 : vector<32x128xf32>
    %165 = arith.truncf %164 : vector<32x128xf32> to vector<32x128xbf16>
    %c1 = arith.constant 1 : index
    %c0_78 = arith.constant 0 : index
    %c0_79 = arith.constant 0 : index
    %166 = vector.load %arg2[%c1, %c0_78, %c0_79] : memref<3x128x384xbf16, #tpu.memory_space<vmem>>, vector<1x128x384xbf16>
    %167 = vector.shape_cast %166 : vector<1x128x384xbf16> to vector<128x384xbf16>
    %cst_80 = arith.constant dense<0.000000e+00> : vector<32x384xf32>
    %168 = tpu.matmul %165, %167, %cst_80 {dimension_numbers = #tpu.dot_dimension_numbers<[1], [0], [0], [1], [0, 0, 1, 1], [], []>} : vector<32x128xbf16>, vector<128x384xbf16>, vector<32x384xf32> -> vector<32x384xf32>
    %c1_81 = arith.constant 1 : index
    %c0_82 = arith.constant 0 : index
    %c0_83 = arith.constant 0 : index
    %169 = vector.load %arg3[%c1_81, %c0_82, %c0_83] : memref<3x1x384xf32, #tpu.memory_space<vmem>>, vector<1x1x384xf32>
    %170 = vector.shape_cast %169 : vector<1x1x384xf32> to vector<1x384xf32>
    %171 = vector.broadcast %170 : vector<1x384xf32> to vector<32x384xf32>
    %172 = arith.addf %168, %171 : vector<32x384xf32>
    %173 = arith.truncf %172 : vector<32x384xf32> to vector<32x384xbf16>
    %174 = vector.extract_strided_slice %173 {offsets = [0, 0], sizes = [16, 64], strides = [1, 1]} : vector<32x384xbf16> to vector<16x64xbf16>
    %175 = vector.extract_strided_slice %173 {offsets = [0, 128], sizes = [16, 64], strides = [1, 1]} : vector<32x384xbf16> to vector<16x64xbf16>
    %176 = vector.extract_strided_slice %173 {offsets = [0, 256], sizes = [16, 64], strides = [1, 1]} : vector<32x384xbf16> to vector<16x64xbf16>
    %cst_84 = arith.constant dense<0.000000e+00> : vector<16x16xf32>
    %177 = tpu.matmul %174, %175, %cst_84 {dimension_numbers = #tpu.dot_dimension_numbers<[1], [1], [0], [0], [0, 0, 1, 0], [], []>} : vector<16x64xbf16>, vector<16x64xbf16>, vector<16x16xf32> -> vector<16x16xf32>
    %cst_85 = arith.constant dense<0xFF800000> : vector<16xf32>
    %178 = vector.multi_reduction <maximumf>, %177, %cst_85 [1] : vector<16x16xf32> to vector<16xf32>
    %179 = vector.shape_cast %178 : vector<16xf32> to vector<16x1xf32>
    %180 = vector.broadcast %179 : vector<16x1xf32> to vector<16x16xf32>
    %181 = arith.subf %177, %180 : vector<16x16xf32>
    %182 = math.exp %181 : vector<16x16xf32>
    %cst_86 = arith.constant dense<0.000000e+00> : vector<16xf32>
    %183 = vector.multi_reduction <add>, %182, %cst_86 [1] : vector<16x16xf32> to vector<16xf32>
    %184 = vector.shape_cast %183 : vector<16xf32> to vector<16x1xf32>
    %185 = tpu.reciprocal %184 {approx = true} : vector<16x1xf32> -> vector<16x1xf32>
    %186 = vector.broadcast %185 : vector<16x1xf32> to vector<16x16xf32>
    %187 = arith.mulf %182, %186 : vector<16x16xf32>
    %188 = arith.truncf %187 : vector<16x16xf32> to vector<16x16xbf16>
    %cst_87 = arith.constant dense<0.000000e+00> : vector<16x64xf32>
    %189 = tpu.matmul %188, %176, %cst_87 {dimension_numbers = #tpu.dot_dimension_numbers<[1], [0], [0], [1], [0, 0, 1, 1], [], []>} : vector<16x16xbf16>, vector<16x64xbf16>, vector<16x64xf32> -> vector<16x64xf32>
    %190 = arith.truncf %189 : vector<16x64xf32> to vector<16x64xbf16>
    %c1_88 = arith.constant 1 : index
    %c0_89 = arith.constant 0 : index
    %c0_90 = arith.constant 0 : index
    %191 = vector.load %arg4[%c1_88, %c0_89, %c0_90] : memref<3x128x128xbf16, #tpu.memory_space<vmem>>, vector<1x64x128xbf16>
    %192 = vector.shape_cast %191 : vector<1x64x128xbf16> to vector<64x128xbf16>
    %cst_91 = arith.constant dense<0.000000e+00> : vector<16x128xf32>
    %193 = tpu.matmul %190, %192, %cst_91 {dimension_numbers = #tpu.dot_dimension_numbers<[1], [0], [0], [1], [0, 0, 1, 1], [], []>} : vector<16x64xbf16>, vector<64x128xbf16>, vector<16x128xf32> -> vector<16x128xf32>
    %194 = vector.extract_strided_slice %173 {offsets = [0, 64], sizes = [16, 64], strides = [1, 1]} : vector<32x384xbf16> to vector<16x64xbf16>
    %195 = vector.extract_strided_slice %173 {offsets = [0, 192], sizes = [16, 64], strides = [1, 1]} : vector<32x384xbf16> to vector<16x64xbf16>
    %196 = vector.extract_strided_slice %173 {offsets = [0, 320], sizes = [16, 64], strides = [1, 1]} : vector<32x384xbf16> to vector<16x64xbf16>
    %cst_92 = arith.constant dense<0.000000e+00> : vector<16x16xf32>
    %197 = tpu.matmul %194, %195, %cst_92 {dimension_numbers = #tpu.dot_dimension_numbers<[1], [1], [0], [0], [0, 0, 1, 0], [], []>} : vector<16x64xbf16>, vector<16x64xbf16>, vector<16x16xf32> -> vector<16x16xf32>
    %cst_93 = arith.constant dense<0xFF800000> : vector<16xf32>
    %198 = vector.multi_reduction <maximumf>, %197, %cst_93 [1] : vector<16x16xf32> to vector<16xf32>
    %199 = vector.shape_cast %198 : vector<16xf32> to vector<16x1xf32>
    %200 = vector.broadcast %199 : vector<16x1xf32> to vector<16x16xf32>
    %201 = arith.subf %197, %200 : vector<16x16xf32>
    %202 = math.exp %201 : vector<16x16xf32>
    %cst_94 = arith.constant dense<0.000000e+00> : vector<16xf32>
    %203 = vector.multi_reduction <add>, %202, %cst_94 [1] : vector<16x16xf32> to vector<16xf32>
    %204 = vector.shape_cast %203 : vector<16xf32> to vector<16x1xf32>
    %205 = tpu.reciprocal %204 {approx = true} : vector<16x1xf32> -> vector<16x1xf32>
    %206 = vector.broadcast %205 : vector<16x1xf32> to vector<16x16xf32>
    %207 = arith.mulf %202, %206 : vector<16x16xf32>
    %208 = arith.truncf %207 : vector<16x16xf32> to vector<16x16xbf16>
    %cst_95 = arith.constant dense<0.000000e+00> : vector<16x64xf32>
    %209 = tpu.matmul %208, %196, %cst_95 {dimension_numbers = #tpu.dot_dimension_numbers<[1], [0], [0], [1], [0, 0, 1, 1], [], []>} : vector<16x16xbf16>, vector<16x64xbf16>, vector<16x64xf32> -> vector<16x64xf32>
    %210 = arith.truncf %209 : vector<16x64xf32> to vector<16x64xbf16>
    %c1_96 = arith.constant 1 : index
    %c64_97 = arith.constant 64 : index
    %c0_98 = arith.constant 0 : index
    %211 = vector.load %arg4[%c1_96, %c64_97, %c0_98] : memref<3x128x128xbf16, #tpu.memory_space<vmem>>, vector<1x64x128xbf16>
    %212 = vector.shape_cast %211 : vector<1x64x128xbf16> to vector<64x128xbf16>
    %cst_99 = arith.constant dense<0.000000e+00> : vector<16x128xf32>
    %213 = tpu.matmul %210, %212, %cst_99 {dimension_numbers = #tpu.dot_dimension_numbers<[1], [0], [0], [1], [0, 0, 1, 1], [], []>} : vector<16x64xbf16>, vector<64x128xbf16>, vector<16x128xf32> -> vector<16x128xf32>
    %214 = arith.addf %193, %213 : vector<16x128xf32>
    %215 = vector.extract_strided_slice %173 {offsets = [16, 0], sizes = [16, 64], strides = [1, 1]} : vector<32x384xbf16> to vector<16x64xbf16>
    %216 = vector.extract_strided_slice %173 {offsets = [16, 128], sizes = [16, 64], strides = [1, 1]} : vector<32x384xbf16> to vector<16x64xbf16>
    %217 = vector.extract_strided_slice %173 {offsets = [16, 256], sizes = [16, 64], strides = [1, 1]} : vector<32x384xbf16> to vector<16x64xbf16>
    %cst_100 = arith.constant dense<0.000000e+00> : vector<16x16xf32>
    %218 = tpu.matmul %215, %216, %cst_100 {dimension_numbers = #tpu.dot_dimension_numbers<[1], [1], [0], [0], [0, 0, 1, 0], [], []>} : vector<16x64xbf16>, vector<16x64xbf16>, vector<16x16xf32> -> vector<16x16xf32>
    %cst_101 = arith.constant dense<0xFF800000> : vector<16xf32>
    %219 = vector.multi_reduction <maximumf>, %218, %cst_101 [1] : vector<16x16xf32> to vector<16xf32>
    %220 = vector.shape_cast %219 : vector<16xf32> to vector<16x1xf32>
    %221 = vector.broadcast %220 : vector<16x1xf32> to vector<16x16xf32>
    %222 = arith.subf %218, %221 : vector<16x16xf32>
    %223 = math.exp %222 : vector<16x16xf32>
    %cst_102 = arith.constant dense<0.000000e+00> : vector<16xf32>
    %224 = vector.multi_reduction <add>, %223, %cst_102 [1] : vector<16x16xf32> to vector<16xf32>
    %225 = vector.shape_cast %224 : vector<16xf32> to vector<16x1xf32>
    %226 = tpu.reciprocal %225 {approx = true} : vector<16x1xf32> -> vector<16x1xf32>
    %227 = vector.broadcast %226 : vector<16x1xf32> to vector<16x16xf32>
    %228 = arith.mulf %223, %227 : vector<16x16xf32>
    %229 = arith.truncf %228 : vector<16x16xf32> to vector<16x16xbf16>
    %cst_103 = arith.constant dense<0.000000e+00> : vector<16x64xf32>
    %230 = tpu.matmul %229, %217, %cst_103 {dimension_numbers = #tpu.dot_dimension_numbers<[1], [0], [0], [1], [0, 0, 1, 1], [], []>} : vector<16x16xbf16>, vector<16x64xbf16>, vector<16x64xf32> -> vector<16x64xf32>
    %231 = arith.truncf %230 : vector<16x64xf32> to vector<16x64xbf16>
    %c1_104 = arith.constant 1 : index
    %c0_105 = arith.constant 0 : index
    %c0_106 = arith.constant 0 : index
    %232 = vector.load %arg4[%c1_104, %c0_105, %c0_106] : memref<3x128x128xbf16, #tpu.memory_space<vmem>>, vector<1x64x128xbf16>
    %233 = vector.shape_cast %232 : vector<1x64x128xbf16> to vector<64x128xbf16>
    %cst_107 = arith.constant dense<0.000000e+00> : vector<16x128xf32>
    %234 = tpu.matmul %231, %233, %cst_107 {dimension_numbers = #tpu.dot_dimension_numbers<[1], [0], [0], [1], [0, 0, 1, 1], [], []>} : vector<16x64xbf16>, vector<64x128xbf16>, vector<16x128xf32> -> vector<16x128xf32>
    %235 = vector.extract_strided_slice %173 {offsets = [16, 64], sizes = [16, 64], strides = [1, 1]} : vector<32x384xbf16> to vector<16x64xbf16>
    %236 = vector.extract_strided_slice %173 {offsets = [16, 192], sizes = [16, 64], strides = [1, 1]} : vector<32x384xbf16> to vector<16x64xbf16>
    %237 = vector.extract_strided_slice %173 {offsets = [16, 320], sizes = [16, 64], strides = [1, 1]} : vector<32x384xbf16> to vector<16x64xbf16>
    %cst_108 = arith.constant dense<0.000000e+00> : vector<16x16xf32>
    %238 = tpu.matmul %235, %236, %cst_108 {dimension_numbers = #tpu.dot_dimension_numbers<[1], [1], [0], [0], [0, 0, 1, 0], [], []>} : vector<16x64xbf16>, vector<16x64xbf16>, vector<16x16xf32> -> vector<16x16xf32>
    %cst_109 = arith.constant dense<0xFF800000> : vector<16xf32>
    %239 = vector.multi_reduction <maximumf>, %238, %cst_109 [1] : vector<16x16xf32> to vector<16xf32>
    %240 = vector.shape_cast %239 : vector<16xf32> to vector<16x1xf32>
    %241 = vector.broadcast %240 : vector<16x1xf32> to vector<16x16xf32>
    %242 = arith.subf %238, %241 : vector<16x16xf32>
    %243 = math.exp %242 : vector<16x16xf32>
    %cst_110 = arith.constant dense<0.000000e+00> : vector<16xf32>
    %244 = vector.multi_reduction <add>, %243, %cst_110 [1] : vector<16x16xf32> to vector<16xf32>
    %245 = vector.shape_cast %244 : vector<16xf32> to vector<16x1xf32>
    %246 = tpu.reciprocal %245 {approx = true} : vector<16x1xf32> -> vector<16x1xf32>
    %247 = vector.broadcast %246 : vector<16x1xf32> to vector<16x16xf32>
    %248 = arith.mulf %243, %247 : vector<16x16xf32>
    %249 = arith.truncf %248 : vector<16x16xf32> to vector<16x16xbf16>
    %cst_111 = arith.constant dense<0.000000e+00> : vector<16x64xf32>
    %250 = tpu.matmul %249, %237, %cst_111 {dimension_numbers = #tpu.dot_dimension_numbers<[1], [0], [0], [1], [0, 0, 1, 1], [], []>} : vector<16x16xbf16>, vector<16x64xbf16>, vector<16x64xf32> -> vector<16x64xf32>
    %251 = arith.truncf %250 : vector<16x64xf32> to vector<16x64xbf16>
    %c1_112 = arith.constant 1 : index
    %c64_113 = arith.constant 64 : index
    %c0_114 = arith.constant 0 : index
    %252 = vector.load %arg4[%c1_112, %c64_113, %c0_114] : memref<3x128x128xbf16, #tpu.memory_space<vmem>>, vector<1x64x128xbf16>
    %253 = vector.shape_cast %252 : vector<1x64x128xbf16> to vector<64x128xbf16>
    %cst_115 = arith.constant dense<0.000000e+00> : vector<16x128xf32>
    %254 = tpu.matmul %251, %253, %cst_115 {dimension_numbers = #tpu.dot_dimension_numbers<[1], [0], [0], [1], [0, 0, 1, 1], [], []>} : vector<16x64xbf16>, vector<64x128xbf16>, vector<16x128xf32> -> vector<16x128xf32>
    %255 = arith.addf %234, %254 : vector<16x128xf32>
    %256 = tpu.concatenate %214, %255 in 0 : vector<16x128xf32>, vector<16x128xf32> -> vector<32x128xf32>
    %c1_116 = arith.constant 1 : index
    %c0_117 = arith.constant 0 : index
    %c0_118 = arith.constant 0 : index
    %257 = vector.load %arg5[%c1_116, %c0_117, %c0_118] : memref<3x1x128xf32, #tpu.memory_space<vmem>>, vector<1x1x128xf32>
    %258 = vector.shape_cast %257 : vector<1x1x128xf32> to vector<1x128xf32>
    %259 = vector.broadcast %258 : vector<1x128xf32> to vector<32x128xf32>
    %260 = arith.addf %256, %259 : vector<32x128xf32>
    %261 = arith.addf %164, %260 : vector<32x128xf32>
    %c1_119 = arith.constant 1 : index
    %c0_120 = arith.constant 0 : index
    %c0_121 = arith.constant 0 : index
    %262 = vector.load %arg10[%c1_119, %c0_120, %c0_121] : memref<3x1x128xf32, #tpu.memory_space<vmem>>, vector<1x1x128xf32>
    %263 = vector.shape_cast %262 : vector<1x1x128xf32> to vector<1x128xf32>
    %c1_122 = arith.constant 1 : index
    %c0_123 = arith.constant 0 : index
    %c0_124 = arith.constant 0 : index
    %264 = vector.load %arg11[%c1_122, %c0_123, %c0_124] : memref<3x1x128xf32, #tpu.memory_space<vmem>>, vector<1x1x128xf32>
    %265 = vector.shape_cast %264 : vector<1x1x128xf32> to vector<1x128xf32>
    %cst_125 = arith.constant dense<0.000000e+00> : vector<32xf32>
    %266 = vector.multi_reduction <add>, %261, %cst_125 [1] : vector<32x128xf32> to vector<32xf32>
    %267 = vector.shape_cast %266 : vector<32xf32> to vector<32x1xf32>
    %cst_126 = arith.constant 1.280000e+02 : f32
    %268 = vector.broadcast %cst_126 : f32 to vector<32x1xf32>
    %269 = arith.divf %267, %268 : vector<32x1xf32>
    %270 = vector.broadcast %269 : vector<32x1xf32> to vector<32x128xf32>
    %271 = arith.subf %261, %270 : vector<32x128xf32>
    %272 = arith.mulf %271, %271 : vector<32x128xf32>
    %cst_127 = arith.constant dense<0.000000e+00> : vector<32xf32>
    %273 = vector.multi_reduction <add>, %272, %cst_127 [1] : vector<32x128xf32> to vector<32xf32>
    %274 = vector.shape_cast %273 : vector<32xf32> to vector<32x1xf32>
    %cst_128 = arith.constant 1.280000e+02 : f32
    %275 = vector.broadcast %cst_128 : f32 to vector<32x1xf32>
    %276 = arith.divf %274, %275 : vector<32x1xf32>
    %cst_129 = arith.constant 9.99999974E-6 : f32
    %277 = vector.broadcast %cst_129 : f32 to vector<32x1xf32>
    %278 = arith.addf %276, %277 : vector<32x1xf32>
    %279 = math.rsqrt %278 : vector<32x1xf32>
    %280 = vector.broadcast %279 : vector<32x1xf32> to vector<32x128xf32>
    %281 = arith.mulf %271, %280 : vector<32x128xf32>
    %282 = vector.broadcast %263 : vector<1x128xf32> to vector<32x128xf32>
    %283 = arith.mulf %281, %282 : vector<32x128xf32>
    %284 = vector.broadcast %265 : vector<1x128xf32> to vector<32x128xf32>
    %285 = arith.addf %283, %284 : vector<32x128xf32>
    %286 = arith.truncf %285 : vector<32x128xf32> to vector<32x128xbf16>
    %c1_130 = arith.constant 1 : index
    %c0_131 = arith.constant 0 : index
    %c0_132 = arith.constant 0 : index
    %287 = vector.load %arg6[%c1_130, %c0_131, %c0_132] : memref<3x128x512xbf16, #tpu.memory_space<vmem>>, vector<1x128x512xbf16>
    %288 = vector.shape_cast %287 : vector<1x128x512xbf16> to vector<128x512xbf16>
    %cst_133 = arith.constant dense<0.000000e+00> : vector<32x512xf32>
    %289 = tpu.matmul %286, %288, %cst_133 {dimension_numbers = #tpu.dot_dimension_numbers<[1], [0], [0], [1], [0, 0, 1, 1], [], []>} : vector<32x128xbf16>, vector<128x512xbf16>, vector<32x512xf32> -> vector<32x512xf32>
    %c1_134 = arith.constant 1 : index
    %c0_135 = arith.constant 0 : index
    %c0_136 = arith.constant 0 : index
    %290 = vector.load %arg7[%c1_134, %c0_135, %c0_136] : memref<3x1x512xf32, #tpu.memory_space<vmem>>, vector<1x1x512xf32>
    %291 = vector.shape_cast %290 : vector<1x1x512xf32> to vector<1x512xf32>
    %292 = vector.broadcast %291 : vector<1x512xf32> to vector<32x512xf32>
    %293 = arith.addf %289, %292 : vector<32x512xf32>
    %cst_137 = arith.constant 0.000000e+00 : f32
    %294 = vector.broadcast %cst_137 : f32 to vector<32x512xf32>
    %295 = arith.maximumf %293, %294 : vector<32x512xf32>
    %296 = arith.truncf %295 : vector<32x512xf32> to vector<32x512xbf16>
    %c1_138 = arith.constant 1 : index
    %c0_139 = arith.constant 0 : index
    %c0_140 = arith.constant 0 : index
    %297 = vector.load %arg8[%c1_138, %c0_139, %c0_140] : memref<3x512x128xbf16, #tpu.memory_space<vmem>>, vector<1x512x128xbf16>
    %298 = vector.shape_cast %297 : vector<1x512x128xbf16> to vector<512x128xbf16>
    %cst_141 = arith.constant dense<0.000000e+00> : vector<32x128xf32>
    %299 = tpu.matmul %296, %298, %cst_141 {dimension_numbers = #tpu.dot_dimension_numbers<[1], [0], [0], [1], [0, 0, 1, 1], [], []>} : vector<32x512xbf16>, vector<512x128xbf16>, vector<32x128xf32> -> vector<32x128xf32>
    %c1_142 = arith.constant 1 : index
    %c0_143 = arith.constant 0 : index
    %c0_144 = arith.constant 0 : index
    %300 = vector.load %arg9[%c1_142, %c0_143, %c0_144] : memref<3x1x128xf32, #tpu.memory_space<vmem>>, vector<1x1x128xf32>
    %301 = vector.shape_cast %300 : vector<1x1x128xf32> to vector<1x128xf32>
    %302 = vector.broadcast %301 : vector<1x128xf32> to vector<32x128xf32>
    %303 = arith.addf %299, %302 : vector<32x128xf32>
    %304 = arith.addf %285, %303 : vector<32x128xf32>
    %c1_145 = arith.constant 1 : index
    %c0_146 = arith.constant 0 : index
    %c0_147 = arith.constant 0 : index
    %305 = vector.load %arg12[%c1_145, %c0_146, %c0_147] : memref<3x1x128xf32, #tpu.memory_space<vmem>>, vector<1x1x128xf32>
    %306 = vector.shape_cast %305 : vector<1x1x128xf32> to vector<1x128xf32>
    %c1_148 = arith.constant 1 : index
    %c0_149 = arith.constant 0 : index
    %c0_150 = arith.constant 0 : index
    %307 = vector.load %arg13[%c1_148, %c0_149, %c0_150] : memref<3x1x128xf32, #tpu.memory_space<vmem>>, vector<1x1x128xf32>
    %308 = vector.shape_cast %307 : vector<1x1x128xf32> to vector<1x128xf32>
    %cst_151 = arith.constant dense<0.000000e+00> : vector<32xf32>
    %309 = vector.multi_reduction <add>, %304, %cst_151 [1] : vector<32x128xf32> to vector<32xf32>
    %310 = vector.shape_cast %309 : vector<32xf32> to vector<32x1xf32>
    %cst_152 = arith.constant 1.280000e+02 : f32
    %311 = vector.broadcast %cst_152 : f32 to vector<32x1xf32>
    %312 = arith.divf %310, %311 : vector<32x1xf32>
    %313 = vector.broadcast %312 : vector<32x1xf32> to vector<32x128xf32>
    %314 = arith.subf %304, %313 : vector<32x128xf32>
    %315 = arith.mulf %314, %314 : vector<32x128xf32>
    %cst_153 = arith.constant dense<0.000000e+00> : vector<32xf32>
    %316 = vector.multi_reduction <add>, %315, %cst_153 [1] : vector<32x128xf32> to vector<32xf32>
    %317 = vector.shape_cast %316 : vector<32xf32> to vector<32x1xf32>
    %cst_154 = arith.constant 1.280000e+02 : f32
    %318 = vector.broadcast %cst_154 : f32 to vector<32x1xf32>
    %319 = arith.divf %317, %318 : vector<32x1xf32>
    %cst_155 = arith.constant 9.99999974E-6 : f32
    %320 = vector.broadcast %cst_155 : f32 to vector<32x1xf32>
    %321 = arith.addf %319, %320 : vector<32x1xf32>
    %322 = math.rsqrt %321 : vector<32x1xf32>
    %323 = vector.broadcast %322 : vector<32x1xf32> to vector<32x128xf32>
    %324 = arith.mulf %314, %323 : vector<32x128xf32>
    %325 = vector.broadcast %306 : vector<1x128xf32> to vector<32x128xf32>
    %326 = arith.mulf %324, %325 : vector<32x128xf32>
    %327 = vector.broadcast %308 : vector<1x128xf32> to vector<32x128xf32>
    %328 = arith.addf %326, %327 : vector<32x128xf32>
    %329 = arith.truncf %328 : vector<32x128xf32> to vector<32x128xbf16>
    %c2 = arith.constant 2 : index
    %c0_156 = arith.constant 0 : index
    %c0_157 = arith.constant 0 : index
    %330 = vector.load %arg2[%c2, %c0_156, %c0_157] : memref<3x128x384xbf16, #tpu.memory_space<vmem>>, vector<1x128x384xbf16>
    %331 = vector.shape_cast %330 : vector<1x128x384xbf16> to vector<128x384xbf16>
    %cst_158 = arith.constant dense<0.000000e+00> : vector<32x384xf32>
    %332 = tpu.matmul %329, %331, %cst_158 {dimension_numbers = #tpu.dot_dimension_numbers<[1], [0], [0], [1], [0, 0, 1, 1], [], []>} : vector<32x128xbf16>, vector<128x384xbf16>, vector<32x384xf32> -> vector<32x384xf32>
    %c2_159 = arith.constant 2 : index
    %c0_160 = arith.constant 0 : index
    %c0_161 = arith.constant 0 : index
    %333 = vector.load %arg3[%c2_159, %c0_160, %c0_161] : memref<3x1x384xf32, #tpu.memory_space<vmem>>, vector<1x1x384xf32>
    %334 = vector.shape_cast %333 : vector<1x1x384xf32> to vector<1x384xf32>
    %335 = vector.broadcast %334 : vector<1x384xf32> to vector<32x384xf32>
    %336 = arith.addf %332, %335 : vector<32x384xf32>
    %337 = arith.truncf %336 : vector<32x384xf32> to vector<32x384xbf16>
    %338 = vector.extract_strided_slice %337 {offsets = [0, 0], sizes = [16, 64], strides = [1, 1]} : vector<32x384xbf16> to vector<16x64xbf16>
    %339 = vector.extract_strided_slice %337 {offsets = [0, 128], sizes = [16, 64], strides = [1, 1]} : vector<32x384xbf16> to vector<16x64xbf16>
    %340 = vector.extract_strided_slice %337 {offsets = [0, 256], sizes = [16, 64], strides = [1, 1]} : vector<32x384xbf16> to vector<16x64xbf16>
    %cst_162 = arith.constant dense<0.000000e+00> : vector<16x16xf32>
    %341 = tpu.matmul %338, %339, %cst_162 {dimension_numbers = #tpu.dot_dimension_numbers<[1], [1], [0], [0], [0, 0, 1, 0], [], []>} : vector<16x64xbf16>, vector<16x64xbf16>, vector<16x16xf32> -> vector<16x16xf32>
    %cst_163 = arith.constant dense<0xFF800000> : vector<16xf32>
    %342 = vector.multi_reduction <maximumf>, %341, %cst_163 [1] : vector<16x16xf32> to vector<16xf32>
    %343 = vector.shape_cast %342 : vector<16xf32> to vector<16x1xf32>
    %344 = vector.broadcast %343 : vector<16x1xf32> to vector<16x16xf32>
    %345 = arith.subf %341, %344 : vector<16x16xf32>
    %346 = math.exp %345 : vector<16x16xf32>
    %cst_164 = arith.constant dense<0.000000e+00> : vector<16xf32>
    %347 = vector.multi_reduction <add>, %346, %cst_164 [1] : vector<16x16xf32> to vector<16xf32>
    %348 = vector.shape_cast %347 : vector<16xf32> to vector<16x1xf32>
    %349 = tpu.reciprocal %348 {approx = true} : vector<16x1xf32> -> vector<16x1xf32>
    %350 = vector.broadcast %349 : vector<16x1xf32> to vector<16x16xf32>
    %351 = arith.mulf %346, %350 : vector<16x16xf32>
    %352 = arith.truncf %351 : vector<16x16xf32> to vector<16x16xbf16>
    %cst_165 = arith.constant dense<0.000000e+00> : vector<16x64xf32>
    %353 = tpu.matmul %352, %340, %cst_165 {dimension_numbers = #tpu.dot_dimension_numbers<[1], [0], [0], [1], [0, 0, 1, 1], [], []>} : vector<16x16xbf16>, vector<16x64xbf16>, vector<16x64xf32> -> vector<16x64xf32>
    %354 = arith.truncf %353 : vector<16x64xf32> to vector<16x64xbf16>
    %c2_166 = arith.constant 2 : index
    %c0_167 = arith.constant 0 : index
    %c0_168 = arith.constant 0 : index
    %355 = vector.load %arg4[%c2_166, %c0_167, %c0_168] : memref<3x128x128xbf16, #tpu.memory_space<vmem>>, vector<1x64x128xbf16>
    %356 = vector.shape_cast %355 : vector<1x64x128xbf16> to vector<64x128xbf16>
    %cst_169 = arith.constant dense<0.000000e+00> : vector<16x128xf32>
    %357 = tpu.matmul %354, %356, %cst_169 {dimension_numbers = #tpu.dot_dimension_numbers<[1], [0], [0], [1], [0, 0, 1, 1], [], []>} : vector<16x64xbf16>, vector<64x128xbf16>, vector<16x128xf32> -> vector<16x128xf32>
    %358 = vector.extract_strided_slice %337 {offsets = [0, 64], sizes = [16, 64], strides = [1, 1]} : vector<32x384xbf16> to vector<16x64xbf16>
    %359 = vector.extract_strided_slice %337 {offsets = [0, 192], sizes = [16, 64], strides = [1, 1]} : vector<32x384xbf16> to vector<16x64xbf16>
    %360 = vector.extract_strided_slice %337 {offsets = [0, 320], sizes = [16, 64], strides = [1, 1]} : vector<32x384xbf16> to vector<16x64xbf16>
    %cst_170 = arith.constant dense<0.000000e+00> : vector<16x16xf32>
    %361 = tpu.matmul %358, %359, %cst_170 {dimension_numbers = #tpu.dot_dimension_numbers<[1], [1], [0], [0], [0, 0, 1, 0], [], []>} : vector<16x64xbf16>, vector<16x64xbf16>, vector<16x16xf32> -> vector<16x16xf32>
    %cst_171 = arith.constant dense<0xFF800000> : vector<16xf32>
    %362 = vector.multi_reduction <maximumf>, %361, %cst_171 [1] : vector<16x16xf32> to vector<16xf32>
    %363 = vector.shape_cast %362 : vector<16xf32> to vector<16x1xf32>
    %364 = vector.broadcast %363 : vector<16x1xf32> to vector<16x16xf32>
    %365 = arith.subf %361, %364 : vector<16x16xf32>
    %366 = math.exp %365 : vector<16x16xf32>
    %cst_172 = arith.constant dense<0.000000e+00> : vector<16xf32>
    %367 = vector.multi_reduction <add>, %366, %cst_172 [1] : vector<16x16xf32> to vector<16xf32>
    %368 = vector.shape_cast %367 : vector<16xf32> to vector<16x1xf32>
    %369 = tpu.reciprocal %368 {approx = true} : vector<16x1xf32> -> vector<16x1xf32>
    %370 = vector.broadcast %369 : vector<16x1xf32> to vector<16x16xf32>
    %371 = arith.mulf %366, %370 : vector<16x16xf32>
    %372 = arith.truncf %371 : vector<16x16xf32> to vector<16x16xbf16>
    %cst_173 = arith.constant dense<0.000000e+00> : vector<16x64xf32>
    %373 = tpu.matmul %372, %360, %cst_173 {dimension_numbers = #tpu.dot_dimension_numbers<[1], [0], [0], [1], [0, 0, 1, 1], [], []>} : vector<16x16xbf16>, vector<16x64xbf16>, vector<16x64xf32> -> vector<16x64xf32>
    %374 = arith.truncf %373 : vector<16x64xf32> to vector<16x64xbf16>
    %c2_174 = arith.constant 2 : index
    %c64_175 = arith.constant 64 : index
    %c0_176 = arith.constant 0 : index
    %375 = vector.load %arg4[%c2_174, %c64_175, %c0_176] : memref<3x128x128xbf16, #tpu.memory_space<vmem>>, vector<1x64x128xbf16>
    %376 = vector.shape_cast %375 : vector<1x64x128xbf16> to vector<64x128xbf16>
    %cst_177 = arith.constant dense<0.000000e+00> : vector<16x128xf32>
    %377 = tpu.matmul %374, %376, %cst_177 {dimension_numbers = #tpu.dot_dimension_numbers<[1], [0], [0], [1], [0, 0, 1, 1], [], []>} : vector<16x64xbf16>, vector<64x128xbf16>, vector<16x128xf32> -> vector<16x128xf32>
    %378 = arith.addf %357, %377 : vector<16x128xf32>
    %379 = vector.extract_strided_slice %337 {offsets = [16, 0], sizes = [16, 64], strides = [1, 1]} : vector<32x384xbf16> to vector<16x64xbf16>
    %380 = vector.extract_strided_slice %337 {offsets = [16, 128], sizes = [16, 64], strides = [1, 1]} : vector<32x384xbf16> to vector<16x64xbf16>
    %381 = vector.extract_strided_slice %337 {offsets = [16, 256], sizes = [16, 64], strides = [1, 1]} : vector<32x384xbf16> to vector<16x64xbf16>
    %cst_178 = arith.constant dense<0.000000e+00> : vector<16x16xf32>
    %382 = tpu.matmul %379, %380, %cst_178 {dimension_numbers = #tpu.dot_dimension_numbers<[1], [1], [0], [0], [0, 0, 1, 0], [], []>} : vector<16x64xbf16>, vector<16x64xbf16>, vector<16x16xf32> -> vector<16x16xf32>
    %cst_179 = arith.constant dense<0xFF800000> : vector<16xf32>
    %383 = vector.multi_reduction <maximumf>, %382, %cst_179 [1] : vector<16x16xf32> to vector<16xf32>
    %384 = vector.shape_cast %383 : vector<16xf32> to vector<16x1xf32>
    %385 = vector.broadcast %384 : vector<16x1xf32> to vector<16x16xf32>
    %386 = arith.subf %382, %385 : vector<16x16xf32>
    %387 = math.exp %386 : vector<16x16xf32>
    %cst_180 = arith.constant dense<0.000000e+00> : vector<16xf32>
    %388 = vector.multi_reduction <add>, %387, %cst_180 [1] : vector<16x16xf32> to vector<16xf32>
    %389 = vector.shape_cast %388 : vector<16xf32> to vector<16x1xf32>
    %390 = tpu.reciprocal %389 {approx = true} : vector<16x1xf32> -> vector<16x1xf32>
    %391 = vector.broadcast %390 : vector<16x1xf32> to vector<16x16xf32>
    %392 = arith.mulf %387, %391 : vector<16x16xf32>
    %393 = arith.truncf %392 : vector<16x16xf32> to vector<16x16xbf16>
    %cst_181 = arith.constant dense<0.000000e+00> : vector<16x64xf32>
    %394 = tpu.matmul %393, %381, %cst_181 {dimension_numbers = #tpu.dot_dimension_numbers<[1], [0], [0], [1], [0, 0, 1, 1], [], []>} : vector<16x16xbf16>, vector<16x64xbf16>, vector<16x64xf32> -> vector<16x64xf32>
    %395 = arith.truncf %394 : vector<16x64xf32> to vector<16x64xbf16>
    %c2_182 = arith.constant 2 : index
    %c0_183 = arith.constant 0 : index
    %c0_184 = arith.constant 0 : index
    %396 = vector.load %arg4[%c2_182, %c0_183, %c0_184] : memref<3x128x128xbf16, #tpu.memory_space<vmem>>, vector<1x64x128xbf16>
    %397 = vector.shape_cast %396 : vector<1x64x128xbf16> to vector<64x128xbf16>
    %cst_185 = arith.constant dense<0.000000e+00> : vector<16x128xf32>
    %398 = tpu.matmul %395, %397, %cst_185 {dimension_numbers = #tpu.dot_dimension_numbers<[1], [0], [0], [1], [0, 0, 1, 1], [], []>} : vector<16x64xbf16>, vector<64x128xbf16>, vector<16x128xf32> -> vector<16x128xf32>
    %399 = vector.extract_strided_slice %337 {offsets = [16, 64], sizes = [16, 64], strides = [1, 1]} : vector<32x384xbf16> to vector<16x64xbf16>
    %400 = vector.extract_strided_slice %337 {offsets = [16, 192], sizes = [16, 64], strides = [1, 1]} : vector<32x384xbf16> to vector<16x64xbf16>
    %401 = vector.extract_strided_slice %337 {offsets = [16, 320], sizes = [16, 64], strides = [1, 1]} : vector<32x384xbf16> to vector<16x64xbf16>
    %cst_186 = arith.constant dense<0.000000e+00> : vector<16x16xf32>
    %402 = tpu.matmul %399, %400, %cst_186 {dimension_numbers = #tpu.dot_dimension_numbers<[1], [1], [0], [0], [0, 0, 1, 0], [], []>} : vector<16x64xbf16>, vector<16x64xbf16>, vector<16x16xf32> -> vector<16x16xf32>
    %cst_187 = arith.constant dense<0xFF800000> : vector<16xf32>
    %403 = vector.multi_reduction <maximumf>, %402, %cst_187 [1] : vector<16x16xf32> to vector<16xf32>
    %404 = vector.shape_cast %403 : vector<16xf32> to vector<16x1xf32>
    %405 = vector.broadcast %404 : vector<16x1xf32> to vector<16x16xf32>
    %406 = arith.subf %402, %405 : vector<16x16xf32>
    %407 = math.exp %406 : vector<16x16xf32>
    %cst_188 = arith.constant dense<0.000000e+00> : vector<16xf32>
    %408 = vector.multi_reduction <add>, %407, %cst_188 [1] : vector<16x16xf32> to vector<16xf32>
    %409 = vector.shape_cast %408 : vector<16xf32> to vector<16x1xf32>
    %410 = tpu.reciprocal %409 {approx = true} : vector<16x1xf32> -> vector<16x1xf32>
    %411 = vector.broadcast %410 : vector<16x1xf32> to vector<16x16xf32>
    %412 = arith.mulf %407, %411 : vector<16x16xf32>
    %413 = arith.truncf %412 : vector<16x16xf32> to vector<16x16xbf16>
    %cst_189 = arith.constant dense<0.000000e+00> : vector<16x64xf32>
    %414 = tpu.matmul %413, %401, %cst_189 {dimension_numbers = #tpu.dot_dimension_numbers<[1], [0], [0], [1], [0, 0, 1, 1], [], []>} : vector<16x16xbf16>, vector<16x64xbf16>, vector<16x64xf32> -> vector<16x64xf32>
    %415 = arith.truncf %414 : vector<16x64xf32> to vector<16x64xbf16>
    %c2_190 = arith.constant 2 : index
    %c64_191 = arith.constant 64 : index
    %c0_192 = arith.constant 0 : index
    %416 = vector.load %arg4[%c2_190, %c64_191, %c0_192] : memref<3x128x128xbf16, #tpu.memory_space<vmem>>, vector<1x64x128xbf16>
    %417 = vector.shape_cast %416 : vector<1x64x128xbf16> to vector<64x128xbf16>
    %cst_193 = arith.constant dense<0.000000e+00> : vector<16x128xf32>
    %418 = tpu.matmul %415, %417, %cst_193 {dimension_numbers = #tpu.dot_dimension_numbers<[1], [0], [0], [1], [0, 0, 1, 1], [], []>} : vector<16x64xbf16>, vector<64x128xbf16>, vector<16x128xf32> -> vector<16x128xf32>
    %419 = arith.addf %398, %418 : vector<16x128xf32>
    %420 = tpu.concatenate %378, %419 in 0 : vector<16x128xf32>, vector<16x128xf32> -> vector<32x128xf32>
    %c2_194 = arith.constant 2 : index
    %c0_195 = arith.constant 0 : index
    %c0_196 = arith.constant 0 : index
    %421 = vector.load %arg5[%c2_194, %c0_195, %c0_196] : memref<3x1x128xf32, #tpu.memory_space<vmem>>, vector<1x1x128xf32>
    %422 = vector.shape_cast %421 : vector<1x1x128xf32> to vector<1x128xf32>
    %423 = vector.broadcast %422 : vector<1x128xf32> to vector<32x128xf32>
    %424 = arith.addf %420, %423 : vector<32x128xf32>
    %425 = arith.addf %328, %424 : vector<32x128xf32>
    %c2_197 = arith.constant 2 : index
    %c0_198 = arith.constant 0 : index
    %c0_199 = arith.constant 0 : index
    %426 = vector.load %arg10[%c2_197, %c0_198, %c0_199] : memref<3x1x128xf32, #tpu.memory_space<vmem>>, vector<1x1x128xf32>
    %427 = vector.shape_cast %426 : vector<1x1x128xf32> to vector<1x128xf32>
    %c2_200 = arith.constant 2 : index
    %c0_201 = arith.constant 0 : index
    %c0_202 = arith.constant 0 : index
    %428 = vector.load %arg11[%c2_200, %c0_201, %c0_202] : memref<3x1x128xf32, #tpu.memory_space<vmem>>, vector<1x1x128xf32>
    %429 = vector.shape_cast %428 : vector<1x1x128xf32> to vector<1x128xf32>
    %cst_203 = arith.constant dense<0.000000e+00> : vector<32xf32>
    %430 = vector.multi_reduction <add>, %425, %cst_203 [1] : vector<32x128xf32> to vector<32xf32>
    %431 = vector.shape_cast %430 : vector<32xf32> to vector<32x1xf32>
    %cst_204 = arith.constant 1.280000e+02 : f32
    %432 = vector.broadcast %cst_204 : f32 to vector<32x1xf32>
    %433 = arith.divf %431, %432 : vector<32x1xf32>
    %434 = vector.broadcast %433 : vector<32x1xf32> to vector<32x128xf32>
    %435 = arith.subf %425, %434 : vector<32x128xf32>
    %436 = arith.mulf %435, %435 : vector<32x128xf32>
    %cst_205 = arith.constant dense<0.000000e+00> : vector<32xf32>
    %437 = vector.multi_reduction <add>, %436, %cst_205 [1] : vector<32x128xf32> to vector<32xf32>
    %438 = vector.shape_cast %437 : vector<32xf32> to vector<32x1xf32>
    %cst_206 = arith.constant 1.280000e+02 : f32
    %439 = vector.broadcast %cst_206 : f32 to vector<32x1xf32>
    %440 = arith.divf %438, %439 : vector<32x1xf32>
    %cst_207 = arith.constant 9.99999974E-6 : f32
    %441 = vector.broadcast %cst_207 : f32 to vector<32x1xf32>
    %442 = arith.addf %440, %441 : vector<32x1xf32>
    %443 = math.rsqrt %442 : vector<32x1xf32>
    %444 = vector.broadcast %443 : vector<32x1xf32> to vector<32x128xf32>
    %445 = arith.mulf %435, %444 : vector<32x128xf32>
    %446 = vector.broadcast %427 : vector<1x128xf32> to vector<32x128xf32>
    %447 = arith.mulf %445, %446 : vector<32x128xf32>
    %448 = vector.broadcast %429 : vector<1x128xf32> to vector<32x128xf32>
    %449 = arith.addf %447, %448 : vector<32x128xf32>
    %450 = arith.truncf %449 : vector<32x128xf32> to vector<32x128xbf16>
    %c2_208 = arith.constant 2 : index
    %c0_209 = arith.constant 0 : index
    %c0_210 = arith.constant 0 : index
    %451 = vector.load %arg6[%c2_208, %c0_209, %c0_210] : memref<3x128x512xbf16, #tpu.memory_space<vmem>>, vector<1x128x512xbf16>
    %452 = vector.shape_cast %451 : vector<1x128x512xbf16> to vector<128x512xbf16>
    %cst_211 = arith.constant dense<0.000000e+00> : vector<32x512xf32>
    %453 = tpu.matmul %450, %452, %cst_211 {dimension_numbers = #tpu.dot_dimension_numbers<[1], [0], [0], [1], [0, 0, 1, 1], [], []>} : vector<32x128xbf16>, vector<128x512xbf16>, vector<32x512xf32> -> vector<32x512xf32>
    %c2_212 = arith.constant 2 : index
    %c0_213 = arith.constant 0 : index
    %c0_214 = arith.constant 0 : index
    %454 = vector.load %arg7[%c2_212, %c0_213, %c0_214] : memref<3x1x512xf32, #tpu.memory_space<vmem>>, vector<1x1x512xf32>
    %455 = vector.shape_cast %454 : vector<1x1x512xf32> to vector<1x512xf32>
    %456 = vector.broadcast %455 : vector<1x512xf32> to vector<32x512xf32>
    %457 = arith.addf %453, %456 : vector<32x512xf32>
    %cst_215 = arith.constant 0.000000e+00 : f32
    %458 = vector.broadcast %cst_215 : f32 to vector<32x512xf32>
    %459 = arith.maximumf %457, %458 : vector<32x512xf32>
    %460 = arith.truncf %459 : vector<32x512xf32> to vector<32x512xbf16>
    %c2_216 = arith.constant 2 : index
    %c0_217 = arith.constant 0 : index
    %c0_218 = arith.constant 0 : index
    %461 = vector.load %arg8[%c2_216, %c0_217, %c0_218] : memref<3x512x128xbf16, #tpu.memory_space<vmem>>, vector<1x512x128xbf16>
    %462 = vector.shape_cast %461 : vector<1x512x128xbf16> to vector<512x128xbf16>
    %cst_219 = arith.constant dense<0.000000e+00> : vector<32x128xf32>
    %463 = tpu.matmul %460, %462, %cst_219 {dimension_numbers = #tpu.dot_dimension_numbers<[1], [0], [0], [1], [0, 0, 1, 1], [], []>} : vector<32x512xbf16>, vector<512x128xbf16>, vector<32x128xf32> -> vector<32x128xf32>
    %c2_220 = arith.constant 2 : index
    %c0_221 = arith.constant 0 : index
    %c0_222 = arith.constant 0 : index
    %464 = vector.load %arg9[%c2_220, %c0_221, %c0_222] : memref<3x1x128xf32, #tpu.memory_space<vmem>>, vector<1x1x128xf32>
    %465 = vector.shape_cast %464 : vector<1x1x128xf32> to vector<1x128xf32>
    %466 = vector.broadcast %465 : vector<1x128xf32> to vector<32x128xf32>
    %467 = arith.addf %463, %466 : vector<32x128xf32>
    %468 = arith.addf %449, %467 : vector<32x128xf32>
    %c2_223 = arith.constant 2 : index
    %c0_224 = arith.constant 0 : index
    %c0_225 = arith.constant 0 : index
    %469 = vector.load %arg12[%c2_223, %c0_224, %c0_225] : memref<3x1x128xf32, #tpu.memory_space<vmem>>, vector<1x1x128xf32>
    %470 = vector.shape_cast %469 : vector<1x1x128xf32> to vector<1x128xf32>
    %c2_226 = arith.constant 2 : index
    %c0_227 = arith.constant 0 : index
    %c0_228 = arith.constant 0 : index
    %471 = vector.load %arg13[%c2_226, %c0_227, %c0_228] : memref<3x1x128xf32, #tpu.memory_space<vmem>>, vector<1x1x128xf32>
    %472 = vector.shape_cast %471 : vector<1x1x128xf32> to vector<1x128xf32>
    %cst_229 = arith.constant dense<0.000000e+00> : vector<32xf32>
    %473 = vector.multi_reduction <add>, %468, %cst_229 [1] : vector<32x128xf32> to vector<32xf32>
    %474 = vector.shape_cast %473 : vector<32xf32> to vector<32x1xf32>
    %cst_230 = arith.constant 1.280000e+02 : f32
    %475 = vector.broadcast %cst_230 : f32 to vector<32x1xf32>
    %476 = arith.divf %474, %475 : vector<32x1xf32>
    %477 = vector.broadcast %476 : vector<32x1xf32> to vector<32x128xf32>
    %478 = arith.subf %468, %477 : vector<32x128xf32>
    %479 = arith.mulf %478, %478 : vector<32x128xf32>
    %cst_231 = arith.constant dense<0.000000e+00> : vector<32xf32>
    %480 = vector.multi_reduction <add>, %479, %cst_231 [1] : vector<32x128xf32> to vector<32xf32>
    %481 = vector.shape_cast %480 : vector<32xf32> to vector<32x1xf32>
    %cst_232 = arith.constant 1.280000e+02 : f32
    %482 = vector.broadcast %cst_232 : f32 to vector<32x1xf32>
    %483 = arith.divf %481, %482 : vector<32x1xf32>
    %cst_233 = arith.constant 9.99999974E-6 : f32
    %484 = vector.broadcast %cst_233 : f32 to vector<32x1xf32>
    %485 = arith.addf %483, %484 : vector<32x1xf32>
    %486 = math.rsqrt %485 : vector<32x1xf32>
    %487 = vector.broadcast %486 : vector<32x1xf32> to vector<32x128xf32>
    %488 = arith.mulf %478, %487 : vector<32x128xf32>
    %489 = vector.broadcast %470 : vector<1x128xf32> to vector<32x128xf32>
    %490 = arith.mulf %488, %489 : vector<32x128xf32>
    %491 = vector.broadcast %472 : vector<1x128xf32> to vector<32x128xf32>
    %492 = arith.addf %490, %491 : vector<32x128xf32>
    %c0_234 = arith.constant 0 : index
    %c0_235 = arith.constant 0 : index
    %493 = vector.load %arg14[%c0_234, %c0_235] : memref<32x128xf32, #tpu.memory_space<vmem>>, vector<32x128xf32>
    tpu.vector_store %arg14[%c0_234, %c0_235], %492 {strides = array<i32>} : memref<32x128xf32, #tpu.memory_space<vmem>>, vector<32x128xf32>,
    return
  }
  func.func @transform_0(%arg0: i32) -> (i32, i32) {
    %c0_i32 = arith.constant 0 : i32
    %c0_i32_0 = arith.constant 0 : i32
    return %arg0, %c0_i32 : i32, i32
  }
  func.func @transform_1(%arg0: i32) -> (i32, i32, i32) {
    %c0_i32 = arith.constant 0 : i32
    %c0_i32_0 = arith.constant 0 : i32
    %c0_i32_1 = arith.constant 0 : i32
    %c0_i32_2 = arith.constant 0 : i32
    return %c0_i32, %c0_i32_0, %c0_i32_1 : i32, i32, i32
  }
  func.func @transform_2(%arg0: i32) -> (i32, i32, i32) {
    %c0_i32 = arith.constant 0 : i32
    %c0_i32_0 = arith.constant 0 : i32
    %c0_i32_1 = arith.constant 0 : i32
    %c0_i32_2 = arith.constant 0 : i32
    return %c0_i32, %c0_i32_0, %c0_i32_1 : i32, i32, i32
  }
  func.func @transform_3(%arg0: i32) -> (i32, i32, i32) {
    %c0_i32 = arith.constant 0 : i32
    %c0_i32_0 = arith.constant 0 : i32
    %c0_i32_1 = arith.constant 0 : i32
    %c0_i32_2 = arith.constant 0 : i32
    return %c0_i32, %c0_i32_0, %c0_i32_1 : i32, i32, i32
  }
  func.func @transform_4(%arg0: i32) -> (i32, i32, i32) {
    %c0_i32 = arith.constant 0 : i32
    %c0_i32_0 = arith.constant 0 : i32
    %c0_i32_1 = arith.constant 0 : i32
    %c0_i32_2 = arith.constant 0 : i32
    return %c0_i32, %c0_i32_0, %c0_i32_1 : i32, i32, i32
  }
  func.func @transform_5(%arg0: i32) -> (i32, i32, i32) {
    %c0_i32 = arith.constant 0 : i32
    %c0_i32_0 = arith.constant 0 : i32
    %c0_i32_1 = arith.constant 0 : i32
    %c0_i32_2 = arith.constant 0 : i32
    return %c0_i32, %c0_i32_0, %c0_i32_1 : i32, i32, i32
  }
  func.func @transform_6(%arg0: i32) -> (i32, i32, i32) {
    %c0_i32 = arith.constant 0 : i32
    %c0_i32_0 = arith.constant 0 : i32
    %c0_i32_1 = arith.constant 0 : i32
    %c0_i32_2 = arith.constant 0 : i32
    return %c0_i32, %c0_i32_0, %c0_i32_1 : i32, i32, i32
  }
  func.func @transform_7(%arg0: i32) -> (i32, i32, i32) {
    %c0_i32 = arith.constant 0 : i32
    %c0_i32_0 = arith.constant 0 : i32
    %c0_i32_1 = arith.constant 0 : i32
    %c0_i32_2 = arith.constant 0 : i32
    return %c0_i32, %c0_i32_0, %c0_i32_1 : i32, i32, i32
  }
  func.func @transform_8(%arg0: i32) -> (i32, i32, i32) {
    %c0_i32 = arith.constant 0 : i32
    %c0_i32_0 = arith.constant 0 : i32
    %c0_i32_1 = arith.constant 0 : i32
    %c0_i32_2 = arith.constant 0 : i32
    return %c0_i32, %c0_i32_0, %c0_i32_1 : i32, i32, i32
  }
  func.func @transform_9(%arg0: i32) -> (i32, i32, i32) {
    %c0_i32 = arith.constant 0 : i32
    %c0_i32_0 = arith.constant 0 : i32
    %c0_i32_1 = arith.constant 0 : i32
    %c0_i32_2 = arith.constant 0 : i32
    return %c0_i32, %c0_i32_0, %c0_i32_1 : i32, i32, i32
  }
  func.func @transform_10(%arg0: i32) -> (i32, i32, i32) {
    %c0_i32 = arith.constant 0 : i32
    %c0_i32_0 = arith.constant 0 : i32
    %c0_i32_1 = arith.constant 0 : i32
    %c0_i32_2 = arith.constant 0 : i32
    return %c0_i32, %c0_i32_0, %c0_i32_1 : i32, i32, i32
  }
  func.func @transform_11(%arg0: i32) -> (i32, i32, i32) {
    %c0_i32 = arith.constant 0 : i32
    %c0_i32_0 = arith.constant 0 : i32
    %c0_i32_1 = arith.constant 0 : i32
    %c0_i32_2 = arith.constant 0 : i32
    return %c0_i32, %c0_i32_0, %c0_i32_1 : i32, i32, i32
  }
  func.func @transform_12(%arg0: i32) -> (i32, i32, i32) {
    %c0_i32 = arith.constant 0 : i32
    %c0_i32_0 = arith.constant 0 : i32
    %c0_i32_1 = arith.constant 0 : i32
    %c0_i32_2 = arith.constant 0 : i32
    return %c0_i32, %c0_i32_0, %c0_i32_1 : i32, i32, i32
  }
  func.func @transform_13(%arg0: i32) -> (i32, i32) {
    %c0_i32 = arith.constant 0 : i32
    %c0_i32_0 = arith.constant 0 : i32
    return %arg0, %c0_i32 : i32, i32
  }
}

</mosaic_0001>

<bundles_post_ra>
// kernel: _lambda_.1
= control target key start
LH: loop header
LB: loop body
LE: loop exit
PB: predicated region body
PF: predicated region fallthrough
CT: control target
= control target key end

     0   :  { %18 = vsyncpa [#allocation3], 0  ;;  %s8950_s0 = inlined_call_operand.vmem [shape: f32[64,128], index: 0, kind: input, shape index: {}]   ;;  %s8951_s1 = inlined_call_operand.hbm [shape: bf16[3,128,384], index: 1, kind: input, shape index: {}]   ;;  %s8952_s2 = inlined_call_operand.vmem [shape: f32[3,1,384], index: 2, kind: input, shape index: {}]   ;;  %s8953_s3 = inlined_call_operand.vmem [shape: bf16[3,128,128], index: 3, kind: input, shape index: {}]   ;;  %s8954_s4 = inlined_call_operand.vmem [shape: f32[3,1,128], index: 4, kind: input, shape index: {}, may-alias: {4,10,12}]   ;;  %s8955_s5 = inlined_call_operand.hbm [shape: bf16[3,128,512], index: 5, kind: input, shape index: {}]   ;;  %s8956_s6 = inlined_call_operand.vmem [shape: f32[3,1,512], index: 6, kind: input, shape index: {}]   ;;  %s8957_s7 = inlined_call_operand.hbm [shape: bf16[3,512,128], index: 7, kind: input, shape index: {}]   ;;  %s8958_s8 = inlined_call_operand.vmem [shape: f32[3,1,128], index: 8, kind: input, shape index: {}]   ;;  %s8959_s9 = inlined_call_operand.vmem [shape: f32[3,1,128], index: 9, kind: input, shape index: {}, may-alias: {9,11}]   ;;  %s8960_s10 = inlined_call_operand.vmem [shape: f32[3,1,128], index: 10, kind: input, shape index: {}, may-alias: {4,10,12}]   ;;  %s8961_s11 = inlined_call_operand.vmem [shape: f32[3,1,128], index: 11, kind: input, shape index: {}, may-alias: {9,11}]   ;;  %s8962_s12 = inlined_call_operand.vmem [shape: f32[3,1,128], index: 12, kind: input, shape index: {}, may-alias: {4,10,12}]   ;;  %s8963_s13 = inlined_call_operand.vmem [shape: f32[64,128], index: 13, kind: output, shape index: {}]  }
   0x1   :  { %19 = vsyncpa [#allocation5], 0  ;;  %s8001_s25 = smov 0  }
   0x2 LB: > { %s7918_s26 = smov [#allocation4]   ;;  %s6206_s28 = sadd.s32 4294967295, %s7916_s25   ;;  %s7916_s25 = sphi %s8001_s25, %s25_s25  }
   0x3   : > { %s368_s27 = sshll.u32 %s7918_s26, 4  ;;  %p6208_p0 = scmp.ge.s32.totalorder %s7916_s25, 1  ;;  %s369_s27 = int_to_ptr.vmem [resolvable:$true] %s368_s27 }
   0x4   : > { %p334_p1 = scmp.lt.s32.totalorder %s7916_s25, 3  ;;  %p8011_p2 = scmp.eq.s32.totalorder %s6206_s28, 0 }
   0x5   : > { %s7919_s14 = smov [#allocation2]   ;;  %s7920_s17 = smov [#allocation6]  }
   0x6   : > { %p8015_p3 = pnand %p6208_p0, %p334_p1  ;;  %s346_s15 = sshll.u32 %s7919_s14, 4  ;;  %s8021_s15 = int_to_ptr.vmem [resolvable:$true] %s346_s15 }
   0x7   : > { %s8029_s18 = sshll.u32 %s7920_s17, 4  ;;  %s7835_s19 = scalar_lea.vmem %s369_s27, 12288  ;;  %s385_s18 = int_to_ptr.vmem [resolvable:$true] %s8029_s18 }
   0x8   : > { %p7279_p4 = pneg %p8015_p3  ;;  %p7836_p7 = scmp.ne.s32.totalorder %s369_s27, %s7835_s19 }
   0x9   : > { %p7843_p10 = scmp.lt.s32.totalorder %s369_s27, %s369_s27  ;;  %p7844_p11 = scmp.lt.s32.totalorder %s7835_s19, %s7835_s19 }
   0xa   : > { %p8025_p5 = pnand %p8011_p2, %p7279_p4 }
   0xb   : > { %p7845_p12 = por %p7844_p11, %p7843_p10 }
   0xc   : > { %p7826_p6 = pneg %p8025_p5 }
   0xe   : > { %p7838_p8 = pnand %p7836_p7, %p7826_p6 }
  0x10   : > { %p7839_p9 = pneg %p7838_p8 }
  0x12   : > { %p7846_p13 = pnand %p7845_p12, %p7839_p9 }
  0x14   : > { %7849 = shalt.err (!%p7846_p13)
}
  0x15   : > { %s7921_s20 = smov 256   ;;  %s7922_s21 = smov 16  }
  0x16   : > { %7285 = dma.hbm_to_vmem [thread:$0]  (!%p8025_p5), %s8955_s5, 12288, %s369_s27, [#allocation5], %s7921_s20, %s7921_s20, %s7922_s21  }
  0x17   : > { %s7861_s24 = scalar_lea.vmem %s8021_s15, 9216  ;;  %p7869_p7 = scmp.lt.s32.totalorder %s8021_s15, %s8021_s15 }
  0x18   : > { %p7862_p0 = scmp.ne.s32.totalorder %s8021_s15, %s7861_s24  ;;  %p7870_p8 = scmp.lt.s32.totalorder %s7861_s24, %s7861_s24 }
  0x1a   : > { %p7864_p1 = pnand %p7862_p0, %p7826_p6  ;;  %p7871_p9 = por %p7870_p8, %p7869_p7 }
  0x1c   : > { %p7865_p4 = pneg %p7864_p1 }
  0x1e   : > { %p7872_p10 = pnand %p7871_p9, %p7865_p4 }
  0x20   : > { %7875 = shalt.err (!%p7872_p10)
}
  0x21   : > { %s7923_s26 = smov 192   ;;  %s7924_s14 = smov 12  }
  0x22   : > { %7282 = dma.hbm_to_vmem [thread:$0]  (!%p8025_p5), %s8951_s1, 9216, %s8021_s15, [#allocation3], %s7923_s26, %s7923_s26, %s7924_s14  }
  0x23   : > { %s7887_s19 = scalar_lea.vmem %s385_s18, 12288  ;;  %p7895_p0 = scmp.lt.s32.totalorder %s385_s18, %s385_s18 }
  0x24   : > { %p7888_p11 = scmp.ne.s32.totalorder %s385_s18, %s7887_s19  ;;  %p7896_p1 = scmp.lt.s32.totalorder %s7887_s19, %s7887_s19 }
  0x26   : > { %p7890_p12 = pnand %p7888_p11, %p7826_p6  ;;  %p7897_p4 = por %p7896_p1, %p7895_p0 }
  0x28   : > { %p7891_p13 = pneg %p7890_p12 }
  0x2a   : > { %p7898_p7 = pnand %p7897_p4, %p7891_p13 }
  0x2c   : > { %7901 = shalt.err (!%p7898_p7)
}
  0x2d   : > { %s7925_s20 = smov 64   ;;  %s7926_s21 = smov 4  }
  0x2e   : > { %7288 = dma.hbm_to_vmem [thread:$0]  (!%p8025_p5), %s8957_s7, 12288, %s385_s18, [#allocation5], %s7925_s20, %s7925_s20, %s7926_s21  }
  0x2f   : > { %424 = sbr.rel (%p8015_p3) target bundleno = 8673 (0x21e1), region = 72 }
  0x34   : > { %7907 = dma.done.wait (%p8011_p2), [#allocation3], 9216  }
  0x35   : > { %7909 = vsyncadd (%p8011_p2), [#allocation3], 4294958080 }
  0x36   : > { %7911 = dma.done.wait (%p8011_p2), [#allocation5], 24576  }
  0x37   : > { %7913 = vsyncadd (%p8011_p2), [#allocation5], 4294942720  ;;  %s6217_s15 = sshll.u32 %s6206_s28, 2  ;;  %v7927_v0 = vmov 0   ;;  %v7316_v1 = vld [vmem:[#allocation2 + $0xac] ss:$12 sps:$4 sm:$0xff]   ;;  %v529_v32 = vlaneseq }
  0x38   : > { %704 = vmatprep.mubr.bf16.mxu0 %v7927_v0  ;;  %p477_p5 = scmp.lt.s32.totalorder %s6217_s15, 7  ;;  %v7318_v2 = vld [vmem:[#allocation2 + $0xa8] ss:$12 sps:$4 sm:$0xff]   ;;  %672 = vmatprep.subr.bf16.mxu0 %v7316_v1  ;;  %v7321_v4 = vld [vmem:[#allocation2 + $0x90] ss:$12 sps:$4 sm:$0xff]   ;;  %v7928_v31 = vmov 0.0  }
  0x39   : > { %v7319_v3 = vld [vmem:[#allocation2 + $0x94] ss:$12 sps:$4 sm:$0xff]   ;;  %673 = vmatpush1.bf16.msra.mxu0 %v7318_v2  ;;  %v7322_v5 = vld [vmem:[#allocation2 + $0x7c] ss:$12 sps:$4 sm:$0xff]   ;;  %v7324_v6 = vld [vmem:[#allocation2 + $0x78] ss:$12 sps:$4 sm:$0xff]  }
  0x3a   : > { %s8968_s15 = smov (!%p477_p5, %s6217_s15), 7  ;;  %674 = vmatprep.subr.bf16.mxu0 %v7319_v3  ;;  %v7325_v7 = vld [vmem:[#allocation2 + $0x64] ss:$12 sps:$4 sm:$0xff]   ;;  %v7327_v8 = vld [vmem:[#allocation2 + $0x60] ss:$12 sps:$4 sm:$0xff]   ;;  %vm7929_vm0 = vmmov 0  }
  0x3b   : > { %s6218_s29 = sshll.u32 %s8968_s15, 3  ;;  %v7328_v9 = vld [vmem:[#allocation2 + $0x4c] ss:$12 sps:$4 sm:$0xff]   ;;  %v7340_v13 = vld [vmem:[#allocation2 + $0xb0] ss:$12 sps:$4 sm:$0xff]   ;;  %v8097_v33 = vshrl.u32 %v529_v32, 7 }
  0x3c   : > { %s8084_s16 = scalar_lea.vmem %s8950_s0, %s6218_s29  ;;  %v7341_v14 = vld [vmem:[#allocation2 + $0x98] ss:$12 sps:$4 sm:$0xff]   ;;  %v7330_v15 = vld [vmem:[#allocation2 + $0x48] ss:$12 sps:$4 sm:$0xff]   ;;  %6919 = vmatprep.subr.bf16.mxu1 %v7340_v13  ;;  %v7342_v17 = vld [vmem:[#allocation2 + $0x80] ss:$12 sps:$4 sm:$0xff]  }
  0x3d   : > { %675 = vmatpush1.bf16.msra.mxu0 %v7321_v4  ;;  %v489_v10 = vld [vmem:[%s8084_s16] sm:$0xff]  ;;  %v490_v11 = vld [vmem:[%s8084_s16 + $0x8] sm:$0xff]  ;;  %6920 = vmatpush3.bf16.msra.mxu1 %v7340_v13  ;;  %v7333_v18 = vld [vmem:[#allocation2 + $0x30] ss:$12 sps:$4 sm:$0xff]   ;;  %v8100_v34 = vsub.s32 1, %v8097_v33  ;;  %v8106_v38 = vsub.s32 0, %v8097_v33 }
  0x3e   : > { %676 = vmatprep.subr.bf16.mxu0 %v7322_v5  ;;  %v493_v12 = vpack.c.bf16 %v490_v11, %v489_v10  ;;  %v7331_v16 = vld [vmem:[#allocation2 + $0x34] ss:$12 sps:$4 sm:$0xff]   ;;  %6921 = vmatprep.subr.bf16.mxu1 %v7341_v14  ;;  %v7334_v19 = vld [vmem:[#allocation2 + $0x1c] ss:$12 sps:$4 sm:$0xff]   ;;  %v7336_v21 = vld [vmem:[#allocation2 + $0x18] ss:$12 sps:$4 sm:$0xff]  }
  0x3f   : > { %v7343_v20 = vld [vmem:[#allocation2 + $0x68] ss:$12 sps:$4 sm:$0xff]   ;;  %v7337_v22 = vld [vmem:[#allocation2 + $0x4] ss:$12 sps:$4 sm:$0xff]   ;;  %v7339_v24 = vld [vmem:[#allocation2] ss:$12 sps:$4 sm:$0xff]  }
  0x40   : > { %6935 = vmatprep.mubr.bf16.mxu1 %v493_v12  ;;  %v7344_v23 = vld [vmem:[#allocation2 + $0x50] ss:$12 sps:$4 sm:$0xff]   ;;  %v7345_v25 = vld [vmem:[#allocation2 + $0x38] ss:$12 sps:$4 sm:$0xff]   ;;  %v7346_v26 = vld [vmem:[#allocation2 + $0x20] ss:$12 sps:$4 sm:$0xff]  }
  0x41   : > { %677 = vmatpush1.bf16.msra.mxu0 %v7324_v6  ;;  %6922 = vmatpush3.bf16.msra.mxu1 %v7341_v14  ;;  %v7347_v27 = vld [vmem:[#allocation2 + $0x8] ss:$12 sps:$4 sm:$0xff]   ;;  %v492_v29 = vld [vmem:[%s8084_s16 + $0x18] sm:$0xff]  ;;  %v527_v36 = vld [vmem:[%s8952_s2] sm:$0x7]  ;;  %vm780_vm1 = vcmask 523264  }
  0x42   : > { %678 = vmatprep.subr.bf16.mxu0 %v7325_v7  ;;  %6923 = vmatprep.subr.bf16.mxu1 %v7342_v17  ;;  %v491_v28 = vld [vmem:[%s8084_s16 + $0x10] sm:$0xff]  ;;  %v8109_v39 = vrot.slane %v527_v36, %v8100_v34  ;;  %v8112_v42 = vrot.slane %v527_v36, %v8106_v38  ;;  %s7930_s26 = smov 64   ;;  %v8126_v50 = vsub.s32 2, %v8097_v33  ;;  %vm828_vm2 = vcmask 130048  }
  0x43   : > { %v494_v30 = vpack.c.bf16 %v492_v29, %v491_v28 }
  0x44   : > { %v540_v51 = vrot.slane %v527_v36, %v8126_v50 }
  0x45   : > { %679 = vmatpush1.bf16.msra.mxu0 %v7327_v8  ;;  %6924 = vmatpush3.bf16.msra.mxu1 %v7342_v17 }
  0x46   : > { %680 = vmatprep.subr.bf16.mxu0 %v7328_v9  ;;  %6925 = vmatprep.subr.bf16.mxu1 %v7343_v20 }
  0x49   : > { %681 = vmatpush1.bf16.msra.mxu0 %v7330_v15  ;;  %6926 = vmatpush3.bf16.msra.mxu1 %v7343_v20 }
  0x4a   : > { %682 = vmatprep.subr.bf16.mxu0 %v7331_v16  ;;  %6927 = vmatprep.subr.bf16.mxu1 %v7344_v23 }
  0x4d   : > { %683 = vmatpush1.bf16.msra.mxu0 %v7333_v18  ;;  %6928 = vmatpush3.bf16.msra.mxu1 %v7344_v23 }
  0x4e   : > { %684 = vmatprep.subr.bf16.mxu0 %v7334_v19  ;;  %6929 = vmatprep.subr.bf16.mxu1 %v7345_v25 }
  0x51   : > { %685 = vmatpush1.bf16.msra.mxu0 %v7336_v21  ;;  %6930 = vmatpush3.bf16.msra.mxu1 %v7345_v25 }
  0x52   : > { %686 = vmatprep.subr.bf16.mxu0 %v7337_v22  ;;  %6931 = vmatprep.subr.bf16.mxu1 %v7346_v26 }
  0x55   : > { %687 = vmatpush1.bf16.msra.mxu0 %v7339_v24  ;;  %6932 = vmatpush3.bf16.msra.mxu1 %v7346_v26 }
  0x56   : > { %6933 = vmatprep.subr.bf16.mxu1 %v7347_v27  ;;  %6945 = vmatprep.subr.bf16.mxu0 %v7928_v31 }
  0x58   : > { %705 = vmatmul.mubr.bf16.vlgmr.msra.gmra.mxu0 %v493_v12 }
  0x59   : > { %714 = vmatprep.mubr.bf16.mxu0 %v7927_v0  ;;  %6934 = vmatpush3.bf16.msra.mxu1 %v7347_v27 }
  0x5a   : > { %6939 = vmatprep.subr.bf16.mxu1 %v7928_v31 }
  0x5c   : > { %6936 = vmatmul.mubr.bf16.vlgmr.msra.gmra.mxu1 %v494_v30 }
  0x5d   : > { %6941 = vmatprep.mubr.msk.bf16.mxu1 %vm7929_vm0, %v7928_v31 }
  0x60   : > { %715 = vmatmul.mubr.bf16.gmra.mxu0 %v494_v30 }
  0x61   : > { %6947 = vmatprep.mubr.msk.bf16.mxu0 %vm7929_vm0, %v7928_v31 }
 0x118   : > { %v706_v35 = vpop.f32.mrf.mxu0 }
 0x119   : > { %v707_v47 = vadd.f32 %v706_v35, %v8112_v42 }
 0x11a   : > { %v708_v37 = vpop.f32.mrf.mxu0 }
 0x11b   : > { %v709_v43 = vadd.f32 %v708_v37, %v8109_v39 }
 0x11c   : > { %v710_v40 = vpop.f32.mrf.mxu0  ;;  %v6937_v52 = vpop.f32.mrf.mxu1 }
 0x11d   : > { %v711_v45 = vadd.f32 %v710_v40, %v8112_v42  ;;  %v768_v53 = vadd.f32 %v6937_v52, %v540_v51 }
 0x11e   : > { %v712_v41 = vpop.f32.mrf.mxu0  ;;  %v759_v54 = vpop.f32.mrf.mxu1 }
 0x11f   : > { %v713_v44 = vadd.f32 %v712_v41, %v8109_v39  ;;  %v774_v49 = vpack.c.bf16 %v711_v45, %v707_v47  ;;  %v760_v56 = vadd.f32 %v759_v54, %v540_v51 }
 0x120   : > { %v6938_v55 = vpop.f32.mrf.mxu1  ;;  %v716_v41 = vpop.f32.mrf.mxu0 }
 0x121   : > { %v775_v46 = vpack.c.bf16 %v713_v44, %v709_v43  ;;  %v771_v57 = vadd.f32 %v6938_v55, %v540_v51  ;;  %v717_v44 = vadd.f32 %v716_v41, %v8112_v42 }
 0x122   : > { %v762_v58 = vpop.f32.mrf.mxu1  ;;  %v718_v43 = vpop.f32.mrf.mxu0 }
 0x123   : > { %909 = vrot.lane.b32.xlu0 %v775_v46, %s7930_s26  ;;  %v785_v48 = vsel %vm780_vm1, %v775_v46, 0  ;;  %v8129_v59 = vpack.c.bf16 %v771_v57, %v768_v53  ;;  %v763_v60 = vadd.f32 %v762_v58, %v540_v51  ;;  %v719_v47 = vadd.f32 %v718_v43, %v8109_v39  ;;  %v8174_v58 = vld [vmem:[%s8953_s3 + $0x28] sm:$0xff]  }
 0x124   : > { %6940 = vmatpush3.bf16.xpose.msra.mxu1 %v785_v48  ;;  %v720_v45 = vpop.f32.mrf.mxu0 }
 0x125   : > { %6951 = vmatprep.subr.bf16.mxu1 %v7928_v31  ;;  %v776_v61 = vpack.c.bf16 %v763_v60, %v760_v56  ;;  %v721_v48 = vadd.f32 %v720_v45, %v8112_v42  ;;  %v8161_v42 = vld [vmem:[%s8953_s3 + $0x38] sm:$0xff]  }
 0x127   : > { %906 = vrot.lane.b32.xlu0 %v774_v49, %s7930_s26  ;;  %6946 = vmatpush3.bf16.msra.mxu0 %v776_v61  ;;  %v8149_v52 = vpack.c.bf16 %v721_v48, %v717_v44 }
 0x128   : > { %6957 = vmatprep.subr.bf16.mxu0 %v7928_v31 }
 0x12b   : > { %6942 = vmatmul.mubr.msk.bf16.vlgmr.msra.gmra.mxu1 %vm780_vm1, %v774_v49  ;;  %v722_v49 = vpop.f32.mrf.mxu0 }
 0x12c   : > { %6953 = vmatprep.mubr.msk.bf16.mxu1 %vm7929_vm0, %v7928_v31  ;;  %v723_v53 = vadd.f32 %v722_v49, %v8109_v39  ;;  %v8167_v39 = vld [vmem:[%s8953_s3 + $0x30] sm:$0xff]  }
 0x12e   : > { %v778_v56 = vpack.c.bf16 %v723_v53, %v719_v47 }
 0x195   : > { %v910_v62 = vpop.permute.xlu0 %909 }
 0x196   : > { %v915_v63 = vsel %vm780_vm1, %v910_v62, 0 }
 0x197   : > { %6952 = vmatpush3.bf16.xpose.msra.mxu1 %v915_v63 }
 0x198   : > { %6963 = vmatprep.subr.bf16.mxu1 %v7928_v31 }
 0x199   : > { %v907_v1 = vpop.permute.xlu0 %906 }
 0x19e   : > { %6954 = vmatmul.mubr.msk.bf16.vlgmr.msra.gmra.mxu1 %vm780_vm1, %v907_v1 }
 0x19f   : > { %6971 = vmatprep.mubr.msk.bf16.mxu1 %vm7929_vm0, %v7928_v31  ;;  %6964 = vmatpush3.bf16.msra.mxu1 %v8161_v42 }
 0x1a0   : > { %6965 = vmatprep.subr.bf16.mxu1 %v7928_v31 }
 0x1a3   : > { %6966 = vmatpush3.bf16.msra.mxu1 %v8167_v39 }
 0x1a4   : > { %6967 = vmatprep.subr.bf16.mxu1 %v7928_v31 }
 0x1a7   : > { %6968 = vmatpush3.bf16.msra.mxu1 %v8174_v58 }
 0x1a8   : > { %6969 = vmatprep.subr.bf16.mxu1 %v7928_v31 }
 0x1eb   : > { %v821_v2 = vpop.f32.mrf.mxu1 }
 0x1ec   : > { %v829_v3 = vsel %vm828_vm2, %v821_v2, -inf }
 0x1ed   : > { %830 = vmax.xlane.f32.xlu1 %v829_v3  ;;  %v6943_v4 = vpop.f32.mrf.mxu1 }
 0x1ee   : > { %v8183_v4 = vld [vmem:[%s8953_s3 + $0x18] sm:$0xff]  }
 0x1ef   : > { %v824_v5 = vpop.f32.mrf.mxu1 }
 0x1f0   : > { %v832_v6 = vsel %vm828_vm2, %v824_v5, -inf }
 0x1f1   : > { %833 = vmax.xlane.f32.xlu1 %v832_v6  ;;  %v6944_v7 = vpop.f32.mrf.mxu1  ;;  %v8190_v6 = vld [vmem:[%s8953_s3 + $0x10] sm:$0xff]  }
 0x1f2   : > { %v8199_v7 = vld [vmem:[%s8953_s3 + $0x8] sm:$0xff]  }
 0x25e   : > { %v951_v8 = vpop.f32.mrf.mxu1 }
 0x25f   : > { %v958_v9 = vsel %vm828_vm2, %v951_v8, -inf }
 0x260   : > { %959 = vmax.xlane.f32.xlu0 %v958_v9  ;;  %v6955_v10 = vpop.f32.mrf.mxu1  ;;  %v7355_v9 = vld [vmem:[%s8953_s3 + $0x20] sm:$0xff]  }
 0x261   : > { %6970 = vmatpush3.bf16.msra.mxu1 %v7355_v9 }
 0x262   : > { %v954_v11 = vpop.f32.mrf.mxu1  ;;  %6987 = vmatprep.subr.bf16.mxu1 %v7928_v31 }
 0x263   : > { %v961_v12 = vsel %vm828_vm2, %v954_v11, -inf }
 0x264   : > { %962 = vmax.xlane.f32.xlu1 %v961_v12  ;;  %v6956_v13 = vpop.f32.mrf.mxu1 }
 0x276   : > { %v831_v14 = vpop.xlane.xlu1 %830  ;;  %1293 = vrot.lane.b32.xlu0 %v778_v56, %s7930_s26 }
 0x277   : > { %v835_v15 = vsub.f32 %v821_v2, %v831_v14 }
 0x279   : > { %v837_v16 = vmul.f32 1.442695, %v835_v15 }
 0x27a   : > { %v834_v17 = vpop.xlane.xlu1 %833 }
 0x27b   : > { %7676 = vpow2.f32 %v837_v16  ;;  %v836_v18 = vsub.f32 %v824_v5, %v834_v17 }
 0x27d   : > { %v839_v19 = vmul.f32 1.442695, %v836_v18 }
 0x27f   : > { %7678 = vpow2.f32 %v839_v19 }
 0x288   : > { %v7677_v20 = vpop.eup %7676 }
 0x289   : > { %v841_v21 = vsel %vm828_vm2, %v7677_v20, 0.0 }
 0x28a   : > { %842 = vadd.xlane.f32.xlu1 %v841_v21 }
 0x28c   : > { %v7679_v22 = vpop.eup %7678 }
 0x28d   : > { %v844_v23 = vsel %vm828_vm2, %v7679_v22, 0.0 }
 0x28e   : > { %845 = vadd.xlane.f32.xlu1 %v844_v23 }
 0x2e9   : > { %v960_v24 = vpop.xlane.xlu0 %959 }
 0x2ea   : > { %v964_v25 = vsub.f32 %v951_v8, %v960_v24  ;;  %v8206_v8 = vld [vmem:[%s8953_s3] sm:$0xff]  }
 0x2ec   : > { %v966_v26 = vmul.f32 1.442695, %v964_v25 }
 0x2ed   : > { %v963_v27 = vpop.xlane.xlu1 %962  ;;  %v1294_v21 = vpop.permute.xlu0 %1293 }
 0x2ee   : > { %7680 = vpow2.f32 %v966_v26  ;;  %v965_v28 = vsub.f32 %v954_v11, %v963_v27 }
 0x2f0   : > { %v968_v29 = vmul.f32 1.442695, %v965_v28 }
 0x2f2   : > { %7682 = vpow2.f32 %v968_v29 }
 0x2fb   : > { %v7681_v30 = vpop.eup %7680 }
 0x2fc   : > { %v970_v32 = vsel %vm828_vm2, %v7681_v30, 0.0 }
 0x2fd   : > { %971 = vadd.xlane.f32.xlu1 %v970_v32 }
 0x2ff   : > { %v7683_v35 = vpop.eup %7682 }
 0x300   : > { %v973_v36 = vsel %vm828_vm2, %v7683_v35, 0.0 }
 0x301   : > { %974 = vadd.xlane.f32.xlu1 %v973_v36 }
 0x312   : > { %982 = vrot.lane.b32.xlu1 %v776_v61, %s7930_s26 }
 0x313   : > { %v843_v37 = vpop.xlane.xlu1 %842 }
 0x314   : > { %7684 = vrcp.f32 %v843_v37 }
 0x316   : > { %1290 = vrot.lane.b32.xlu1 %v8149_v52, %s7930_s26 }
 0x317   : > { %v846_v40 = vpop.xlane.xlu1 %845 }
 0x318   : > { %7686 = vrcp.f32 %v846_v40 }
 0x321   : > { %v7685_v46 = vpop.eup %7684 }
 0x322   : > { %v849_v54 = vmul.f32 %v7685_v46, %v7677_v20  ;;  %v1178_v20 = vsel %vm780_vm1, %v778_v56, 0 }
 0x325   : > { %v7687_v51 = vpop.eup %7686 }
 0x326   : > { %v850_v55 = vmul.f32 %v7687_v51, %v7679_v22  ;;  %v1299_v22 = vsel %vm780_vm1, %v1294_v21, 0 }
 0x328   : > { %v851_v57 = vpack.c.bf16 %v850_v55, %v849_v54 }
 0x32a   : > { %6948 = vmatmul.mubr.msk.bf16.vlgmr.msra.gmra.mxu0 %vm828_vm2, %v851_v57 }
 0x32b   : > { %6959 = vmatprep.mubr.msk.bf16.mxu0 %vm7929_vm0, %v7928_v31 }
 0x386   : > { %v972_v60 = vpop.xlane.xlu1 %971 }
 0x387   : > { %7688 = vrcp.f32 %v972_v60 }
 0x38a   : > { %v975_v61 = vpop.xlane.xlu1 %974 }
 0x38b   : > { %7690 = vrcp.f32 %v975_v61 }
 0x38e   : > { %v983_v62 = vpop.permute.xlu1 %982 }
 0x38f   : > { %6958 = vmatpush3.bf16.msra.mxu0 %v983_v62 }
 0x390   : > { %6975 = vmatprep.subr.bf16.mxu0 %v7928_v31 }
 0x392   : > { %v1291_v23 = vpop.permute.xlu1 %1290 }
 0x394   : > { %v7689_v63 = vpop.eup %7688 }
 0x395   : > { %v978_v2 = vmul.f32 %v7689_v63, %v7681_v30 }
 0x398   : > { %v7691_v1 = vpop.eup %7690 }
 0x399   : > { %v979_v3 = vmul.f32 %v7691_v1, %v7683_v35 }
 0x39b   : > { %v980_v5 = vpack.c.bf16 %v979_v3, %v978_v2 }
 0x39d   : > { %6960 = vmatmul.mubr.msk.bf16.vlgmr.msra.gmra.mxu0 %vm828_vm2, %v980_v5 }
 0x39e   : > { %6976 = vmatpush3.bf16.msra.mxu0 %v8183_v4  ;;  %6983 = vmatprep.mubr.msk.bf16.mxu0 %vm7929_vm0, %v7928_v31 }
 0x39f   : > { %6977 = vmatprep.subr.bf16.mxu0 %v7928_v31 }
 0x3a2   : > { %6978 = vmatpush3.bf16.msra.mxu0 %v8190_v6 }
 0x3a3   : > { %6979 = vmatprep.subr.bf16.mxu0 %v7928_v31 }
 0x3a6   : > { %6980 = vmatpush3.bf16.msra.mxu0 %v8199_v7 }
 0x3a7   : > { %6981 = vmatprep.subr.bf16.mxu0 %v7928_v31 }
 0x3aa   : > { %6982 = vmatpush3.bf16.msra.mxu0 %v8206_v8 }
 0x3ab   : > { %6993 = vmatprep.subr.bf16.mxu0 %v7928_v31 }
 0x3ea   : > { %v889_v10 = vpop.f32.mrf.mxu0 }
 0x3ec   : > { %v6949_v11 = vpop.f32.mrf.mxu0 }
 0x3ee   : > { %v892_v12 = vpop.f32.mrf.mxu0 }
 0x3ef   : > { %v896_v13 = vpack.c.bf16 %v892_v12, %v889_v10 }
 0x3f0   : > { %v6950_v14 = vpop.f32.mrf.mxu0 }
 0x3f1   : > { %6984 = vmatmul.mubr.msk.bf16.vlgmr.msra.gmra.mxu0 %vm780_vm1, %v896_v13 }
 0x3f2   : > { %6994 = vmatpush3.bf16.msra.mxu0 %v8129_v59  ;;  %6995 = vmatprep.mubr.msk.bf16.mxu0 %vm7929_vm0, %v7928_v31 }
 0x3f3   : > { %7005 = vmatprep.subr.bf16.mxu0 %v7928_v31 }
 0x45d   : > { %v1022_v15 = vpop.f32.mrf.mxu0 }
 0x45f   : > { %v6961_v16 = vpop.f32.mrf.mxu0 }
 0x460   : > { %v7820_v16 = vld [vmem:[%s8084_s16] sm:$0xff] }
 0x461   : > { %v1025_v17 = vpop.f32.mrf.mxu0 }
 0x462   : > { %v1029_v18 = vpack.c.bf16 %v1025_v17, %v1022_v15 }
 0x463   : > { %v6962_v19 = vpop.f32.mrf.mxu0 }
 0x464   : > { %6972 = vmatmul.mubr.msk.bf16.vlgmr.msra.gmra.mxu1 %vm780_vm1, %v1029_v18  ;;  %v7821_v18 = vld [vmem:[%s8084_s16 + $0x8] sm:$0xff] }
 0x465   : > { %6988 = vmatpush3.bf16.xpose.msra.mxu1 %v1178_v20  ;;  %6989 = vmatprep.mubr.msk.bf16.mxu1 %vm7929_vm0, %v7928_v31 }
 0x466   : > { %6999 = vmatprep.subr.bf16.mxu1 %v7928_v31 }
 0x46c   : > { %6990 = vmatmul.mubr.msk.bf16.vlgmr.msra.gmra.mxu1 %vm780_vm1, %v8149_v52 }
 0x46d   : > { %7000 = vmatpush3.bf16.xpose.msra.mxu1 %v1299_v22  ;;  %7001 = vmatprep.mubr.msk.bf16.mxu1 %vm7929_vm0, %v7928_v31 }
 0x46e   : > { %7011 = vmatprep.subr.bf16.mxu1 %v7928_v31 }
 0x474   : > { %7002 = vmatmul.mubr.msk.bf16.vlgmr.msra.gmra.mxu1 %vm780_vm1, %v1291_v23 }
 0x475   : > { %7012 = vmatpush3.bf16.msra.mxu1 %v8161_v42  ;;  %7019 = vmatprep.mubr.msk.bf16.mxu1 %vm7929_vm0, %v7928_v31 }
 0x476   : > { %7013 = vmatprep.subr.bf16.mxu1 %v7928_v31 }
 0x479   : > { %7014 = vmatpush3.bf16.msra.mxu1 %v8167_v39 }
 0x47a   : > { %7015 = vmatprep.subr.bf16.mxu1 %v7928_v31 }
 0x47d   : > { %7016 = vmatpush3.bf16.msra.mxu1 %v8174_v58 }
 0x47e   : > { %7017 = vmatprep.subr.bf16.mxu1 %v7928_v31 }
 0x481   : > { %7018 = vmatpush3.bf16.msra.mxu1 %v7355_v9  ;;  %v8249_v9 = vld [vmem:[%s8954_s4] ss:$0 sm:$0xff] }
 0x4b1   : > { %v1167_v24 = vpop.f32.mrf.mxu0 }
 0x4b3   : > { %v6985_v25 = vpop.f32.mrf.mxu0 }
 0x4b5   : > { %v1170_v26 = vpop.f32.mrf.mxu0 }
 0x4b7   : > { %v6986_v27 = vpop.f32.mrf.mxu0 }
 0x524   : > { %v1099_v28 = vpop.f32.mrf.mxu1 }
 0x525   : > { %v1168_v5 = vadd.f32 %v1167_v24, %v1099_v28 }
 0x526   : > { %v6973_v29 = vpop.f32.mrf.mxu1 }
 0x527   : > { %v1509_v12 = vadd.f32 %v8249_v9, %v1168_v5  ;;  %v7370_v5 = vld [vmem:[#allocation4 + $0xc4] ss:$16 sps:$4 sm:$0xff]  }
 0x528   : > { %v1102_v30 = vpop.f32.mrf.mxu1 }
 0x529   : > { %v1171_v13 = vadd.f32 %v1170_v26, %v1102_v30  ;;  %v1513_v17 = vadd.f32 %v7820_v16, %v1509_v12  ;;  %v7368_v12 = vld [vmem:[#allocation4 + $0xc0] ss:$16 sps:$4 sm:$0xff]  }
 0x52a   : > { %v6974_v32 = vpop.f32.mrf.mxu1  ;;  %v7374_v16 = vld [vmem:[#allocation4 + $0xa0] ss:$16 sps:$4 sm:$0xff]  }
 0x52b   : > { %v1510_v15 = vadd.f32 %v8249_v9, %v1171_v13  ;;  %v7371_v13 = vld [vmem:[#allocation4 + $0x88] ss:$16 sps:$4 sm:$0xff]  }
 0x52c   : > { %v1214_v35 = vpop.f32.mrf.mxu1 }
 0x52d   : > { %v1221_v36 = vsel %vm828_vm2, %v1214_v35, -inf  ;;  %v1514_v19 = vadd.f32 %v7821_v18, %v1510_v15  ;;  %v7379_v15 = vld [vmem:[#allocation4 + $0x6c] ss:$16 sps:$4 sm:$0xff]   ;;  %v7382_v18 = vld [vmem:[#allocation4 + $0x84] ss:$16 sps:$4 sm:$0xff]  }
 0x52e   : > { %1222 = vmax.xlane.f32.xlu1 %v1221_v36  ;;  %v6991_v37 = vpop.f32.mrf.mxu1 }
 0x530   : > { %v1217_v40 = vpop.f32.mrf.mxu1 }
 0x531   : > { %v1224_v41 = vsel %vm828_vm2, %v1217_v40, -inf }
 0x532   : > { %1225 = vmax.xlane.f32.xlu0 %v1224_v41  ;;  %v6992_v43 = vpop.f32.mrf.mxu1 }
 0x534   : > { %v1335_v44 = vpop.f32.mrf.mxu1 }
 0x535   : > { %v1342_v45 = vsel %vm828_vm2, %v1335_v44, -inf }
 0x536   : > { %1343 = vmax.xlane.f32.xlu1 %v1342_v45  ;;  %v7003_v46 = vpop.f32.mrf.mxu1 }
 0x538   : > { %v1338_v47 = vpop.f32.mrf.mxu1 }
 0x539   : > { %v1345_v48 = vsel %vm828_vm2, %v1338_v47, -inf }
 0x53a   : > { %1346 = vmax.xlane.f32.xlu1 %v1345_v48  ;;  %v7004_v49 = vpop.f32.mrf.mxu1  ;;  %v7358_v48 = vld [vmem:[#allocation4 + $0xec] ss:$16 sps:$4 sm:$0xff]  }
 0x53b   : > { %v7364_v49 = vld [vmem:[#allocation4 + $0xe4] ss:$16 sps:$4 sm:$0xff]  }
 0x53c   : > { %1800 = vmatprep.subr.bf16.mxu1 %v7364_v49  ;;  %v7401_v49 = vld [vmem:[#allocation4] ss:$16 sps:$4 sm:$0xff]  }
 0x5b7   : > { %v1223_v51 = vpop.xlane.xlu1 %1222 }
 0x5b8   : > { %v1227_v52 = vsub.f32 %v1214_v35, %v1223_v51 }
 0x5ba   : > { %v1229_v53 = vmul.f32 1.442695, %v1227_v52 }
 0x5bb   : > { %v1226_v54 = vpop.xlane.xlu0 %1225 }
 0x5bc   : > { %7692 = vpow2.f32 %v1229_v53  ;;  %v1228_v55 = vsub.f32 %v1217_v40, %v1226_v54 }
 0x5be   : > { %v1231_v56 = vmul.f32 1.442695, %v1228_v55 }
 0x5bf   : > { %v1344_v57 = vpop.xlane.xlu1 %1343 }
 0x5c0   : > { %7694 = vpow2.f32 %v1231_v56  ;;  %v1348_v42 = vsub.f32 %v1335_v44, %v1344_v57 }
 0x5c2   : > { %v1350_v39 = vmul.f32 1.442695, %v1348_v42 }
 0x5c3   : > { %v1347_v58 = vpop.xlane.xlu1 %1346 }
 0x5c4   : > { %7696 = vpow2.f32 %v1350_v39  ;;  %v1349_v60 = vsub.f32 %v1338_v47, %v1347_v58  ;;  %v7361_v39 = vld [vmem:[#allocation4 + $0xcc] ss:$16 sps:$4 sm:$0xff]  }
 0x5c6   : > { %v1352_v61 = vmul.f32 1.442695, %v1349_v60  ;;  %v7359_v60 = vld [vmem:[#allocation4 + $0xc8] ss:$16 sps:$4 sm:$0xff]  }
 0x5c8   : > { %7698 = vpow2.f32 %v1352_v61  ;;  %v7367_v61 = vld [vmem:[#allocation4 + $0xac] ss:$16 sps:$4 sm:$0xff]  }
 0x5c9   : > { %v7693_v62 = vpop.eup %7692 }
 0x5ca   : > { %v1233_v63 = vsel %vm828_vm2, %v7693_v62, 0.0 }
 0x5cb   : > { %1234 = vadd.xlane.f32.xlu0 %v1233_v63 }
 0x5cd   : > { %v7695_v1 = vpop.eup %7694 }
 0x5ce   : > { %v1236_v2 = vsel %vm828_vm2, %v7695_v1, 0.0 }
 0x5cf   : > { %1237 = vadd.xlane.f32.xlu1 %v1236_v2  ;;  %v7365_v2 = vld [vmem:[#allocation4 + $0xa8] ss:$16 sps:$4 sm:$0xff]  }
 0x5d1   : > { %v7697_v3 = vpop.eup %7696 }
 0x5d2   : > { %v1354_v10 = vsel %vm828_vm2, %v7697_v3, 0.0 }
 0x5d3   : > { %1355 = vadd.xlane.f32.xlu0 %v1354_v10  ;;  %v7373_v10 = vld [vmem:[#allocation4 + $0x8c] ss:$16 sps:$4 sm:$0xff]  }
 0x5d5   : > { %v7699_v11 = vpop.eup %7698 }
 0x5d6   : > { %v1357_v14 = vsel %vm828_vm2, %v7699_v11, 0.0 }
 0x5d7   : > { %1358 = vadd.xlane.f32.xlu1 %v1357_v14  ;;  %v7376_v14 = vld [vmem:[#allocation4 + $0xa4] ss:$16 sps:$4 sm:$0xff]  }
 0x5db   : > { %1519 = vadd.xlane.f32.xlu1 %v1513_v17 }
 0x5df   : > { %1521 = vadd.xlane.f32.xlu1 %v1514_v19 }
 0x5e9   : > { %1366 = vrot.lane.b32.xlu0 %v8129_v59, %s7930_s26 }
 0x654   : > { %v1235_v20 = vpop.xlane.xlu0 %1234 }
 0x655   : > { %7700 = vrcp.f32 %v1235_v20 }
 0x658   : > { %v1238_v21 = vpop.xlane.xlu1 %1237 }
 0x659   : > { %7702 = vrcp.f32 %v1238_v21 }
 0x65c   : > { %v1356_v22 = vpop.xlane.xlu0 %1355 }
 0x65d   : > { %7704 = vrcp.f32 %v1356_v22  ;;  %v7380_v22 = vld [vmem:[#allocation4 + $0x80] ss:$16 sps:$4 sm:$0xff]  }
 0x660   : > { %v1359_v23 = vpop.xlane.xlu1 %1358  ;;  %v1367_v37 = vpop.permute.xlu0 %1366 }
 0x661   : > { %7706 = vrcp.f32 %v1359_v23  ;;  %v7383_v23 = vld [vmem:[#allocation4 + $0x48] ss:$16 sps:$4 sm:$0xff]  }
 0x662   : > { %v7701_v24 = vpop.eup %7700 }
 0x663   : > { %v1241_v28 = vmul.f32 %v7701_v24, %v7693_v62  ;;  %v7388_v24 = vld [vmem:[#allocation4 + $0x64] ss:$16 sps:$4 sm:$0xff]  }
 0x664   : > { %v1520_v25 = vpop.xlane.xlu1 %1519 }
 0x665   : > { %v1528_v26 = vmul.f32 0.0078125, %v1520_v25  ;;  %v7391_v25 = vld [vmem:[#allocation4 + $0x2c] ss:$16 sps:$4 sm:$0xff]  }
 0x666   : > { %v7703_v27 = vpop.eup %7702 }
 0x667   : > { %v1242_v29 = vmul.f32 %v7703_v27, %v7695_v1  ;;  %v8259_v30 = vsub.f32 %v1513_v17, %v1528_v26  ;;  %v7362_v1 = vld [vmem:[#allocation4 + $0xe0] ss:$16 sps:$4 sm:$0xff]   ;;  %v7377_v17 = vld [vmem:[#allocation4 + $0x68] ss:$16 sps:$4 sm:$0xff]  }
 0x668   : > { %v1522_v32 = vpop.xlane.xlu1 %1521 }
 0x669   : > { %v1529_v35 = vmul.f32 0.0078125, %v1522_v32  ;;  %v1243_v36 = vpack.c.bf16 %v1242_v29, %v1241_v28  ;;  %v1536_v59 = vmul.f32 %v8259_v30, %v8259_v30  ;;  %v7386_v28 = vld [vmem:[#allocation4 + $0x60] ss:$16 sps:$4 sm:$0xff]   ;;  %v7389_v29 = vld [vmem:[#allocation4 + $0x28] ss:$16 sps:$4 sm:$0xff]  }
 0x66a   : > { %v7705_v41 = vpop.eup %7704  ;;  %v8290_v32 = vld [vmem:[%s8959_s9] ss:$0 sm:$0xff] }
 0x66b   : > { %6996 = vmatmul.mubr.msk.bf16.vlgmr.msra.gmra.mxu0 %vm828_vm2, %v1243_v36  ;;  %1540 = vadd.xlane.f32.xlu1 %v1536_v59  ;;  %v8264_v40 = vsub.f32 %v1514_v19, %v1529_v35  ;;  %v1362_v45 = vmul.f32 %v7705_v41, %v7697_v3  ;;  %v7385_v19 = vld [vmem:[#allocation4 + $0x4c] ss:$16 sps:$4 sm:$0xff]   ;;  %v7394_v35 = vld [vmem:[#allocation4 + $0x44] ss:$16 sps:$4 sm:$0xff]   ;;  %v8297_v41 = vld [vmem:[%s8960_s10] ss:$0 sm:$0xff] }
 0x66c   : > { %7006 = vmatpush3.bf16.msra.mxu0 %v1367_v37  ;;  %7007 = vmatprep.mubr.msk.bf16.mxu0 %vm7929_vm0, %v7928_v31  ;;  %v7397_v36 = vld [vmem:[#allocation4 + $0xc] ss:$16 sps:$4 sm:$0xff]  }
 0x66d   : > { %v1537_v43 = vmul.f32 %v8264_v40, %v8264_v40  ;;  %7023 = vmatprep.subr.bf16.mxu0 %v7928_v31 }
 0x66e   : > { %v7707_v44 = vpop.eup %7706 }
 0x66f   : > { %1542 = vadd.xlane.f32.xlu1 %v1537_v43  ;;  %v1363_v46 = vmul.f32 %v7707_v44, %v7699_v11  ;;  %v7400_v43 = vld [vmem:[#allocation4 + $0x24] ss:$16 sps:$4 sm:$0xff]  }
 0x671   : > { %v1364_v47 = vpack.c.bf16 %v1363_v46, %v1362_v45  ;;  %v7398_v46 = vld [vmem:[#allocation4 + $0x20] ss:$16 sps:$4 sm:$0xff]  }
 0x673   : > { %7008 = vmatmul.mubr.msk.bf16.vlgmr.msra.gmra.mxu0 %vm828_vm2, %v1364_v47 }
 0x674   : > { %7024 = vmatpush3.bf16.msra.mxu0 %v8183_v4  ;;  %7031 = vmatprep.mubr.msk.bf16.mxu0 %vm7929_vm0, %v7928_v31 }
 0x675   : > { %7025 = vmatprep.subr.bf16.mxu0 %v7928_v31 }
 0x678   : > { %7026 = vmatpush3.bf16.msra.mxu0 %v8190_v6  ;;  %v7356_v6 = vld [vmem:[#allocation4 + $0xe8] ss:$16 sps:$4 sm:$0xff]  }
 0x679   : > { %7027 = vmatprep.subr.bf16.mxu0 %v7928_v31 }
 0x67c   : > { %7028 = vmatpush3.bf16.msra.mxu0 %v8199_v7 }
 0x67d   : > { %7029 = vmatprep.subr.bf16.mxu0 %v7928_v31 }
 0x680   : > { %7030 = vmatpush3.bf16.msra.mxu0 %v8206_v8 }
 0x681   : > { %1853 = vmatprep.subr.bf16.mxu0 %v7358_v48  ;;  %v7403_v48 = vld [vmem:[#allocation4 + $0x4] ss:$16 sps:$4 sm:$0xff]  }
 0x6f4   : > { %v1541_v4 = vpop.xlane.xlu1 %1540 }
 0x6f5   : > { %v1548_v55 = vmul.f32 0.0078125, %v1541_v4 }
 0x6f7   : > { %v1552_v58 = vadd.f32 1e-05, %v1548_v55 }
 0x6f8   : > { %v1543_v51 = vpop.xlane.xlu1 %1542 }
 0x6f9   : > { %v1549_v53 = vmul.f32 0.0078125, %v1543_v51 }
 0x6fb   : > { %v1553_v57 = vadd.f32 1e-05, %v1549_v53 }
 0x6fd   : > { %7708 = vrsqrt.f32 %v1553_v57 }
 0x6fe   : > { %7710 = vrsqrt.f32 %v1552_v58 }
 0x70a   : > { %v7709_v20 = vpop.eup %7708 }
 0x70b   : > { %v7711_v21 = vpop.eup %7710  ;;  %v1561_v26 = vmul.f32 %v7709_v20, %v8264_v40  ;;  %v7395_v40 = vld [vmem:[#allocation4 + $0x8] ss:$16 sps:$4 sm:$0xff]  }
 0x70c   : > { %v1560_v27 = vmul.f32 %v7711_v21, %v8259_v30  ;;  %v7392_v30 = vld [vmem:[#allocation4 + $0x40] ss:$16 sps:$4 sm:$0xff]   ;;  %v7413_v20 = vld [vmem:[#allocation6 + $0xe8] sm:$0xff]  }
 0x70d   : > { %v1571_v59 = vmul.f32 %v8290_v32, %v1561_v26  ;;  %v7414_v21 = vld [vmem:[#allocation6 + $0x28] sm:$0xff]   ;;  %v7419_v26 = vld [vmem:[#allocation6 + $0xa0] sm:$0xff]  }
 0x70e   : > { %v1570_v37 = vmul.f32 %v8290_v32, %v1560_v27  ;;  %v7420_v27 = vld [vmem:[#allocation6 + $0x58] sm:$0xff]  }
 0x70f   : > { %v8300_v44 = vadd.f32 %v8297_v41, %v1571_v59  ;;  %v7425_v59 = vld [vmem:[#allocation6 + $0xd0] sm:$0xff]  }
 0x710   : > { %v8303_v45 = vadd.f32 %v8297_v41, %v1570_v37  ;;  %v7426_v37 = vld [vmem:[#allocation6 + $0x10] sm:$0xff]  }
 0x712   : > { %v1584_v47 = vpack.c.bf16 %v8300_v44, %v8303_v45 }
 0x72b   : > { %v1281_v52 = vpop.f32.mrf.mxu0 }
 0x72d   : > { %v6997_v54 = vpop.f32.mrf.mxu0 }
 0x72f   : > { %v1284_v56 = vpop.f32.mrf.mxu0 }
 0x730   : > { %v1288_v42 = vpack.c.bf16 %v1284_v56, %v1281_v52 }
 0x731   : > { %v6998_v7 = vpop.f32.mrf.mxu0 }
 0x732   : > { %7032 = vmatmul.mubr.msk.bf16.vlgmr.msra.gmra.mxu0 %vm780_vm1, %v1288_v42 }
 0x733   : > { %1854 = vmatpush1.bf16.msra.mxu0 %v7356_v6  ;;  %v1406_v8 = vpop.f32.mrf.mxu0  ;;  %1885 = vmatprep.mubr.bf16.mxu0 %v7927_v0 }
 0x734   : > { %1855 = vmatprep.subr.bf16.mxu0 %v7361_v39  ;;  %v7822_v39 = vld [vmem:[%s8084_s16 + $0x10] sm:$0xff] }
 0x735   : > { %v7009_v62 = vpop.f32.mrf.mxu0 }
 0x737   : > { %1856 = vmatpush1.bf16.msra.mxu0 %v7359_v60  ;;  %v1409_v63 = vpop.f32.mrf.mxu0  ;;  %v7823_v60 = vld [vmem:[%s8084_s16 + $0x18] sm:$0xff] }
 0x738   : > { %v1413_v3 = vpack.c.bf16 %v1409_v63, %v1406_v8  ;;  %1857 = vmatprep.subr.bf16.mxu0 %v7367_v61 }
 0x739   : > { %v7010_v11 = vpop.f32.mrf.mxu0 }
 0x73a   : > { %7020 = vmatmul.mubr.msk.bf16.vlgmr.msra.gmra.mxu1 %vm780_vm1, %v1413_v3 }
 0x73b   : > { %1801 = vmatpush1.bf16.msra.mxu1 %v7362_v1  ;;  %1858 = vmatpush1.bf16.msra.mxu0 %v7365_v2 }
 0x73c   : > { %1802 = vmatprep.subr.bf16.mxu1 %v7370_v5  ;;  %1859 = vmatprep.subr.bf16.mxu0 %v7373_v10 }
 0x73d   : > { %1832 = vmatprep.mubr.bf16.mxu1 %v7927_v0 }
 0x73f   : > { %1803 = vmatpush1.bf16.msra.mxu1 %v7368_v12  ;;  %1860 = vmatpush1.bf16.msra.mxu0 %v7371_v13  ;;  %v7405_v12 = vld [vmem:[#allocation6 + $0xf8] sm:$0xff]  }
 0x740   : > { %1804 = vmatprep.subr.bf16.mxu1 %v7376_v14  ;;  %1861 = vmatprep.subr.bf16.mxu0 %v7379_v15  ;;  %v7406_v13 = vld [vmem:[#allocation6 + $0x38] sm:$0xff]   ;;  %v7408_v15 = vld [vmem:[#allocation6 + $0x70] sm:$0xff]  }
 0x741   : > { %v7407_v14 = vld [vmem:[#allocation6 + $0xb8] sm:$0xff]  }
 0x743   : > { %1805 = vmatpush1.bf16.msra.mxu1 %v7374_v16  ;;  %1862 = vmatpush1.bf16.msra.mxu0 %v7377_v17  ;;  %v7409_v16 = vld [vmem:[#allocation6 + $0xf0] sm:$0xff]  }
 0x744   : > { %1806 = vmatprep.subr.bf16.mxu1 %v7382_v18  ;;  %1863 = vmatprep.subr.bf16.mxu0 %v7385_v19  ;;  %v7410_v17 = vld [vmem:[#allocation6 + $0x30] sm:$0xff]   ;;  %v7412_v19 = vld [vmem:[#allocation6 + $0x68] sm:$0xff]  }
 0x745   : > { %v7411_v18 = vld [vmem:[#allocation6 + $0xb0] sm:$0xff]  }
 0x747   : > { %1807 = vmatpush1.bf16.msra.mxu1 %v7380_v22  ;;  %1864 = vmatpush1.bf16.msra.mxu0 %v7383_v23  ;;  %v7415_v22 = vld [vmem:[#allocation6 + $0xa8] sm:$0xff]   ;;  %v7416_v23 = vld [vmem:[#allocation6 + $0x60] sm:$0xff]  }
 0x748   : > { %1808 = vmatprep.subr.bf16.mxu1 %v7388_v24  ;;  %1865 = vmatprep.subr.bf16.mxu0 %v7391_v25  ;;  %v7417_v24 = vld [vmem:[#allocation6 + $0xe0] sm:$0xff]  }
 0x749   : > { %v7418_v25 = vld [vmem:[#allocation6 + $0x20] sm:$0xff]  }
 0x74b   : > { %1809 = vmatpush1.bf16.msra.mxu1 %v7386_v28  ;;  %1866 = vmatpush1.bf16.msra.mxu0 %v7389_v29  ;;  %v7421_v28 = vld [vmem:[#allocation6 + $0xd8] sm:$0xff]  }
 0x74c   : > { %1810 = vmatprep.subr.bf16.mxu1 %v7394_v35  ;;  %1867 = vmatprep.subr.bf16.mxu0 %v7397_v36  ;;  %v7422_v29 = vld [vmem:[#allocation6 + $0x18] sm:$0xff]   ;;  %v7424_v36 = vld [vmem:[#allocation6 + $0x50] sm:$0xff]  }
 0x74d   : > { %v7423_v35 = vld [vmem:[#allocation6 + $0x98] sm:$0xff]  }
 0x74f   : > { %1811 = vmatpush1.bf16.msra.mxu1 %v7392_v30  ;;  %1868 = vmatpush1.bf16.msra.mxu0 %v7395_v40  ;;  %v7427_v30 = vld [vmem:[#allocation6 + $0x90] sm:$0xff]   ;;  %v7428_v40 = vld [vmem:[#allocation6 + $0x48] sm:$0xff]  }
 0x750   : > { %1812 = vmatprep.subr.bf16.mxu1 %v7400_v43  ;;  %6687 = vmatprep.subr.bf16.mxu0 %v7405_v12  ;;  %v7429_v43 = vld [vmem:[#allocation6 + $0xc8] sm:$0xff]  }
 0x752   : > { %1886 = vmatmul.mubr.bf16.vlgmr.msra.gmra.mxu0 %v1584_v47 }
 0x753   : > { %1813 = vmatpush1.bf16.msra.mxu1 %v7398_v46  ;;  %1895 = vmatprep.mubr.bf16.mxu0 %v7927_v0  ;;  %v7430_v46 = vld [vmem:[#allocation6 + $0x8] sm:$0xff]  }
 0x754   : > { %1814 = vmatprep.subr.bf16.mxu1 %v7403_v48  ;;  %6688 = vmatpush3.bf16.msra.mxu0 %v7407_v14  ;;  %v7432_v48 = vld [vmem:[#allocation6 + $0x40] sm:$0xff]  }
 0x755   : > { %6689 = vmatprep.subr.bf16.mxu0 %v7409_v16 }
 0x757   : > { %1815 = vmatpush1.bf16.msra.mxu1 %v7401_v49  ;;  %v7433_v49 = vld [vmem:[#allocation6 + $0xc0] sm:$0xff]  }
 0x758   : > { %6690 = vmatpush3.bf16.msra.mxu0 %v7411_v18 }
 0x759   : > { %6691 = vmatprep.subr.bf16.mxu0 %v7413_v20 }
 0x75a   : > { %1833 = vmatmul.mubr.bf16.vlgmr.msra.gmra.mxu1 %v1584_v47  ;;  %v7431_v47 = vld [vmem:[#allocation6 + $0x88] sm:$0xff]  }
 0x75b   : > { %1842 = vmatprep.mubr.bf16.mxu1 %v7927_v0 }
 0x75c   : > { %6692 = vmatpush3.bf16.msra.mxu0 %v7415_v22 }
 0x75d   : > { %6693 = vmatprep.subr.bf16.mxu0 %v7417_v24 }
 0x760   : > { %6694 = vmatpush3.bf16.msra.mxu0 %v7419_v26 }
 0x761   : > { %6695 = vmatprep.subr.bf16.mxu0 %v7421_v28 }
 0x764   : > { %6696 = vmatpush3.bf16.msra.mxu0 %v7423_v35 }
 0x765   : > { %6697 = vmatprep.subr.bf16.mxu0 %v7425_v59 }
 0x768   : > { %6698 = vmatpush3.bf16.msra.mxu0 %v7427_v30 }
 0x769   : > { %6699 = vmatprep.subr.bf16.mxu0 %v7429_v43 }
 0x76c   : > { %6700 = vmatpush3.bf16.msra.mxu0 %v7431_v47 }
 0x76d   : > { %6701 = vmatprep.subr.bf16.mxu0 %v7433_v49 }
 0x7f2   : > { %v1495_v4 = vpop.f32.mrf.mxu0 }
 0x7f4   : > { %v7033_v51 = vpop.f32.mrf.mxu0 }
 0x7f5   : > { %v7435_v51 = vld [vmem:[#allocation6 + $0x80] sm:$0xff]  }
 0x7f6   : > { %v1498_v52 = vpop.f32.mrf.mxu0  ;;  %6702 = vmatpush3.bf16.msra.mxu0 %v7435_v51 }
 0x7f8   : > { %v7034_v53 = vpop.f32.mrf.mxu0 }
 0x7fa   : > { %v1451_v54 = vpop.f32.mrf.mxu1 }
 0x7fb   : > { %v1496_v55 = vadd.f32 %v1495_v4, %v1451_v54  ;;  %v7434_v4 = vld [vmem:[#allocation6] sm:$0xff]  }
 0x7fc   : > { %v7021_v56 = vpop.f32.mrf.mxu1 }
 0x7fd   : > { %v1511_v6 = vadd.f32 %v8249_v9, %v1496_v55 }
 0x7fe   : > { %v1454_v57 = vpop.f32.mrf.mxu1 }
 0x7ff   : > { %v1499_v42 = vadd.f32 %v1498_v52, %v1454_v57  ;;  %v1515_v7 = vadd.f32 %v7822_v39, %v1511_v6 }
 0x800   : > { %v7022_v58 = vpop.f32.mrf.mxu1 }
 0x801   : > { %v1512_v8 = vadd.f32 %v8249_v9, %v1499_v42  ;;  %1523 = vadd.xlane.f32.xlu1 %v1515_v7  ;;  %v7404_v9 = vld [vmem:[#allocation6 + $0x78] sm:$0xff]  }
 0x802   : > { %6659 = vmatprep.subr.bf16.mxu1 %v7404_v9 }
 0x803   : > { %v1516_v61 = vadd.f32 %v7823_v60, %v1512_v8  ;;  %6660 = vmatpush3.bf16.msra.mxu1 %v7406_v13  ;;  %v8322_v60 = vsub.s32 3, %v8097_v33 }
 0x804   : > { %6661 = vmatprep.subr.bf16.mxu1 %v7408_v15 }
 0x805   : > { %1525 = vadd.xlane.f32.xlu1 %v1516_v61 }
 0x807   : > { %6662 = vmatpush3.bf16.msra.mxu1 %v7410_v17 }
 0x808   : > { %6663 = vmatprep.subr.bf16.mxu1 %v7412_v19 }
 0x80b   : > { %6664 = vmatpush3.bf16.msra.mxu1 %v7414_v21 }
 0x80c   : > { %6665 = vmatprep.subr.bf16.mxu1 %v7416_v23 }
 0x80f   : > { %6666 = vmatpush3.bf16.msra.mxu1 %v7418_v25 }
 0x810   : > { %6667 = vmatprep.subr.bf16.mxu1 %v7420_v27 }
 0x812   : > { %v1887_v6 = vpop.f32.mrf.mxu0 }
 0x813   : > { %6668 = vmatpush3.bf16.msra.mxu1 %v7422_v29 }
 0x814   : > { %6669 = vmatprep.subr.bf16.mxu1 %v7424_v36  ;;  %v1889_v39 = vpop.f32.mrf.mxu0 }
 0x816   : > { %v1891_v58 = vpop.f32.mrf.mxu0 }
 0x817   : > { %6670 = vmatpush3.bf16.msra.mxu1 %v7426_v37 }
 0x818   : > { %6671 = vmatprep.subr.bf16.mxu1 %v7428_v40 }
 0x81a   : > { %v1834_v57 = vpop.f32.mrf.mxu1 }
 0x81b   : > { %6672 = vmatpush3.bf16.msra.mxu1 %v7430_v46 }
 0x81c   : > { %6673 = vmatprep.subr.bf16.mxu1 %v7432_v48 }
 0x81f   : > { %6674 = vmatpush3.bf16.msra.mxu1 %v7434_v4 }
 0x88a   : > { %v1524_v62 = vpop.xlane.xlu1 %1523 }
 0x88b   : > { %v1530_v63 = vmul.f32 0.0078125, %v1524_v62  ;;  %v1618_v62 = vld [vmem:[%s8956_s6] sm:$0xf] }
 0x88c   : > { %v1631_v20 = vrot.slane %v1618_v62, %v8126_v50 }
 0x88d   : > { %v8313_v1 = vsub.f32 %v1515_v7, %v1530_v63  ;;  %v1836_v7 = vpop.f32.mrf.mxu1  ;;  %v1893_v63 = vpop.f32.mrf.mxu0 }
 0x88e   : > { %v1526_v2 = vpop.xlane.xlu1 %1525  ;;  %v1892_v24 = vadd.f32 %v1891_v58, %v1631_v20  ;;  %v1888_v28 = vadd.f32 %v1887_v6, %v1631_v20 }
 0x88f   : > { %v1531_v3 = vmul.f32 0.0078125, %v1526_v2  ;;  %v1538_v5 = vmul.f32 %v8313_v1, %v8313_v1  ;;  %v1838_v8 = vpop.f32.mrf.mxu1 }
 0x890   : > { %v1912_v35 = vmax.f32 %v1892_v24, 0.0  ;;  %v1908_v59 = vmax.f32 %v1888_v28, 0.0 }
 0x891   : > { %v8317_v10 = vsub.f32 %v1516_v61, %v1531_v3  ;;  %1544 = vadd.xlane.f32.xlu0 %v1538_v5  ;;  %v1840_v2 = vpop.f32.mrf.mxu1  ;;  %v1635_v5 = vrot.slane %v1618_v62, %v8322_v60 }
 0x892   : > { %v1924_v37 = vpack.c.bf16 %v1912_v35, %v1908_v59  ;;  %v7438_v35 = vld [vmem:[#allocation2 + $0x16c] ss:$12 sps:$4 sm:$0xff]  }
 0x893   : > { %v1539_v11 = vmul.f32 %v8317_v10, %v8317_v10  ;;  %v1894_v12 = vadd.f32 %v1893_v63, %v1635_v5  ;;  %v1890_v15 = vadd.f32 %v1889_v39, %v1635_v5  ;;  %2542 = vmatprep.subr.bf16.mxu1 %v7438_v35 }
 0x895   : > { %1546 = vadd.xlane.f32.xlu1 %v1539_v11  ;;  %v1627_v11 = vrot.slane %v1618_v62, %v8100_v34  ;;  %v1913_v18 = vmax.f32 %v1894_v12, 0.0  ;;  %v1909_v23 = vmax.f32 %v1890_v15, 0.0  ;;  %v8346_v12 = vld [vmem:[%s8958_s8] ss:$0 sm:$0xff] }
 0x897   : > { %v1841_v13 = vadd.f32 %v1840_v2, %v1627_v11  ;;  %v1837_v16 = vadd.f32 %v1836_v7, %v1627_v11 }
 0x899   : > { %v1911_v19 = vmax.f32 %v1841_v13, 0.0 }
 0x91a   : > { %v1545_v52 = vpop.xlane.xlu0 %1544 }
 0x91b   : > { %v1550_v53 = vmul.f32 0.0078125, %v1545_v52 }
 0x91d   : > { %v1554_v54 = vadd.f32 1e-05, %v1550_v53 }
 0x91e   : > { %v1547_v55 = vpop.xlane.xlu1 %1546 }
 0x91f   : > { %7712 = vrsqrt.f32 %v1554_v54  ;;  %v1551_v56 = vmul.f32 0.0078125, %v1547_v55 }
 0x921   : > { %v1555_v42 = vadd.f32 1e-05, %v1551_v56 }
 0x923   : > { %7714 = vrsqrt.f32 %v1555_v42 }
 0x92c   : > { %v7713_v61 = vpop.eup %7712 }
 0x92d   : > { %v1562_v3 = vmul.f32 %v7713_v61, %v8313_v1  ;;  %v1623_v1 = vrot.slane %v1618_v62, %v8106_v38 }
 0x92f   : > { %v1572_v33 = vmul.f32 %v8290_v32, %v1562_v3  ;;  %v1839_v25 = vadd.f32 %v1838_v8, %v1623_v1  ;;  %v1835_v29 = vadd.f32 %v1834_v57, %v1623_v1 }
 0x930   : > { %v7715_v9 = vpop.eup %7714 }
 0x931   : > { %v1563_v14 = vmul.f32 %v7715_v9, %v8317_v10  ;;  %v8336_v21 = vadd.f32 %v8297_v41, %v1572_v33  ;;  %v1907_v10 = vmax.f32 %v1837_v16, 0.0  ;;  %v1910_v36 = vmax.f32 %v1839_v25, 0.0 }
 0x933   : > { %v1573_v17 = vmul.f32 %v8290_v32, %v1563_v14  ;;  %v1925_v32 = vpack.c.bf16 %v1913_v18, %v1909_v23  ;;  %v1923_v27 = vpack.c.bf16 %v1911_v19, %v1907_v10 }
 0x935   : > { %v8339_v22 = vadd.f32 %v8297_v41, %v1573_v17  ;;  %v1906_v41 = vmax.f32 %v1835_v29, 0.0  ;;  %v7436_v29 = vld [vmem:[#allocation2 + $0x168] ss:$12 sps:$4 sm:$0xff]  }
 0x937   : > { %v1585_v26 = vpack.c.bf16 %v8339_v22, %v8336_v21  ;;  %v1922_v30 = vpack.c.bf16 %v1910_v36, %v1906_v41 }
 0x939   : > { %1843 = vmatmul.mubr.bf16.gmra.mxu1 %v1585_v26  ;;  %1896 = vmatmul.mubr.bf16.gmra.mxu0 %v1585_v26 }
 0x93a   : > { %2225 = vmatprep.mubr.bf16.mxu1 %v1923_v27  ;;  %2274 = vmatprep.mubr.bf16.mxu0 %v1925_v32 }
 0x941   : > { %2226 = vmatmul.mubr.bf16.vlgmr.msra.gmra.mxu1 %v1922_v30  ;;  %2275 = vmatmul.mubr.bf16.vlgmr.msra.gmra.mxu0 %v1924_v37 }
 0x942   : > { %2543 = vmatpush1.bf16.msra.mxu1 %v7436_v29 }
 0x9f9   : > { %v1844_v40 = vpop.f32.mrf.mxu1  ;;  %v1897_v43 = vpop.f32.mrf.mxu0 }
 0x9fa   : > { %v1845_v54 = vadd.f32 %v1844_v40, %v1623_v1  ;;  %v1898_v55 = vadd.f32 %v1897_v43, %v1631_v20 }
 0x9fb   : > { %v1846_v46 = vpop.f32.mrf.mxu1  ;;  %v1899_v47 = vpop.f32.mrf.mxu0 }
 0x9fc   : > { %v1847_v4 = vadd.f32 %v1846_v46, %v1627_v11  ;;  %v1900_v51 = vadd.f32 %v1899_v47, %v1635_v5  ;;  %v1914_v3 = vmax.f32 %v1845_v54, 0.0  ;;  %v1916_v9 = vmax.f32 %v1898_v55, 0.0  ;;  %v7439_v46 = vld [vmem:[#allocation2 + $0x150] ss:$12 sps:$4 sm:$0xff]  }
 0x9fd   : > { %v1848_v48 = vpop.f32.mrf.mxu1  ;;  %v1901_v49 = vpop.f32.mrf.mxu0  ;;  %v7444_v47 = vld [vmem:[#allocation2 + $0x13c] ss:$12 sps:$4 sm:$0xff]  }
 0x9fe   : > { %v1849_v52 = vadd.f32 %v1848_v48, %v1623_v1  ;;  %v1902_v53 = vadd.f32 %v1901_v49, %v1631_v20  ;;  %v1915_v61 = vmax.f32 %v1847_v4, 0.0  ;;  %v1917_v62 = vmax.f32 %v1900_v51, 0.0  ;;  %v7442_v48 = vld [vmem:[#allocation2 + $0x138] ss:$12 sps:$4 sm:$0xff]   ;;  %v7445_v4 = vld [vmem:[#allocation2 + $0x120] ss:$12 sps:$4 sm:$0xff]  }
 0x9ff   : > { %v1850_v56 = vpop.f32.mrf.mxu1  ;;  %v1903_v6 = vpop.f32.mrf.mxu0  ;;  %v7447_v49 = vld [vmem:[#allocation2 + $0x124] ss:$12 sps:$4 sm:$0xff]   ;;  %v7450_v51 = vld [vmem:[#allocation2 + $0x10c] ss:$12 sps:$4 sm:$0xff]   ;;  %v7456_v55 = vld [vmem:[#allocation2 + $0xdc] ss:$12 sps:$4 sm:$0xff]  }
 0xa00   : > { %v1851_v57 = vadd.f32 %v1850_v56, %v1627_v11  ;;  %v1904_v42 = vadd.f32 %v1903_v6, %v1635_v5  ;;  %v1918_v39 = vmax.f32 %v1849_v52, 0.0  ;;  %v1920_v7 = vmax.f32 %v1902_v53, 0.0  ;;  %v7448_v52 = vld [vmem:[#allocation2 + $0x108] ss:$12 sps:$4 sm:$0xff]   ;;  %v7451_v54 = vld [vmem:[#allocation2 + $0xf0] ss:$12 sps:$4 sm:$0xff]  }
 0xa01   : > { %v6675_v58 = vpop.f32.mrf.mxu1  ;;  %v6703_v8 = vpop.f32.mrf.mxu0  ;;  %v7453_v53 = vld [vmem:[#allocation2 + $0xf4] ss:$12 sps:$4 sm:$0xff]   ;;  %v7454_v56 = vld [vmem:[#allocation2 + $0xd8] ss:$12 sps:$4 sm:$0xff]  }
 0xa02   : > { %v1919_v63 = vmax.f32 %v1851_v57, 0.0  ;;  %v1921_v2 = vmax.f32 %v1904_v42, 0.0  ;;  %v1926_v15 = vpack.c.bf16 %v1918_v39, %v1914_v3  ;;  %v1928_v16 = vpack.c.bf16 %v1920_v7, %v1916_v9  ;;  %v7459_v6 = vld [vmem:[#allocation2 + $0xc4] ss:$12 sps:$4 sm:$0xff]   ;;  %v7457_v57 = vld [vmem:[#allocation2 + $0xc0] ss:$12 sps:$4 sm:$0xff]  }
 0xa03   : > { %v6676_v13 = vpop.f32.mrf.mxu1  ;;  %v6704_v14 = vpop.f32.mrf.mxu0 }
 0xa04   : > { %v1927_v33 = vpack.c.bf16 %v1919_v63, %v1915_v61  ;;  %v1929_v11 = vpack.c.bf16 %v1921_v2, %v1917_v62  ;;  %v6677_v5 = vadd.f32 %v6676_v13, %v6675_v58  ;;  %v6705_v20 = vadd.f32 %v6704_v14, %v6703_v8 }
 0xa05   : > { %v6678_v17 = vpop.f32.mrf.mxu1  ;;  %v6706_v18 = vpop.f32.mrf.mxu0 }
 0xa06   : > { %v2228_v19 = vadd.f32 %v6677_v5, %v8346_v12  ;;  %2233 = vmatprep.mubr.bf16.mxu1 %v1927_v33  ;;  %2282 = vmatprep.mubr.bf16.mxu0 %v1929_v11 }
 0xa07   : > { %v6679_v1 = vpop.f32.mrf.mxu1  ;;  %2234 = vmatmul.mubr.bf16.gmra.mxu1 %v1926_v15  ;;  %v6707_v23 = vpop.f32.mrf.mxu0  ;;  %2283 = vmatmul.mubr.bf16.gmra.mxu0 %v1928_v16 }
 0xa08   : > { %v2277_v10 = vadd.f32 %v6705_v20, %v2228_v19  ;;  %v6680_v24 = vadd.f32 %v6679_v1, %v6678_v17  ;;  %2574 = vmatprep.mubr.bf16.mxu1 %v7927_v0  ;;  %v6708_v26 = vadd.f32 %v6707_v23, %v6706_v18  ;;  %v7460_v17 = vld [vmem:[#allocation2 + $0x170] ss:$12 sps:$4 sm:$0xff]  }
 0xa09   : > { %7035 = vmatprep.subr.bf16.mxu0 %v7460_v17 }
 0xa0a   : > { %v2231_v25 = vadd.f32 %v6680_v24, %v8346_v12  ;;  %v2291_v32 = vadd.f32 %v2277_v10, %v8303_v45  ;;  %v7441_v45 = vld [vmem:[#allocation2 + $0x154] ss:$12 sps:$4 sm:$0xff]   ;;  %7036 = vmatpush3.bf16.msra.mxu0 %v7460_v17 }
 0xa0b   : > { %2544 = vmatprep.subr.bf16.mxu1 %v7441_v45  ;;  %v7461_v45 = vld [vmem:[#allocation2 + $0x158] ss:$12 sps:$4 sm:$0xff]  }
 0xa0c   : > { %v2280_v27 = vadd.f32 %v6708_v26, %v2231_v25  ;;  %2297 = vadd.xlane.f32.xlu1 %v2291_v32  ;;  %2545 = vmatpush1.bf16.msra.mxu1 %v7439_v46  ;;  %v7462_v46 = vld [vmem:[#allocation2 + $0x140] ss:$12 sps:$4 sm:$0xff]  }
 0xa0d   : > { %2546 = vmatprep.subr.bf16.mxu1 %v7444_v47  ;;  %7037 = vmatprep.subr.bf16.mxu0 %v7461_v45  ;;  %v7463_v47 = vld [vmem:[#allocation2 + $0x128] ss:$12 sps:$4 sm:$0xff]  }
 0xa0e   : > { %v2292_v28 = vadd.f32 %v2280_v27, %v8300_v44  ;;  %7038 = vmatpush3.bf16.msra.mxu0 %v7461_v45 }
 0xa0f   : > { %7039 = vmatprep.subr.bf16.mxu0 %v7462_v46 }
 0xa10   : > { %2299 = vadd.xlane.f32.xlu1 %v2292_v28  ;;  %2547 = vmatpush1.bf16.msra.mxu1 %v7442_v48  ;;  %v7464_v48 = vld [vmem:[#allocation2 + $0x110] ss:$12 sps:$4 sm:$0xff]  }
 0xa11   : > { %2548 = vmatprep.subr.bf16.mxu1 %v7447_v49  ;;  %v7465_v49 = vld [vmem:[#allocation2 + $0xf8] ss:$12 sps:$4 sm:$0xff]  }
 0xa12   : > { %7040 = vmatpush3.bf16.msra.mxu0 %v7462_v46 }
 0xa13   : > { %7041 = vmatprep.subr.bf16.mxu0 %v7463_v47 }
 0xa14   : > { %2549 = vmatpush1.bf16.msra.mxu1 %v7445_v4  ;;  %v7466_v4 = vld [vmem:[#allocation2 + $0xe0] ss:$12 sps:$4 sm:$0xff]  }
 0xa15   : > { %2550 = vmatprep.subr.bf16.mxu1 %v7450_v51  ;;  %v7467_v51 = vld [vmem:[#allocation2 + $0xc8] ss:$12 sps:$4 sm:$0xff]  }
 0xa16   : > { %7042 = vmatpush3.bf16.msra.mxu0 %v7463_v47 }
 0xa17   : > { %7043 = vmatprep.subr.bf16.mxu0 %v7464_v48 }
 0xa18   : > { %2551 = vmatpush1.bf16.msra.mxu1 %v7448_v52 }
 0xa19   : > { %2552 = vmatprep.subr.bf16.mxu1 %v7453_v53 }
 0xa1a   : > { %7044 = vmatpush3.bf16.msra.mxu0 %v7464_v48 }
 0xa1b   : > { %7045 = vmatprep.subr.bf16.mxu0 %v7465_v49 }
 0xa1c   : > { %2553 = vmatpush1.bf16.msra.mxu1 %v7451_v54 }
 0xa1d   : > { %2554 = vmatprep.subr.bf16.mxu1 %v7456_v55 }
 0xa1e   : > { %7046 = vmatpush3.bf16.msra.mxu0 %v7465_v49 }
 0xa1f   : > { %7047 = vmatprep.subr.bf16.mxu0 %v7466_v4 }
 0xa20   : > { %2555 = vmatpush1.bf16.msra.mxu1 %v7454_v56 }
 0xa21   : > { %2556 = vmatprep.subr.bf16.mxu1 %v7459_v6 }
 0xa22   : > { %7048 = vmatpush3.bf16.msra.mxu0 %v7466_v4 }
 0xa23   : > { %7049 = vmatprep.subr.bf16.mxu0 %v7467_v51 }
 0xa24   : > { %2557 = vmatpush1.bf16.msra.mxu1 %v7457_v57 }
 0xa25   : > { %7061 = vmatprep.subr.bf16.mxu1 %v7928_v31 }
 0xa26   : > { %7050 = vmatpush3.bf16.msra.mxu0 %v7467_v51 }
 0xa27   : > { %7055 = vmatprep.subr.bf16.mxu0 %v7928_v31 }
 0xa95   : > { %v2298_v36 = vpop.xlane.xlu1 %2297 }
 0xa96   : > { %v2305_v59 = vmul.f32 0.0078125, %v2298_v36 }
 0xa98   : > { %v8353_v41 = vsub.f32 %v2291_v32, %v2305_v59  ;;  %v6334_v32 = vld [vmem:[%s8962_s12] ss:$0 sm:$0xff] }
 0xa99   : > { %v2300_v37 = vpop.xlane.xlu1 %2299 }
 0xa9a   : > { %v2306_v30 = vmul.f32 0.0078125, %v2300_v37  ;;  %v2313_v40 = vmul.f32 %v8353_v41, %v8353_v41 }
 0xa9c   : > { %v8357_v43 = vsub.f32 %v2292_v28, %v2306_v30  ;;  %2317 = vadd.xlane.f32.xlu1 %v2313_v40 }
 0xa9e   : > { %v2314_v44 = vmul.f32 %v8357_v43, %v8357_v43 }
 0xaa0   : > { %2319 = vadd.xlane.f32.xlu1 %v2314_v44 }
 0xac7   : > { %v6681_v42 = vpop.f32.mrf.mxu1  ;;  %v6709_v39 = vpop.f32.mrf.mxu0 }
 0xac9   : > { %v6682_v7 = vpop.f32.mrf.mxu1  ;;  %v6710_v58 = vpop.f32.mrf.mxu0 }
 0xaca   : > { %v6683_v8 = vadd.f32 %v6682_v7, %v6681_v42  ;;  %v6711_v2 = vadd.f32 %v6710_v58, %v6709_v39  ;;  %v6335_v7 = vld [vmem:[%s8952_s2 + $0x3] sm:$0x7] }
 0xacb   : > { %v6684_v61 = vpop.f32.mrf.mxu1  ;;  %v6712_v62 = vpop.f32.mrf.mxu0 }
 0xacc   : > { %v2236_v63 = vadd.f32 %v6683_v8, %v8346_v12 }
 0xacd   : > { %v6685_v3 = vpop.f32.mrf.mxu1  ;;  %v6713_v9 = vpop.f32.mrf.mxu0 }
 0xace   : > { %v2285_v13 = vadd.f32 %v6711_v2, %v2236_v63  ;;  %v6686_v14 = vadd.f32 %v6685_v3, %v6684_v61  ;;  %v6714_v11 = vadd.f32 %v6713_v9, %v6712_v62  ;;  %v8386_v63 = vrot.slane %v6335_v7, %v8106_v38 }
 0xad0   : > { %v2239_v33 = vadd.f32 %v6686_v14, %v8346_v12  ;;  %v2293_v5 = vadd.f32 %v2285_v13, %v8336_v21  ;;  %v6333_v21 = vld [vmem:[%s8961_s11] ss:$0 sm:$0xff]  ;;  %v8393_v13 = vrot.slane %v6335_v7, %v8100_v34 }
 0xad2   : > { %v2288_v15 = vadd.f32 %v6714_v11, %v2239_v33  ;;  %2301 = vadd.xlane.f32.xlu1 %v2293_v5 }
 0xad4   : > { %v2294_v16 = vadd.f32 %v2288_v15, %v8339_v22 }
 0xad6   : > { %2303 = vadd.xlane.f32.xlu1 %v2294_v16 }
 0xb25   : > { %v2318_v18 = vpop.xlane.xlu1 %2317 }
 0xb26   : > { %v2325_v19 = vmul.f32 0.0078125, %v2318_v18 }
 0xb28   : > { %v2329_v20 = vadd.f32 1e-05, %v2325_v19 }
 0xb29   : > { %v2320_v1 = vpop.xlane.xlu1 %2319 }
 0xb2a   : > { %7716 = vrsqrt.f32 %v2329_v20  ;;  %v2326_v23 = vmul.f32 0.0078125, %v2320_v1 }
 0xb2c   : > { %v2330_v10 = vadd.f32 1e-05, %v2326_v23 }
 0xb2e   : > { %7718 = vrsqrt.f32 %v2330_v10 }
 0xb37   : > { %v7717_v12 = vpop.eup %7716 }
 0xb38   : > { %v2337_v24 = vmul.f32 %v7717_v12, %v8353_v41  ;;  %v2410_v12 = vrot.slane %v6335_v7, %v8126_v50 }
 0xb3a   : > { %v2347_v26 = vmul.f32 %v6333_v21, %v2337_v24 }
 0xb3b   : > { %v7719_v22 = vpop.eup %7718 }
 0xb3c   : > { %v2338_v25 = vmul.f32 %v7719_v22, %v8357_v43  ;;  %v8374_v28 = vadd.f32 %v6334_v32, %v2347_v26 }
 0xb3e   : > { %v2348_v27 = vmul.f32 %v6333_v21, %v2338_v25 }
 0xb40   : > { %v8376_v29 = vadd.f32 %v6334_v32, %v2348_v27 }
 0xb42   : > { %v2361_v35 = vpack.c.bf16 %v8376_v29, %v8374_v28 }
 0xb44   : > { %2575 = vmatmul.mubr.bf16.vlgmr.msra.gmra.mxu1 %v2361_v35  ;;  %7051 = vmatprep.mubr.bf16.mxu0 %v2361_v35 }
 0xb45   : > { %2584 = vmatprep.mubr.bf16.mxu1 %v7927_v0 }
 0xb5b   : > { %v2302_v36 = vpop.xlane.xlu1 %2301 }
 0xb5c   : > { %v2307_v59 = vmul.f32 0.0078125, %v2302_v36 }
 0xb5e   : > { %v2311_v41 = vsub.f32 %v2293_v5, %v2307_v59 }
 0xb5f   : > { %v2304_v37 = vpop.xlane.xlu1 %2303 }
 0xb60   : > { %v2308_v30 = vmul.f32 0.0078125, %v2304_v37  ;;  %v2315_v40 = vmul.f32 %v2311_v41, %v2311_v41 }
 0xb62   : > { %v2312_v43 = vsub.f32 %v2294_v16, %v2308_v30  ;;  %2321 = vadd.xlane.f32.xlu0 %v2315_v40 }
 0xb64   : > { %v2316_v44 = vmul.f32 %v2312_v43, %v2312_v43 }
 0xb66   : > { %2323 = vadd.xlane.f32.xlu1 %v2316_v44 }
 0xbeb   : > { %v2322_v52 = vpop.xlane.xlu0 %2321 }
 0xbec   : > { %v2327_v53 = vmul.f32 0.0078125, %v2322_v52 }
 0xbee   : > { %v2331_v54 = vadd.f32 1e-05, %v2327_v53 }
 0xbef   : > { %v2324_v55 = vpop.xlane.xlu1 %2323 }
 0xbf0   : > { %7720 = vrsqrt.f32 %v2331_v54  ;;  %v2328_v56 = vmul.f32 0.0078125, %v2324_v55 }
 0xbf2   : > { %v2332_v6 = vadd.f32 1e-05, %v2328_v56 }
 0xbf4   : > { %7722 = vrsqrt.f32 %v2332_v6 }
 0xbfd   : > { %v7721_v57 = vpop.eup %7720 }
 0xbfe   : > { %v2339_v42 = vmul.f32 %v7721_v57, %v2311_v41 }
 0xc00   : > { %v2349_v8 = vmul.f32 %v6333_v21, %v2339_v42 }
 0xc01   : > { %v7723_v39 = vpop.eup %7722 }
 0xc02   : > { %v2340_v58 = vmul.f32 %v7723_v39, %v2312_v43  ;;  %v8388_v3 = vadd.f32 %v6334_v32, %v2349_v8 }
 0xc04   : > { %v2576_v61 = vpop.f32.mrf.mxu1  ;;  %v2350_v62 = vmul.f32 %v6333_v21, %v2340_v58 }
 0xc05   : > { %v2577_v11 = vadd.f32 %v2576_v61, %v8386_v63 }
 0xc06   : > { %v2578_v2 = vpop.f32.mrf.mxu1  ;;  %v8390_v9 = vadd.f32 %v6334_v32, %v2350_v62 }
 0xc07   : > { %v2579_v16 = vadd.f32 %v2578_v2, %v8393_v13 }
 0xc08   : > { %v2580_v14 = vpop.f32.mrf.mxu1  ;;  %v2362_v33 = vpack.c.bf16 %v8390_v9, %v8388_v3 }
 0xc09   : > { %v2581_v5 = vadd.f32 %v2580_v14, %v8386_v63 }
 0xc0a   : > { %v2582_v15 = vpop.f32.mrf.mxu1  ;;  %2585 = vmatmul.mubr.bf16.gmra.mxu1 %v2362_v33  ;;  %7052 = vmatmul.mubr.bf16.vlgmr.msra.gmra.mxu0 %v2362_v33 }
 0xc0b   : > { %v2644_v17 = vpack.c.bf16 %v2581_v5, %v2577_v11  ;;  %v2583_v18 = vadd.f32 %v2582_v15, %v8393_v13  ;;  %7057 = vmatprep.mubr.msk.bf16.mxu0 %vm7929_vm0, %v7928_v31  ;;  %7063 = vmatprep.mubr.msk.bf16.mxu1 %vm7929_vm0, %v7928_v31 }
 0xc0d   : > { %v2645_v19 = vpack.c.bf16 %v2583_v18, %v2579_v16  ;;  %2775 = vrot.lane.b32.xlu1 %v2644_v17, %s7930_s26 }
 0xc0f   : > { %2778 = vrot.lane.b32.xlu0 %v2645_v19, %s7930_s26  ;;  %v2654_v20 = vsel %vm780_vm1, %v2645_v19, 0 }
 0xc10   : > { %7056 = vmatpush3.bf16.xpose.msra.mxu0 %v2654_v20 }
 0xc11   : > { %7067 = vmatprep.subr.bf16.mxu0 %v7928_v31 }
 0xc17   : > { %7058 = vmatmul.mubr.msk.bf16.vlgmr.msra.gmra.mxu0 %vm780_vm1, %v2644_v17 }
 0xc18   : > { %7069 = vmatprep.mubr.msk.bf16.mxu0 %vm7929_vm0, %v7928_v31 }
 0xc7f   : > { %v2776_v10 = vpop.permute.xlu1 %2775 }
 0xc81   : > { %v2779_v1 = vpop.permute.xlu0 %2778 }
 0xc82   : > { %v2784_v23 = vsel %vm780_vm1, %v2779_v1, 0 }
 0xc83   : > { %7068 = vmatpush3.bf16.xpose.msra.mxu0 %v2784_v23 }
 0xc84   : > { %7079 = vmatprep.subr.bf16.mxu0 %v7928_v31 }
 0xc8a   : > { %7070 = vmatmul.mubr.msk.bf16.vlgmr.msra.gmra.mxu0 %vm780_vm1, %v2776_v10 }
 0xc8b   : > { %7087 = vmatprep.mubr.msk.bf16.mxu0 %vm7929_vm0, %v7928_v31 }
 0xcca   : > { %v7053_v24 = vpop.f32.mrf.mxu0  ;;  %v2586_v11 = vpop.f32.mrf.mxu1 }
 0xccb   : > { %v2638_v21 = vadd.f32 %v7053_v24, %v2410_v12  ;;  %v2587_v10 = vadd.f32 %v2586_v11, %v8386_v63 }
 0xccc   : > { %v2629_v22 = vpop.f32.mrf.mxu0  ;;  %v2588_v16 = vpop.f32.mrf.mxu1 }
 0xccd   : > { %v2630_v27 = vadd.f32 %v2629_v22, %v2410_v12  ;;  %v2589_v20 = vadd.f32 %v2588_v16, %v8393_v13 }
 0xcce   : > { %v7054_v25 = vpop.f32.mrf.mxu0  ;;  %v2590_v17 = vpop.f32.mrf.mxu1 }
 0xccf   : > { %v2641_v26 = vadd.f32 %v7054_v25, %v2410_v12  ;;  %v2591_v1 = vadd.f32 %v2590_v17, %v8386_v63  ;;  %v8448_v63 = vld [vmem:[%s8953_s3 + $0x78] sm:$0xff]  }
 0xcd0   : > { %v2632_v32 = vpop.f32.mrf.mxu0  ;;  %v2592_v18 = vpop.f32.mrf.mxu1  ;;  %7080 = vmatpush3.bf16.msra.mxu0 %v8448_v63 }
 0xcd1   : > { %v8418_v35 = vpack.c.bf16 %v2641_v26, %v2638_v21  ;;  %v2633_v36 = vadd.f32 %v2632_v32, %v2410_v12  ;;  %v2593_v19 = vadd.f32 %v2592_v18, %v8393_v13  ;;  %v8438_v24 = vpack.c.bf16 %v2591_v1, %v2587_v10  ;;  %7081 = vmatprep.subr.bf16.mxu0 %v7928_v31 }
 0xcd3   : > { %v2646_v59 = vpack.c.bf16 %v2633_v36, %v2630_v27  ;;  %v8432_v23 = vpack.c.bf16 %v2593_v19, %v2589_v20  ;;  %v8454_v27 = vld [vmem:[%s8953_s3 + $0x70] sm:$0xff]   ;;  %v8461_v36 = vld [vmem:[%s8953_s3 + $0x68] sm:$0xff]  }
 0xcd4   : > { %7082 = vmatpush3.bf16.msra.mxu0 %v8454_v27 }
 0xcd5   : > { %7062 = vmatpush3.bf16.msra.mxu1 %v2646_v59  ;;  %7083 = vmatprep.subr.bf16.mxu0 %v7928_v31 }
 0xcd6   : > { %7073 = vmatprep.subr.bf16.mxu1 %v7928_v31 }
 0xcd7   : > { %v2690_v41 = vpop.f32.mrf.mxu0 }
 0xcd8   : > { %v2697_v37 = vsel %vm828_vm2, %v2690_v41, -inf  ;;  %7084 = vmatpush3.bf16.msra.mxu0 %v8461_v36 }
 0xcd9   : > { %2698 = vmax.xlane.f32.xlu1 %v2697_v37  ;;  %v7059_v30 = vpop.f32.mrf.mxu0  ;;  %7085 = vmatprep.subr.bf16.mxu0 %v7928_v31 }
 0xcdb   : > { %v2693_v40 = vpop.f32.mrf.mxu0 }
 0xcdc   : > { %v2700_v43 = vsel %vm828_vm2, %v2693_v40, -inf }
 0xcdd   : > { %2701 = vmax.xlane.f32.xlu0 %v2700_v43  ;;  %v7060_v44 = vpop.f32.mrf.mxu0 }
 0xd4a   : > { %v2820_v45 = vpop.f32.mrf.mxu0 }
 0xd4b   : > { %v2827_v46 = vsel %vm828_vm2, %v2820_v45, -inf }
 0xd4c   : > { %2828 = vmax.xlane.f32.xlu0 %v2827_v46  ;;  %v7071_v47 = vpop.f32.mrf.mxu0 }
 0xd4d   : > { %v8477_v47 = vld [vmem:[%s8953_s3 + $0x50] sm:$0xff]  }
 0xd4e   : > { %v2823_v48 = vpop.f32.mrf.mxu0 }
 0xd4f   : > { %v2830_v49 = vsel %vm828_vm2, %v2823_v48, -inf }
 0xd50   : > { %2831 = vmax.xlane.f32.xlu1 %v2830_v49  ;;  %v7072_v4 = vpop.f32.mrf.mxu0  ;;  %v8493_v49 = vld [vmem:[%s8953_s3 + $0x40] sm:$0xff]  }
 0xd51   : > { %v7475_v4 = vld [vmem:[%s8953_s3 + $0x60] sm:$0xff]  }
 0xd52   : > { %7086 = vmatpush3.bf16.msra.mxu0 %v7475_v4 }
 0xd53   : > { %7103 = vmatprep.subr.bf16.mxu0 %v7928_v31 }
 0xd62   : > { %v2699_v51 = vpop.xlane.xlu1 %2698 }
 0xd63   : > { %v2703_v52 = vsub.f32 %v2690_v41, %v2699_v51 }
 0xd65   : > { %v2705_v53 = vmul.f32 1.442695, %v2703_v52 }
 0xd66   : > { %v2702_v54 = vpop.xlane.xlu0 %2701 }
 0xd67   : > { %7724 = vpow2.f32 %v2705_v53  ;;  %v2704_v55 = vsub.f32 %v2693_v40, %v2702_v54 }
 0xd69   : > { %v2707_v56 = vmul.f32 1.442695, %v2704_v55 }
 0xd6b   : > { %7726 = vpow2.f32 %v2707_v56 }
 0xd74   : > { %v7725_v6 = vpop.eup %7724 }
 0xd75   : > { %v2709_v57 = vsel %vm828_vm2, %v7725_v6, 0.0 }
 0xd76   : > { %2710 = vadd.xlane.f32.xlu0 %v2709_v57 }
 0xd78   : > { %v7727_v42 = vpop.eup %7726 }
 0xd79   : > { %v2712_v39 = vsel %vm828_vm2, %v7727_v42, 0.0 }
 0xd7a   : > { %2713 = vadd.xlane.f32.xlu1 %v2712_v39 }
 0xdd5   : > { %v2829_v7 = vpop.xlane.xlu0 %2828 }
 0xdd6   : > { %v2833_v58 = vsub.f32 %v2820_v45, %v2829_v7  ;;  %v8470_v45 = vld [vmem:[%s8953_s3 + $0x58] sm:$0xff]   ;;  %v3047_v7 = vsel %vm780_vm1, %v8432_v23, 0 }
 0xdd8   : > { %v2835_v8 = vmul.f32 1.442695, %v2833_v58 }
 0xdd9   : > { %v2832_v61 = vpop.xlane.xlu1 %2831 }
 0xdda   : > { %7728 = vpow2.f32 %v2835_v8  ;;  %v2834_v62 = vsub.f32 %v2823_v48, %v2832_v61  ;;  %v8486_v48 = vld [vmem:[%s8953_s3 + $0x48] sm:$0xff]  }
 0xddc   : > { %v2837_v2 = vmul.f32 1.442695, %v2834_v62 }
 0xdde   : > { %7730 = vpow2.f32 %v2837_v2 }
 0xde7   : > { %v7729_v14 = vpop.eup %7728 }
 0xde8   : > { %v2839_v33 = vsel %vm828_vm2, %v7729_v14, 0.0 }
 0xde9   : > { %2840 = vadd.xlane.f32.xlu0 %v2839_v33 }
 0xdeb   : > { %v7731_v5 = vpop.eup %7730 }
 0xdec   : > { %v2842_v15 = vsel %vm828_vm2, %v7731_v5, 0.0 }
 0xded   : > { %2843 = vadd.xlane.f32.xlu1 %v2842_v15 }
 0xdfe   : > { %3162 = vrot.lane.b32.xlu1 %v8432_v23, %s7930_s26 }
 0xdff   : > { %2851 = vrot.lane.b32.xlu0 %v2646_v59, %s7930_s26  ;;  %v2711_v12 = vpop.xlane.xlu0 %2710 }
 0xe00   : > { %7732 = vrcp.f32 %v2711_v12 }
 0xe02   : > { %3159 = vrot.lane.b32.xlu1 %v8438_v24, %s7930_s26 }
 0xe03   : > { %v2714_v21 = vpop.xlane.xlu1 %2713 }
 0xe04   : > { %7734 = vrcp.f32 %v2714_v21 }
 0xe0d   : > { %v7733_v13 = vpop.eup %7732 }
 0xe0e   : > { %v2717_v25 = vmul.f32 %v7733_v13, %v7725_v6 }
 0xe11   : > { %v7735_v22 = vpop.eup %7734 }
 0xe12   : > { %v2718_v26 = vmul.f32 %v7735_v22, %v7727_v42 }
 0xe14   : > { %v2719_v32 = vpack.c.bf16 %v2718_v26, %v2717_v25 }
 0xe16   : > { %7064 = vmatmul.mubr.msk.bf16.vlgmr.msra.gmra.mxu1 %vm828_vm2, %v2719_v32 }
 0xe17   : > { %7075 = vmatprep.mubr.msk.bf16.mxu1 %vm7929_vm0, %v7928_v31 }
 0xe72   : > { %v2841_v59 = vpop.xlane.xlu0 %2840 }
 0xe73   : > { %7736 = vrcp.f32 %v2841_v59 }
 0xe76   : > { %v2852_v41 = vpop.permute.xlu0 %2851  ;;  %v2844_v37 = vpop.xlane.xlu1 %2843 }
 0xe77   : > { %7738 = vrcp.f32 %v2844_v37  ;;  %7074 = vmatpush3.bf16.msra.mxu1 %v2852_v41 }
 0xe78   : > { %7091 = vmatprep.subr.bf16.mxu1 %v7928_v31 }
 0xe7a   : > { %v3163_v58 = vpop.permute.xlu1 %3162 }
 0xe7b   : > { %v3168_v8 = vsel %vm780_vm1, %v3163_v58, 0 }
 0xe7e   : > { %v3160_v61 = vpop.permute.xlu1 %3159 }
 0xe80   : > { %v7737_v30 = vpop.eup %7736 }
 0xe81   : > { %v2847_v43 = vmul.f32 %v7737_v30, %v7729_v14 }
 0xe84   : > { %v7739_v40 = vpop.eup %7738 }
 0xe85   : > { %v2848_v44 = vmul.f32 %v7739_v40, %v7731_v5 }
 0xe87   : > { %v2849_v46 = vpack.c.bf16 %v2848_v44, %v2847_v43 }
 0xe89   : > { %7076 = vmatmul.mubr.msk.bf16.vlgmr.msra.gmra.mxu1 %vm828_vm2, %v2849_v46 }
 0xe8a   : > { %7092 = vmatpush3.bf16.msra.mxu1 %v8470_v45  ;;  %7099 = vmatprep.mubr.msk.bf16.mxu1 %vm7929_vm0, %v7928_v31 }
 0xe8b   : > { %7093 = vmatprep.subr.bf16.mxu1 %v7928_v31 }
 0xe8e   : > { %7094 = vmatpush3.bf16.msra.mxu1 %v8477_v47 }
 0xe8f   : > { %7095 = vmatprep.subr.bf16.mxu1 %v7928_v31 }
 0xe92   : > { %7096 = vmatpush3.bf16.msra.mxu1 %v8486_v48 }
 0xe93   : > { %7097 = vmatprep.subr.bf16.mxu1 %v7928_v31 }
 0xe96   : > { %7098 = vmatpush3.bf16.msra.mxu1 %v8493_v49 }
 0xe97   : > { %7109 = vmatprep.subr.bf16.mxu1 %v7928_v31 }
 0xed6   : > { %v2757_v51 = vpop.f32.mrf.mxu1 }
 0xed8   : > { %v7065_v52 = vpop.f32.mrf.mxu1 }
 0xeda   : > { %v2760_v53 = vpop.f32.mrf.mxu1 }
 0xedb   : > { %v2764_v54 = vpack.c.bf16 %v2760_v53, %v2757_v51 }
 0xedc   : > { %v7066_v55 = vpop.f32.mrf.mxu1 }
 0xedd   : > { %7100 = vmatmul.mubr.msk.bf16.vlgmr.msra.gmra.mxu1 %vm780_vm1, %v2764_v54  ;;  %v8537_v54 = vld [vmem:[%s8954_s4 + $0x1] ss:$0 sm:$0xff] }
 0xede   : > { %7110 = vmatpush3.bf16.msra.mxu1 %v8418_v35  ;;  %7111 = vmatprep.mubr.msk.bf16.mxu1 %vm7929_vm0, %v7928_v31 }
 0xedf   : > { %7121 = vmatprep.subr.bf16.mxu1 %v7928_v31 }
 0xf49   : > { %v2891_v56 = vpop.f32.mrf.mxu1 }
 0xf4b   : > { %v7077_v6 = vpop.f32.mrf.mxu1 }
 0xf4d   : > { %v2894_v57 = vpop.f32.mrf.mxu1 }
 0xf4e   : > { %v2898_v42 = vpack.c.bf16 %v2894_v57, %v2891_v56 }
 0xf4f   : > { %v7078_v39 = vpop.f32.mrf.mxu1 }
 0xf50   : > { %7088 = vmatmul.mubr.msk.bf16.vlgmr.msra.gmra.mxu0 %vm780_vm1, %v2898_v42 }
 0xf51   : > { %7104 = vmatpush3.bf16.xpose.msra.mxu0 %v3047_v7  ;;  %7105 = vmatprep.mubr.msk.bf16.mxu0 %vm7929_vm0, %v7928_v31 }
 0xf52   : > { %7115 = vmatprep.subr.bf16.mxu0 %v7928_v31 }
 0xf58   : > { %7106 = vmatmul.mubr.msk.bf16.vlgmr.msra.gmra.mxu0 %vm780_vm1, %v8438_v24 }
 0xf59   : > { %7116 = vmatpush3.bf16.xpose.msra.mxu0 %v3168_v8  ;;  %7117 = vmatprep.mubr.msk.bf16.mxu0 %vm7929_vm0, %v7928_v31 }
 0xf5a   : > { %7127 = vmatprep.subr.bf16.mxu0 %v7928_v31 }
 0xf60   : > { %7118 = vmatmul.mubr.msk.bf16.vlgmr.msra.gmra.mxu0 %vm780_vm1, %v3160_v61 }
 0xf61   : > { %7128 = vmatpush3.bf16.msra.mxu0 %v8448_v63  ;;  %7135 = vmatprep.mubr.msk.bf16.mxu0 %vm7929_vm0, %v7928_v31 }
 0xf62   : > { %7129 = vmatprep.subr.bf16.mxu0 %v7928_v31 }
 0xf65   : > { %7130 = vmatpush3.bf16.msra.mxu0 %v8454_v27 }
 0xf66   : > { %7131 = vmatprep.subr.bf16.mxu0 %v7928_v31 }
 0xf69   : > { %7132 = vmatpush3.bf16.msra.mxu0 %v8461_v36 }
 0xf6a   : > { %7133 = vmatprep.subr.bf16.mxu0 %v7928_v31 }
 0xf6d   : > { %7134 = vmatpush3.bf16.msra.mxu0 %v7475_v4 }
 0xf9d   : > { %v3036_v62 = vpop.f32.mrf.mxu1 }
 0xf9f   : > { %v7101_v2 = vpop.f32.mrf.mxu1 }
 0xfa1   : > { %v3039_v14 = vpop.f32.mrf.mxu1 }
 0xfa3   : > { %v7102_v33 = vpop.f32.mrf.mxu1 }
0x1010   : > { %v2968_v11 = vpop.f32.mrf.mxu0 }
0x1011   : > { %v3037_v53 = vadd.f32 %v3036_v62, %v2968_v11 }
0x1012   : > { %v7089_v5 = vpop.f32.mrf.mxu0 }
0x1013   : > { %v3379_v6 = vadd.f32 %v8537_v54, %v3037_v53  ;;  %v7490_v53 = vld [vmem:[#allocation4 + $0x1c4] ss:$16 sps:$4 sm:$0xff]  }
0x1014   : > { %v2971_v15 = vpop.f32.mrf.mxu0 }
0x1015   : > { %v3040_v57 = vadd.f32 %v3039_v14, %v2971_v15  ;;  %v3383_v7 = vadd.f32 %v3379_v6, %v8374_v28  ;;  %v7488_v6 = vld [vmem:[#allocation4 + $0x1c0] ss:$16 sps:$4 sm:$0xff]  }
0x1016   : > { %v7090_v16 = vpop.f32.mrf.mxu0 }
0x1017   : > { %v3380_v39 = vadd.f32 %v8537_v54, %v3040_v57  ;;  %v7491_v57 = vld [vmem:[#allocation4 + $0x188] ss:$16 sps:$4 sm:$0xff]  }
0x1018   : > { %v3083_v17 = vpop.f32.mrf.mxu0 }
0x1019   : > { %v3090_v18 = vsel %vm828_vm2, %v3083_v17, -inf  ;;  %v3384_v58 = vadd.f32 %v3380_v39, %v8376_v29  ;;  %v7499_v39 = vld [vmem:[#allocation4 + $0x16c] ss:$16 sps:$4 sm:$0xff]  }
0x101a   : > { %3091 = vmax.xlane.f32.xlu1 %v3090_v18  ;;  %v7107_v19 = vpop.f32.mrf.mxu0 }
0x101c   : > { %v3086_v20 = vpop.f32.mrf.mxu0 }
0x101d   : > { %v3093_v1 = vsel %vm828_vm2, %v3086_v20, -inf }
0x101e   : > { %3094 = vmax.xlane.f32.xlu0 %v3093_v1  ;;  %v7108_v23 = vpop.f32.mrf.mxu0 }
0x1020   : > { %v3204_v10 = vpop.f32.mrf.mxu0 }
0x1021   : > { %v3211_v12 = vsel %vm828_vm2, %v3204_v10, -inf }
0x1022   : > { %3212 = vmax.xlane.f32.xlu0 %v3211_v12  ;;  %v7119_v24 = vpop.f32.mrf.mxu0 }
0x1024   : > { %v3207_v21 = vpop.f32.mrf.mxu0 }
0x1025   : > { %v3214_v13 = vsel %vm828_vm2, %v3207_v21, -inf }
0x1026   : > { %3215 = vmax.xlane.f32.xlu0 %v3214_v13  ;;  %v7120_v22 = vpop.f32.mrf.mxu0  ;;  %v7478_v13 = vld [vmem:[#allocation4 + $0x1ec] ss:$16 sps:$4 sm:$0xff]  }
0x1027   : > { %v7484_v22 = vld [vmem:[#allocation4 + $0x1e4] ss:$16 sps:$4 sm:$0xff]  }
0x1028   : > { %3673 = vmatprep.subr.bf16.mxu0 %v7484_v22 }
0x10a3   : > { %v3092_v25 = vpop.xlane.xlu1 %3091 }
0x10a4   : > { %v3096_v26 = vsub.f32 %v3083_v17, %v3092_v25 }
0x10a6   : > { %v3098_v32 = vmul.f32 1.442695, %v3096_v26 }
0x10a7   : > { %v3095_v63 = vpop.xlane.xlu0 %3094 }
0x10a8   : > { %7740 = vpow2.f32 %v3098_v32  ;;  %v3097_v27 = vsub.f32 %v3086_v20, %v3095_v63 }
0x10aa   : > { %v3100_v36 = vmul.f32 1.442695, %v3097_v27 }
0x10ab   : > { %v3213_v59 = vpop.xlane.xlu0 %3212 }
0x10ac   : > { %7742 = vpow2.f32 %v3100_v36  ;;  %v3217_v41 = vsub.f32 %v3204_v10, %v3213_v59 }
0x10ae   : > { %v3219_v37 = vmul.f32 1.442695, %v3217_v41 }
0x10af   : > { %v3216_v30 = vpop.xlane.xlu0 %3215 }
0x10b0   : > { %7744 = vpow2.f32 %v3219_v37  ;;  %v3218_v40 = vsub.f32 %v3207_v21, %v3216_v30  ;;  %v7481_v37 = vld [vmem:[#allocation4 + $0x1cc] ss:$16 sps:$4 sm:$0xff]  }
0x10b2   : > { %v3221_v43 = vmul.f32 1.442695, %v3218_v40  ;;  %v7479_v40 = vld [vmem:[#allocation4 + $0x1c8] ss:$16 sps:$4 sm:$0xff]  }
0x10b4   : > { %7746 = vpow2.f32 %v3221_v43  ;;  %v7487_v43 = vld [vmem:[#allocation4 + $0x1ac] ss:$16 sps:$4 sm:$0xff]  }
0x10b5   : > { %v7741_v44 = vpop.eup %7740 }
0x10b6   : > { %v3102_v46 = vsel %vm828_vm2, %v7741_v44, 0.0 }
0x10b7   : > { %3103 = vadd.xlane.f32.xlu1 %v3102_v46 }
0x10b9   : > { %v7743_v4 = vpop.eup %7742 }
0x10ba   : > { %v3105_v51 = vsel %vm828_vm2, %v7743_v4, 0.0 }
0x10bb   : > { %3106 = vadd.xlane.f32.xlu0 %v3105_v51  ;;  %v7485_v51 = vld [vmem:[#allocation4 + $0x1a8] ss:$16 sps:$4 sm:$0xff]  }
0x10bd   : > { %v7745_v52 = vpop.eup %7744 }
0x10be   : > { %v3223_v55 = vsel %vm828_vm2, %v7745_v52, 0.0 }
0x10bf   : > { %3224 = vadd.xlane.f32.xlu1 %v3223_v55  ;;  %v7493_v55 = vld [vmem:[#allocation4 + $0x18c] ss:$16 sps:$4 sm:$0xff]  }
0x10c1   : > { %v7747_v56 = vpop.eup %7746 }
0x10c2   : > { %v3226_v42 = vsel %vm828_vm2, %v7747_v56, 0.0 }
0x10c3   : > { %3227 = vadd.xlane.f32.xlu0 %v3226_v42  ;;  %v7496_v42 = vld [vmem:[#allocation4 + $0x1a4] ss:$16 sps:$4 sm:$0xff]  }
0x10c7   : > { %3391 = vadd.xlane.f32.xlu0 %v3383_v7 }
0x10cb   : > { %3393 = vadd.xlane.f32.xlu0 %v3384_v58 }
0x10d0   : > { %3235 = vrot.lane.b32.xlu1 %v8418_v35, %s7930_s26 }
0x1140   : > { %v3104_v8 = vpop.xlane.xlu1 %3103 }
0x1141   : > { %7748 = vrcp.f32 %v3104_v8  ;;  %v7502_v8 = vld [vmem:[#allocation4 + $0x184] ss:$16 sps:$4 sm:$0xff]  }
0x1144   : > { %v3107_v61 = vpop.xlane.xlu0 %3106 }
0x1145   : > { %7750 = vrcp.f32 %v3107_v61  ;;  %v7505_v61 = vld [vmem:[#allocation4 + $0x14c] ss:$16 sps:$4 sm:$0xff]  }
0x1148   : > { %v3225_v62 = vpop.xlane.xlu1 %3224 }
0x1149   : > { %7752 = vrcp.f32 %v3225_v62 }
0x114c   : > { %v3228_v2 = vpop.xlane.xlu0 %3227  ;;  %v3236_v19 = vpop.permute.xlu1 %3235 }
0x114d   : > { %7754 = vrcp.f32 %v3228_v2 }
0x114e   : > { %v7749_v14 = vpop.eup %7748 }
0x114f   : > { %v3110_v15 = vmul.f32 %v7749_v14, %v7741_v44  ;;  %v7500_v14 = vld [vmem:[#allocation4 + $0x180] ss:$16 sps:$4 sm:$0xff]  }
0x1150   : > { %v3392_v33 = vpop.xlane.xlu0 %3391 }
0x1151   : > { %v3399_v11 = vmul.f32 0.0078125, %v3392_v33  ;;  %v7503_v33 = vld [vmem:[#allocation4 + $0x148] ss:$16 sps:$4 sm:$0xff]  }
0x1152   : > { %v7751_v5 = vpop.eup %7750 }
0x1153   : > { %v8547_v28 = vsub.f32 %v3383_v7, %v3399_v11  ;;  %v3111_v29 = vmul.f32 %v7751_v5, %v7743_v4  ;;  %v7482_v4 = vld [vmem:[#allocation4 + $0x1e0] ss:$16 sps:$4 sm:$0xff]   ;;  %v7508_v11 = vld [vmem:[#allocation4 + $0x164] ss:$16 sps:$4 sm:$0xff]   ;;  %v7511_v5 = vld [vmem:[#allocation4 + $0x12c] ss:$16 sps:$4 sm:$0xff]  }
0x1154   : > { %v3394_v16 = vpop.xlane.xlu0 %3393  ;;  %v7494_v7 = vld [vmem:[#allocation4 + $0x1a0] ss:$16 sps:$4 sm:$0xff]  }
0x1155   : > { %v3400_v17 = vmul.f32 0.0078125, %v3394_v16  ;;  %v3407_v35 = vmul.f32 %v8547_v28, %v8547_v28  ;;  %v3112_v18 = vpack.c.bf16 %v3111_v29, %v3110_v15  ;;  %v7506_v16 = vld [vmem:[#allocation4 + $0x160] ss:$16 sps:$4 sm:$0xff]  }
0x1156   : > { %v7753_v1 = vpop.eup %7752 }
0x1157   : > { %v8551_v20 = vsub.f32 %v3384_v58, %v3400_v17  ;;  %3411 = vadd.xlane.f32.xlu0 %v3407_v35  ;;  %7112 = vmatmul.mubr.msk.bf16.vlgmr.msra.gmra.mxu1 %vm828_vm2, %v3112_v18  ;;  %v3231_v12 = vmul.f32 %v7753_v1, %v7745_v52  ;;  %v7497_v58 = vld [vmem:[#allocation4 + $0x168] ss:$16 sps:$4 sm:$0xff]   ;;  %v8578_v35 = vld [vmem:[%s8959_s9 + $0x1] ss:$0 sm:$0xff]  ;;  %v7514_v18 = vld [vmem:[#allocation4 + $0x144] ss:$16 sps:$4 sm:$0xff]  }
0x1158   : > { %7122 = vmatpush3.bf16.msra.mxu1 %v3236_v19  ;;  %7123 = vmatprep.mubr.msk.bf16.mxu1 %vm7929_vm0, %v7928_v31  ;;  %v7509_v17 = vld [vmem:[#allocation4 + $0x128] ss:$16 sps:$4 sm:$0xff]   ;;  %v7517_v19 = vld [vmem:[#allocation4 + $0x10c] ss:$16 sps:$4 sm:$0xff]  }
0x1159   : > { %v3408_v23 = vmul.f32 %v8551_v20, %v8551_v20  ;;  %7139 = vmatprep.subr.bf16.mxu1 %v7928_v31 }
0x115a   : > { %v7755_v10 = vpop.eup %7754 }
0x115b   : > { %3413 = vadd.xlane.f32.xlu0 %v3408_v23  ;;  %v3232_v24 = vmul.f32 %v7755_v10, %v7747_v56  ;;  %v8585_v10 = vld [vmem:[%s8960_s10 + $0x1] ss:$0 sm:$0xff] }
0x115d   : > { %v3233_v21 = vpack.c.bf16 %v3232_v24, %v3231_v12  ;;  %v7520_v12 = vld [vmem:[#allocation4 + $0x124] ss:$16 sps:$4 sm:$0xff]  }
0x115f   : > { %7124 = vmatmul.mubr.msk.bf16.vlgmr.msra.gmra.mxu1 %vm828_vm2, %v3233_v21 }
0x1160   : > { %7140 = vmatpush3.bf16.msra.mxu1 %v8470_v45  ;;  %7147 = vmatprep.mubr.msk.bf16.mxu1 %vm7929_vm0, %v7928_v31 }
0x1161   : > { %7141 = vmatprep.subr.bf16.mxu1 %v7928_v31 }
0x1164   : > { %7142 = vmatpush3.bf16.msra.mxu1 %v8477_v47  ;;  %v7476_v47 = vld [vmem:[#allocation4 + $0x1e8] ss:$16 sps:$4 sm:$0xff]  }
0x1165   : > { %7143 = vmatprep.subr.bf16.mxu1 %v7928_v31 }
0x1168   : > { %7144 = vmatpush3.bf16.msra.mxu1 %v8486_v48 }
0x1169   : > { %7145 = vmatprep.subr.bf16.mxu1 %v7928_v31 }
0x116c   : > { %7146 = vmatpush3.bf16.msra.mxu1 %v8493_v49 }
0x116d   : > { %3726 = vmatprep.subr.bf16.mxu1 %v7478_v13  ;;  %v7518_v13 = vld [vmem:[#allocation4 + $0x120] ss:$16 sps:$4 sm:$0xff]  }
0x11e0   : > { %v3412_v45 = vpop.xlane.xlu0 %3411 }
0x11e1   : > { %v3419_v27 = vmul.f32 0.0078125, %v3412_v45  ;;  %v7523_v45 = vld [vmem:[#allocation4 + $0x104] ss:$16 sps:$4 sm:$0xff]  }
0x11e3   : > { %v3423_v30 = vadd.f32 1e-05, %v3419_v27 }
0x11e4   : > { %v3414_v25 = vpop.xlane.xlu0 %3413 }
0x11e5   : > { %v3420_v32 = vmul.f32 0.0078125, %v3414_v25  ;;  %v7521_v25 = vld [vmem:[#allocation4 + $0x100] ss:$16 sps:$4 sm:$0xff]  }
0x11e7   : > { %v3424_v59 = vadd.f32 1e-05, %v3420_v32 }
0x11e9   : > { %7756 = vrsqrt.f32 %v3424_v59 }
0x11ea   : > { %7758 = vrsqrt.f32 %v3423_v30 }
0x11f6   : > { %v7757_v62 = vpop.eup %7756 }
0x11f7   : > { %v7759_v2 = vpop.eup %7758  ;;  %v3432_v15 = vmul.f32 %v7757_v62, %v8551_v20  ;;  %v7515_v20 = vld [vmem:[#allocation4 + $0x108] ss:$16 sps:$4 sm:$0xff]  }
0x11f8   : > { %v3431_v29 = vmul.f32 %v7759_v2, %v8547_v28  ;;  %v7512_v28 = vld [vmem:[#allocation4 + $0x140] ss:$16 sps:$4 sm:$0xff]   ;;  %v7535_v62 = vld [vmem:[#allocation6 + $0x1a8] sm:$0xff]  }
0x11f9   : > { %v3442_v1 = vmul.f32 %v8578_v35, %v3432_v15  ;;  %v7536_v2 = vld [vmem:[#allocation6 + $0x160] sm:$0xff]   ;;  %v7541_v15 = vld [vmem:[#allocation6 + $0x1d8] sm:$0xff]  }
0x11fa   : > { %v3441_v23 = vmul.f32 %v8578_v35, %v3431_v29  ;;  %v7542_v29 = vld [vmem:[#allocation6 + $0x118] sm:$0xff]  }
0x11fb   : > { %v8588_v24 = vadd.f32 %v8585_v10, %v3442_v1  ;;  %v7547_v1 = vld [vmem:[#allocation6 + $0x190] sm:$0xff]  }
0x11fc   : > { %v8591_v21 = vadd.f32 %v8585_v10, %v3441_v23  ;;  %v7548_v23 = vld [vmem:[#allocation6 + $0x148] sm:$0xff]  }
0x11fe   : > { %v3455_v22 = vpack.c.bf16 %v8588_v24, %v8591_v21 }
0x1217   : > { %v3150_v26 = vpop.f32.mrf.mxu1 }
0x1219   : > { %v7113_v63 = vpop.f32.mrf.mxu1 }
0x121b   : > { %v3153_v36 = vpop.f32.mrf.mxu1 }
0x121c   : > { %v3157_v41 = vpack.c.bf16 %v3153_v36, %v3150_v26 }
0x121d   : > { %v7114_v48 = vpop.f32.mrf.mxu1 }
0x121e   : > { %7148 = vmatmul.mubr.msk.bf16.vlgmr.msra.gmra.mxu1 %vm780_vm1, %v3157_v41 }
0x121f   : > { %3727 = vmatpush1.bf16.msra.mxu1 %v7476_v47  ;;  %v3275_v49 = vpop.f32.mrf.mxu1  ;;  %3758 = vmatprep.mubr.bf16.mxu1 %v7927_v0 }
0x1220   : > { %3728 = vmatprep.subr.bf16.mxu1 %v7481_v37 }
0x1221   : > { %v7125_v44 = vpop.f32.mrf.mxu1 }
0x1223   : > { %3729 = vmatpush1.bf16.msra.mxu1 %v7479_v40  ;;  %v3278_v46 = vpop.f32.mrf.mxu1 }
0x1224   : > { %v3282_v52 = vpack.c.bf16 %v3278_v46, %v3275_v49  ;;  %3730 = vmatprep.subr.bf16.mxu1 %v7487_v43 }
0x1225   : > { %v7126_v56 = vpop.f32.mrf.mxu1 }
0x1226   : > { %7136 = vmatmul.mubr.msk.bf16.vlgmr.msra.gmra.mxu0 %vm780_vm1, %v3282_v52  ;;  %v7525_v56 = vld [vmem:[#allocation6 + $0x1f8] sm:$0xff]  }
0x1227   : > { %3674 = vmatpush1.bf16.msra.mxu0 %v7482_v4  ;;  %3731 = vmatpush1.bf16.msra.mxu1 %v7485_v51 }
0x1228   : > { %3675 = vmatprep.subr.bf16.mxu0 %v7490_v53  ;;  %3732 = vmatprep.subr.bf16.mxu1 %v7493_v55 }
0x1229   : > { %3705 = vmatprep.mubr.bf16.mxu0 %v7927_v0 }
0x122b   : > { %3676 = vmatpush1.bf16.msra.mxu0 %v7488_v6  ;;  %3733 = vmatpush1.bf16.msra.mxu1 %v7491_v57  ;;  %v7527_v6 = vld [vmem:[#allocation6 + $0x1b8] sm:$0xff]   ;;  %v7528_v57 = vld [vmem:[#allocation6 + $0x170] sm:$0xff]  }
0x122c   : > { %3677 = vmatprep.subr.bf16.mxu0 %v7496_v42  ;;  %3734 = vmatprep.subr.bf16.mxu1 %v7499_v39  ;;  %v7529_v42 = vld [vmem:[#allocation6 + $0x1f0] sm:$0xff]  }
0x122d   : > { %v7530_v39 = vld [vmem:[#allocation6 + $0x130] sm:$0xff]  }
0x122f   : > { %3678 = vmatpush1.bf16.msra.mxu0 %v7494_v7  ;;  %3735 = vmatpush1.bf16.msra.mxu1 %v7497_v58  ;;  %v7531_v7 = vld [vmem:[#allocation6 + $0x1b0] sm:$0xff]   ;;  %v7532_v58 = vld [vmem:[#allocation6 + $0x168] sm:$0xff]  }
0x1230   : > { %3679 = vmatprep.subr.bf16.mxu0 %v7502_v8  ;;  %3736 = vmatprep.subr.bf16.mxu1 %v7505_v61  ;;  %v7533_v8 = vld [vmem:[#allocation6 + $0x1e8] sm:$0xff]  }
0x1231   : > { %v7534_v61 = vld [vmem:[#allocation6 + $0x128] sm:$0xff]  }
0x1233   : > { %3680 = vmatpush1.bf16.msra.mxu0 %v7500_v14  ;;  %3737 = vmatpush1.bf16.msra.mxu1 %v7503_v33  ;;  %v7537_v14 = vld [vmem:[#allocation6 + $0x1e0] sm:$0xff]  }
0x1234   : > { %3681 = vmatprep.subr.bf16.mxu0 %v7508_v11  ;;  %3738 = vmatprep.subr.bf16.mxu1 %v7511_v5  ;;  %v7538_v33 = vld [vmem:[#allocation6 + $0x120] sm:$0xff]   ;;  %v7540_v5 = vld [vmem:[#allocation6 + $0x158] sm:$0xff]  }
0x1235   : > { %v7539_v11 = vld [vmem:[#allocation6 + $0x1a0] sm:$0xff]  }
0x1237   : > { %3682 = vmatpush1.bf16.msra.mxu0 %v7506_v16  ;;  %3739 = vmatpush1.bf16.msra.mxu1 %v7509_v17  ;;  %v7543_v16 = vld [vmem:[#allocation6 + $0x198] sm:$0xff]   ;;  %v7544_v17 = vld [vmem:[#allocation6 + $0x150] sm:$0xff]  }
0x1238   : > { %3683 = vmatprep.subr.bf16.mxu0 %v7514_v18  ;;  %3740 = vmatprep.subr.bf16.mxu1 %v7517_v19  ;;  %v7545_v18 = vld [vmem:[#allocation6 + $0x1d0] sm:$0xff]  }
0x1239   : > { %v7546_v19 = vld [vmem:[#allocation6 + $0x110] sm:$0xff]  }
0x123b   : > { %3684 = vmatpush1.bf16.msra.mxu0 %v7512_v28  ;;  %3741 = vmatpush1.bf16.msra.mxu1 %v7515_v20  ;;  %v7549_v28 = vld [vmem:[#allocation6 + $0x1c8] sm:$0xff]  }
0x123c   : > { %3685 = vmatprep.subr.bf16.mxu0 %v7520_v12  ;;  %6789 = vmatprep.subr.bf16.mxu1 %v7525_v56  ;;  %v7550_v20 = vld [vmem:[#allocation6 + $0x108] sm:$0xff]  }
0x123d   : > { %v7551_v12 = vld [vmem:[#allocation6 + $0x188] sm:$0xff]  }
0x123e   : > { %3759 = vmatmul.mubr.bf16.vlgmr.msra.gmra.mxu1 %v3455_v22 }
0x123f   : > { %3686 = vmatpush1.bf16.msra.mxu0 %v7518_v13  ;;  %3768 = vmatprep.mubr.bf16.mxu1 %v7927_v0  ;;  %v7552_v13 = vld [vmem:[#allocation6 + $0x140] sm:$0xff]  }
0x1240   : > { %3687 = vmatprep.subr.bf16.mxu0 %v7523_v45  ;;  %6790 = vmatpush3.bf16.msra.mxu1 %v7527_v6  ;;  %v7554_v45 = vld [vmem:[#allocation6 + $0x100] sm:$0xff]  }
0x1241   : > { %6791 = vmatprep.subr.bf16.mxu1 %v7529_v42 }
0x1243   : > { %3688 = vmatpush1.bf16.msra.mxu0 %v7521_v25  ;;  %v7555_v25 = vld [vmem:[#allocation6 + $0x180] sm:$0xff]  }
0x1244   : > { %6792 = vmatpush3.bf16.msra.mxu1 %v7531_v7 }
0x1245   : > { %6793 = vmatprep.subr.bf16.mxu1 %v7533_v8 }
0x1246   : > { %3706 = vmatmul.mubr.bf16.vlgmr.msra.gmra.mxu0 %v3455_v22  ;;  %v7553_v22 = vld [vmem:[#allocation6 + $0x1c0] sm:$0xff]  }
0x1247   : > { %3715 = vmatprep.mubr.bf16.mxu0 %v7927_v0 }
0x1248   : > { %6794 = vmatpush3.bf16.msra.mxu1 %v7535_v62 }
0x1249   : > { %6795 = vmatprep.subr.bf16.mxu1 %v7537_v14 }
0x124c   : > { %6796 = vmatpush3.bf16.msra.mxu1 %v7539_v11 }
0x124d   : > { %6797 = vmatprep.subr.bf16.mxu1 %v7541_v15 }
0x1250   : > { %6798 = vmatpush3.bf16.msra.mxu1 %v7543_v16 }
0x1251   : > { %6799 = vmatprep.subr.bf16.mxu1 %v7545_v18 }
0x1254   : > { %6800 = vmatpush3.bf16.msra.mxu1 %v7547_v1 }
0x1255   : > { %6801 = vmatprep.subr.bf16.mxu1 %v7549_v28 }
0x1258   : > { %6802 = vmatpush3.bf16.msra.mxu1 %v7551_v12 }
0x1259   : > { %6803 = vmatprep.subr.bf16.mxu1 %v7553_v22 }
0x125c   : > { %6804 = vmatpush3.bf16.msra.mxu1 %v7555_v25 }
0x12de   : > { %v3364_v26 = vpop.f32.mrf.mxu1 }
0x12e0   : > { %v7149_v32 = vpop.f32.mrf.mxu1 }
0x12e2   : > { %v3367_v63 = vpop.f32.mrf.mxu1 }
0x12e4   : > { %v7150_v27 = vpop.f32.mrf.mxu1 }
0x12e6   : > { %v3320_v36 = vpop.f32.mrf.mxu0 }
0x12e7   : > { %v3365_v47 = vadd.f32 %v3364_v26, %v3320_v36 }
0x12e8   : > { %v7137_v59 = vpop.f32.mrf.mxu0 }
0x12e9   : > { %v3381_v41 = vadd.f32 %v8537_v54, %v3365_v47 }
0x12ea   : > { %v3323_v37 = vpop.f32.mrf.mxu0 }
0x12eb   : > { %v3368_v48 = vadd.f32 %v3367_v63, %v3323_v37  ;;  %v3385_v30 = vadd.f32 %v3381_v41, %v8388_v3 }
0x12ec   : > { %v7138_v49 = vpop.f32.mrf.mxu0 }
0x12ed   : > { %v3382_v40 = vadd.f32 %v8537_v54, %v3368_v48  ;;  %3395 = vadd.xlane.f32.xlu1 %v3385_v30  ;;  %v7524_v54 = vld [vmem:[#allocation6 + $0x178] sm:$0xff]  }
0x12ee   : > { %6761 = vmatprep.subr.bf16.mxu0 %v7524_v54 }
0x12ef   : > { %v3386_v43 = vadd.f32 %v3382_v40, %v8390_v9  ;;  %v7526_v9 = vld [vmem:[#allocation6 + $0x138] sm:$0xff]  }
0x12f0   : > { %6762 = vmatpush3.bf16.msra.mxu0 %v7526_v9 }
0x12f1   : > { %3397 = vadd.xlane.f32.xlu0 %v3386_v43  ;;  %6763 = vmatprep.subr.bf16.mxu0 %v7528_v57 }
0x12f4   : > { %6764 = vmatpush3.bf16.msra.mxu0 %v7530_v39 }
0x12f5   : > { %6765 = vmatprep.subr.bf16.mxu0 %v7532_v58 }
0x12f8   : > { %6766 = vmatpush3.bf16.msra.mxu0 %v7534_v61 }
0x12f9   : > { %6767 = vmatprep.subr.bf16.mxu0 %v7536_v2 }
0x12fc   : > { %6768 = vmatpush3.bf16.msra.mxu0 %v7538_v33 }
0x12fd   : > { %6769 = vmatprep.subr.bf16.mxu0 %v7540_v5 }
0x12fe   : > { %v3760_v47 = vpop.f32.mrf.mxu1 }
0x1300   : > { %6770 = vmatpush3.bf16.msra.mxu0 %v7542_v29  ;;  %v3762_v37 = vpop.f32.mrf.mxu1 }
0x1301   : > { %6771 = vmatprep.subr.bf16.mxu0 %v7544_v17 }
0x1304   : > { %6772 = vmatpush3.bf16.msra.mxu0 %v7546_v19 }
0x1305   : > { %6773 = vmatprep.subr.bf16.mxu0 %v7548_v23 }
0x1306   : > { %v3707_v59 = vpop.f32.mrf.mxu0 }
0x1308   : > { %6774 = vmatpush3.bf16.msra.mxu0 %v7550_v20  ;;  %v3709_v48 = vpop.f32.mrf.mxu0 }
0x1309   : > { %6775 = vmatprep.subr.bf16.mxu0 %v7552_v13 }
0x130a   : > { %v3711_v49 = vpop.f32.mrf.mxu0 }
0x130c   : > { %6776 = vmatpush3.bf16.msra.mxu0 %v7554_v45 }
0x1376   : > { %v3396_v44 = vpop.xlane.xlu1 %3395 }
0x1377   : > { %v3401_v46 = vmul.f32 0.0078125, %v3396_v44 }
0x1379   : > { %v8601_v4 = vsub.f32 %v3385_v30, %v3401_v46  ;;  %v3764_v30 = vpop.f32.mrf.mxu1  ;;  %v3713_v46 = vpop.f32.mrf.mxu0 }
0x137a   : > { %v3398_v51 = vpop.xlane.xlu0 %3397 }
0x137b   : > { %v3402_v52 = vmul.f32 0.0078125, %v3398_v51  ;;  %v3409_v53 = vmul.f32 %v8601_v4, %v8601_v4  ;;  %v3766_v44 = vpop.f32.mrf.mxu1 }
0x137d   : > { %v8605_v55 = vsub.f32 %v3386_v43, %v3402_v52  ;;  %3415 = vadd.xlane.f32.xlu0 %v3409_v53  ;;  %v6402_v43 = vld [vmem:[%s8956_s6 + $0x4] sm:$0xf] }
0x137e   : > { %v3508_v52 = vrot.slane %v6402_v43, %v8322_v60  ;;  %v3500_v53 = vrot.slane %v6402_v43, %v8100_v34  ;;  %v3504_v8 = vrot.slane %v6402_v43, %v8126_v50 }
0x137f   : > { %v3410_v3 = vmul.f32 %v8605_v55, %v8605_v55 }
0x1380   : > { %v3767_v54 = vadd.f32 %v3766_v44, %v3508_v52  ;;  %v3714_v56 = vadd.f32 %v3713_v46, %v3500_v53  ;;  %v3763_v57 = vadd.f32 %v3762_v37, %v3508_v52  ;;  %v3710_v42 = vadd.f32 %v3709_v48, %v3500_v53 }
0x1381   : > { %3417 = vadd.xlane.f32.xlu0 %v3410_v3  ;;  %v3765_v14 = vadd.f32 %v3764_v30, %v3504_v8  ;;  %v3761_v15 = vadd.f32 %v3760_v47, %v3504_v8 }
0x1382   : > { %v3786_v7 = vmax.f32 %v3767_v54, 0.0  ;;  %v3784_v58 = vmax.f32 %v3714_v56, 0.0  ;;  %v3782_v2 = vmax.f32 %v3763_v57, 0.0  ;;  %v8631_v54 = vld [vmem:[%s8958_s8 + $0x1] ss:$0 sm:$0xff] }
0x1383   : > { %v3785_v16 = vmax.f32 %v3765_v14, 0.0  ;;  %v3781_v18 = vmax.f32 %v3761_v15, 0.0 }
0x1385   : > { %v3797_v19 = vpack.c.bf16 %v3785_v16, %v3781_v18  ;;  %v7558_v16 = vld [vmem:[#allocation2 + $0x22c] ss:$12 sps:$4 sm:$0xff]  }
0x1386   : > { %4419 = vmatprep.subr.bf16.mxu0 %v7558_v16 }
0x1406   : > { %v3416_v26 = vpop.xlane.xlu0 %3415 }
0x1407   : > { %v3421_v32 = vmul.f32 0.0078125, %v3416_v26 }
0x1409   : > { %v3425_v63 = vadd.f32 1e-05, %v3421_v32 }
0x140a   : > { %v3418_v27 = vpop.xlane.xlu0 %3417 }
0x140b   : > { %7760 = vrsqrt.f32 %v3425_v63  ;;  %v3422_v36 = vmul.f32 0.0078125, %v3418_v27 }
0x140d   : > { %v3426_v41 = vadd.f32 1e-05, %v3422_v36 }
0x140f   : > { %7762 = vrsqrt.f32 %v3426_v41 }
0x1418   : > { %v7761_v40 = vpop.eup %7760 }
0x1419   : > { %v3433_v51 = vmul.f32 %v7761_v40, %v8601_v4  ;;  %v3496_v4 = vrot.slane %v6402_v43, %v8106_v38 }
0x141b   : > { %v3443_v6 = vmul.f32 %v8578_v35, %v3433_v51  ;;  %v3712_v33 = vadd.f32 %v3711_v49, %v3496_v4  ;;  %v3708_v29 = vadd.f32 %v3707_v59, %v3496_v4 }
0x141c   : > { %v7763_v3 = vpop.eup %7762 }
0x141d   : > { %v3434_v9 = vmul.f32 %v7763_v3, %v8605_v55  ;;  %v8621_v61 = vadd.f32 %v8585_v10, %v3443_v6  ;;  %v3780_v55 = vmax.f32 %v3710_v42, 0.0  ;;  %v3783_v17 = vmax.f32 %v3712_v33, 0.0 }
0x141f   : > { %v3444_v39 = vmul.f32 %v8578_v35, %v3434_v9  ;;  %v3798_v35 = vpack.c.bf16 %v3786_v7, %v3782_v2  ;;  %v3796_v5 = vpack.c.bf16 %v3784_v58, %v3780_v55 }
0x1421   : > { %v8624_v62 = vadd.f32 %v8585_v10, %v3444_v39  ;;  %v3779_v10 = vmax.f32 %v3708_v29, 0.0  ;;  %v7556_v29 = vld [vmem:[#allocation2 + $0x228] ss:$12 sps:$4 sm:$0xff]  }
0x1423   : > { %v3456_v11 = vpack.c.bf16 %v8624_v62, %v8621_v61  ;;  %v3795_v1 = vpack.c.bf16 %v3783_v17, %v3779_v10 }
0x1425   : > { %3716 = vmatmul.mubr.bf16.gmra.mxu0 %v3456_v11  ;;  %3769 = vmatmul.mubr.bf16.gmra.mxu1 %v3456_v11 }
0x1426   : > { %4100 = vmatprep.mubr.bf16.mxu0 %v3796_v5  ;;  %4149 = vmatprep.mubr.bf16.mxu1 %v3798_v35 }
0x142d   : > { %4101 = vmatmul.mubr.bf16.vlgmr.msra.gmra.mxu0 %v3795_v1  ;;  %4150 = vmatmul.mubr.bf16.vlgmr.msra.gmra.mxu1 %v3797_v19 }
0x142e   : > { %4420 = vmatpush1.bf16.msra.mxu0 %v7556_v29 }
0x14e5   : > { %v3717_v23 = vpop.f32.mrf.mxu0  ;;  %v3770_v28 = vpop.f32.mrf.mxu1 }
0x14e6   : > { %v3718_v63 = vadd.f32 %v3717_v23, %v3496_v4  ;;  %v3771_v27 = vadd.f32 %v3770_v28, %v3504_v8 }
0x14e7   : > { %v3719_v20 = vpop.f32.mrf.mxu0  ;;  %v3772_v12 = vpop.f32.mrf.mxu1 }
0x14e8   : > { %v3720_v45 = vadd.f32 %v3719_v20, %v3500_v53  ;;  %v3773_v25 = vadd.f32 %v3772_v12, %v3508_v52  ;;  %v3787_v51 = vmax.f32 %v3718_v63, 0.0  ;;  %v3789_v3 = vmax.f32 %v3771_v27, 0.0  ;;  %v7559_v20 = vld [vmem:[#allocation2 + $0x210] ss:$12 sps:$4 sm:$0xff]  }
0x14e9   : > { %v3721_v13 = vpop.f32.mrf.mxu0  ;;  %v3774_v22 = vpop.f32.mrf.mxu1  ;;  %v7564_v12 = vld [vmem:[#allocation2 + $0x1fc] ss:$12 sps:$4 sm:$0xff]  }
0x14ea   : > { %v3722_v26 = vadd.f32 %v3721_v13, %v3496_v4  ;;  %v3775_v32 = vadd.f32 %v3774_v22, %v3504_v8  ;;  %v3788_v40 = vmax.f32 %v3720_v45, 0.0  ;;  %v3790_v43 = vmax.f32 %v3773_v25, 0.0  ;;  %v7562_v13 = vld [vmem:[#allocation2 + $0x1f8] ss:$12 sps:$4 sm:$0xff]   ;;  %v7565_v45 = vld [vmem:[#allocation2 + $0x1e0] ss:$12 sps:$4 sm:$0xff]  }
0x14eb   : > { %v3723_v36 = vpop.f32.mrf.mxu0  ;;  %v3776_v47 = vpop.f32.mrf.mxu1  ;;  %v7567_v22 = vld [vmem:[#allocation2 + $0x1e4] ss:$12 sps:$4 sm:$0xff]   ;;  %v7570_v25 = vld [vmem:[#allocation2 + $0x1cc] ss:$12 sps:$4 sm:$0xff]   ;;  %v7576_v27 = vld [vmem:[#allocation2 + $0x19c] ss:$12 sps:$4 sm:$0xff]  }
0x14ec   : > { %v3724_v59 = vadd.f32 %v3723_v36, %v3500_v53  ;;  %v3777_v41 = vadd.f32 %v3776_v47, %v3508_v52  ;;  %v3791_v37 = vmax.f32 %v3722_v26, 0.0  ;;  %v3793_v48 = vmax.f32 %v3775_v32, 0.0  ;;  %v7568_v26 = vld [vmem:[#allocation2 + $0x1c8] ss:$12 sps:$4 sm:$0xff]   ;;  %v7571_v63 = vld [vmem:[#allocation2 + $0x1b0] ss:$12 sps:$4 sm:$0xff]  }
0x14ed   : > { %v6777_v30 = vpop.f32.mrf.mxu0  ;;  %v6805_v49 = vpop.f32.mrf.mxu1  ;;  %v7573_v32 = vld [vmem:[#allocation2 + $0x1b4] ss:$12 sps:$4 sm:$0xff]   ;;  %v7574_v36 = vld [vmem:[#allocation2 + $0x198] ss:$12 sps:$4 sm:$0xff]  }
0x14ee   : > { %v3792_v44 = vmax.f32 %v3724_v59, 0.0  ;;  %v3794_v46 = vmax.f32 %v3777_v41, 0.0  ;;  %v3799_v57 = vpack.c.bf16 %v3791_v37, %v3787_v51  ;;  %v3801_v42 = vpack.c.bf16 %v3793_v48, %v3789_v3  ;;  %v7579_v47 = vld [vmem:[#allocation2 + $0x184] ss:$12 sps:$4 sm:$0xff]   ;;  %v7577_v59 = vld [vmem:[#allocation2 + $0x180] ss:$12 sps:$4 sm:$0xff]  }
0x14ef   : > { %v6778_v56 = vpop.f32.mrf.mxu0  ;;  %v6806_v9 = vpop.f32.mrf.mxu1 }
0x14f0   : > { %v3800_v6 = vpack.c.bf16 %v3792_v44, %v3788_v40  ;;  %v3802_v53 = vpack.c.bf16 %v3794_v46, %v3790_v43  ;;  %v6779_v52 = vadd.f32 %v6778_v56, %v6777_v30  ;;  %v6807_v8 = vadd.f32 %v6806_v9, %v6805_v49 }
0x14f1   : > { %v6780_v39 = vpop.f32.mrf.mxu0  ;;  %v6808_v7 = vpop.f32.mrf.mxu1 }
0x14f2   : > { %v4103_v58 = vadd.f32 %v6779_v52, %v8631_v54  ;;  %4108 = vmatprep.mubr.bf16.mxu0 %v3800_v6  ;;  %4157 = vmatprep.mubr.bf16.mxu1 %v3802_v53 }
0x14f3   : > { %v6781_v4 = vpop.f32.mrf.mxu0  ;;  %4109 = vmatmul.mubr.bf16.gmra.mxu0 %v3799_v57  ;;  %v6809_v2 = vpop.f32.mrf.mxu1  ;;  %4158 = vmatmul.mubr.bf16.gmra.mxu1 %v3801_v42 }
0x14f4   : > { %v4152_v55 = vadd.f32 %v6807_v8, %v4103_v58  ;;  %v6782_v14 = vadd.f32 %v6781_v4, %v6780_v39  ;;  %4451 = vmatprep.mubr.bf16.mxu0 %v7927_v0  ;;  %v6810_v11 = vadd.f32 %v6809_v2, %v6808_v7  ;;  %v7580_v39 = vld [vmem:[#allocation2 + $0x230] ss:$12 sps:$4 sm:$0xff]  }
0x14f5   : > { %7151 = vmatprep.subr.bf16.mxu1 %v7580_v39 }
0x14f6   : > { %v4106_v33 = vadd.f32 %v6782_v14, %v8631_v54  ;;  %v4166_v35 = vadd.f32 %v4152_v55, %v8591_v21  ;;  %v7561_v21 = vld [vmem:[#allocation2 + $0x214] ss:$12 sps:$4 sm:$0xff]   ;;  %7152 = vmatpush3.bf16.msra.mxu1 %v7580_v39 }
0x14f7   : > { %4421 = vmatprep.subr.bf16.mxu0 %v7561_v21  ;;  %v7581_v21 = vld [vmem:[#allocation2 + $0x218] ss:$12 sps:$4 sm:$0xff]  }
0x14f8   : > { %v4155_v5 = vadd.f32 %v6810_v11, %v4106_v33  ;;  %4174 = vadd.xlane.f32.xlu0 %v4166_v35  ;;  %4422 = vmatpush1.bf16.msra.mxu0 %v7559_v20  ;;  %v7582_v20 = vld [vmem:[#allocation2 + $0x200] ss:$12 sps:$4 sm:$0xff]  }
0x14f9   : > { %4423 = vmatprep.subr.bf16.mxu0 %v7564_v12  ;;  %7153 = vmatprep.subr.bf16.mxu1 %v7581_v21  ;;  %v7583_v12 = vld [vmem:[#allocation2 + $0x1e8] ss:$12 sps:$4 sm:$0xff]  }
0x14fa   : > { %v4167_v15 = vadd.f32 %v4155_v5, %v8588_v24  ;;  %7154 = vmatpush3.bf16.msra.mxu1 %v7581_v21 }
0x14fb   : > { %7155 = vmatprep.subr.bf16.mxu1 %v7582_v20 }
0x14fc   : > { %4176 = vadd.xlane.f32.xlu0 %v4167_v15  ;;  %4424 = vmatpush1.bf16.msra.mxu0 %v7562_v13  ;;  %v7584_v13 = vld [vmem:[#allocation2 + $0x1d0] ss:$12 sps:$4 sm:$0xff]  }
0x14fd   : > { %4425 = vmatprep.subr.bf16.mxu0 %v7567_v22  ;;  %v7585_v22 = vld [vmem:[#allocation2 + $0x1b8] ss:$12 sps:$4 sm:$0xff]  }
0x14fe   : > { %7156 = vmatpush3.bf16.msra.mxu1 %v7582_v20 }
0x14ff   : > { %7157 = vmatprep.subr.bf16.mxu1 %v7583_v12 }
0x1500   : > { %4426 = vmatpush1.bf16.msra.mxu0 %v7565_v45  ;;  %v7586_v45 = vld [vmem:[#allocation2 + $0x1a0] ss:$12 sps:$4 sm:$0xff]  }
0x1501   : > { %4427 = vmatprep.subr.bf16.mxu0 %v7570_v25  ;;  %v7587_v25 = vld [vmem:[#allocation2 + $0x188] ss:$12 sps:$4 sm:$0xff]  }
0x1502   : > { %7158 = vmatpush3.bf16.msra.mxu1 %v7583_v12 }
0x1503   : > { %7159 = vmatprep.subr.bf16.mxu1 %v7584_v13 }
0x1504   : > { %4428 = vmatpush1.bf16.msra.mxu0 %v7568_v26 }
0x1505   : > { %4429 = vmatprep.subr.bf16.mxu0 %v7573_v32 }
0x1506   : > { %7160 = vmatpush3.bf16.msra.mxu1 %v7584_v13 }
0x1507   : > { %7161 = vmatprep.subr.bf16.mxu1 %v7585_v22 }
0x1508   : > { %4430 = vmatpush1.bf16.msra.mxu0 %v7571_v63 }
0x1509   : > { %4431 = vmatprep.subr.bf16.mxu0 %v7576_v27 }
0x150a   : > { %7162 = vmatpush3.bf16.msra.mxu1 %v7585_v22 }
0x150b   : > { %7163 = vmatprep.subr.bf16.mxu1 %v7586_v45 }
0x150c   : > { %4432 = vmatpush1.bf16.msra.mxu0 %v7574_v36 }
0x150d   : > { %4433 = vmatprep.subr.bf16.mxu0 %v7579_v47 }
0x150e   : > { %7164 = vmatpush3.bf16.msra.mxu1 %v7586_v45 }
0x150f   : > { %7165 = vmatprep.subr.bf16.mxu1 %v7587_v25 }
0x1510   : > { %4434 = vmatpush1.bf16.msra.mxu0 %v7577_v59 }
0x1511   : > { %7177 = vmatprep.subr.bf16.mxu0 %v7928_v31 }
0x1512   : > { %7166 = vmatpush3.bf16.msra.mxu1 %v7587_v25 }
0x1513   : > { %7171 = vmatprep.subr.bf16.mxu1 %v7928_v31 }
0x1581   : > { %v4175_v17 = vpop.xlane.xlu0 %4174 }
0x1582   : > { %v4182_v18 = vmul.f32 0.0078125, %v4175_v17 }
0x1584   : > { %v8638_v10 = vsub.f32 %v4166_v35, %v4182_v18  ;;  %v6472_v35 = vld [vmem:[%s8962_s12 + $0x1] ss:$0 sm:$0xff] }
0x1585   : > { %v4177_v19 = vpop.xlane.xlu0 %4176 }
0x1586   : > { %v4183_v1 = vmul.f32 0.0078125, %v4177_v19  ;;  %v4190_v23 = vmul.f32 %v8638_v10, %v8638_v10 }
0x1588   : > { %v8642_v28 = vsub.f32 %v4167_v15, %v4183_v1  ;;  %4194 = vadd.xlane.f32.xlu0 %v4190_v23 }
0x158a   : > { %v4191_v24 = vmul.f32 %v8642_v28, %v8642_v28 }
0x158c   : > { %4196 = vadd.xlane.f32.xlu0 %v4191_v24 }
0x15b3   : > { %v6783_v41 = vpop.f32.mrf.mxu0  ;;  %v6811_v37 = vpop.f32.mrf.mxu1 }
0x15b5   : > { %v6784_v48 = vpop.f32.mrf.mxu0  ;;  %v6812_v30 = vpop.f32.mrf.mxu1 }
0x15b6   : > { %v6785_v49 = vadd.f32 %v6784_v48, %v6783_v41  ;;  %v6813_v46 = vadd.f32 %v6812_v30, %v6811_v37  ;;  %v6473_v48 = vld [vmem:[%s8952_s2 + $0x6] sm:$0x7] }
0x15b7   : > { %v6786_v40 = vpop.f32.mrf.mxu0  ;;  %v6814_v43 = vpop.f32.mrf.mxu1 }
0x15b8   : > { %v4111_v44 = vadd.f32 %v6785_v49, %v8631_v54 }
0x15b9   : > { %v6787_v51 = vpop.f32.mrf.mxu0  ;;  %v6815_v3 = vpop.f32.mrf.mxu1 }
0x15ba   : > { %v4160_v56 = vadd.f32 %v6813_v46, %v4111_v44  ;;  %v6788_v9 = vadd.f32 %v6787_v51, %v6786_v40  ;;  %v6816_v53 = vadd.f32 %v6815_v3, %v6814_v43  ;;  %v8671_v44 = vrot.slane %v6473_v48, %v8106_v38 }
0x15bc   : > { %v4114_v6 = vadd.f32 %v6788_v9, %v8631_v54  ;;  %v4168_v52 = vadd.f32 %v4160_v56, %v8621_v61  ;;  %v6471_v61 = vld [vmem:[%s8961_s11 + $0x1] ss:$0 sm:$0xff]  ;;  %v8678_v56 = vrot.slane %v6473_v48, %v8100_v34 }
0x15be   : > { %v4163_v57 = vadd.f32 %v6816_v53, %v4114_v6  ;;  %4178 = vadd.xlane.f32.xlu0 %v4168_v52 }
0x15c0   : > { %v4169_v42 = vadd.f32 %v4163_v57, %v8624_v62 }
0x15c2   : > { %4180 = vadd.xlane.f32.xlu0 %v4169_v42 }
0x1611   : > { %v4195_v7 = vpop.xlane.xlu0 %4194 }
0x1612   : > { %v4202_v58 = vmul.f32 0.0078125, %v4195_v7 }
0x1614   : > { %v4206_v8 = vadd.f32 1e-05, %v4202_v58 }
0x1615   : > { %v4197_v4 = vpop.xlane.xlu0 %4196 }
0x1616   : > { %7764 = vrsqrt.f32 %v4206_v8  ;;  %v4203_v2 = vmul.f32 0.0078125, %v4197_v4 }
0x1618   : > { %v4207_v55 = vadd.f32 1e-05, %v4203_v2 }
0x161a   : > { %7766 = vrsqrt.f32 %v4207_v55 }
0x1623   : > { %v7765_v54 = vpop.eup %7764 }
0x1624   : > { %v4214_v14 = vmul.f32 %v7765_v54, %v8638_v10  ;;  %v4287_v54 = vrot.slane %v6473_v48, %v8126_v50 }
0x1626   : > { %v4224_v11 = vmul.f32 %v6471_v61, %v4214_v14 }
0x1627   : > { %v7767_v62 = vpop.eup %7766 }
0x1628   : > { %v4215_v33 = vmul.f32 %v7767_v62, %v8642_v28  ;;  %v8659_v15 = vadd.f32 %v6472_v35, %v4224_v11 }
0x162a   : > { %v4225_v5 = vmul.f32 %v6471_v61, %v4215_v33 }
0x162c   : > { %v8661_v29 = vadd.f32 %v6472_v35, %v4225_v5 }
0x162e   : > { %v4238_v16 = vpack.c.bf16 %v8661_v29, %v8659_v15 }
0x1630   : > { %4452 = vmatmul.mubr.bf16.vlgmr.msra.gmra.mxu0 %v4238_v16  ;;  %7167 = vmatprep.mubr.bf16.mxu1 %v4238_v16 }
0x1631   : > { %4461 = vmatprep.mubr.bf16.mxu0 %v7927_v0 }
0x1647   : > { %v4179_v17 = vpop.xlane.xlu0 %4178 }
0x1648   : > { %v4184_v18 = vmul.f32 0.0078125, %v4179_v17 }
0x164a   : > { %v4188_v10 = vsub.f32 %v4168_v52, %v4184_v18 }
0x164b   : > { %v4181_v19 = vpop.xlane.xlu0 %4180 }
0x164c   : > { %v4185_v1 = vmul.f32 0.0078125, %v4181_v19  ;;  %v4192_v23 = vmul.f32 %v4188_v10, %v4188_v10 }
0x164e   : > { %v4189_v28 = vsub.f32 %v4169_v42, %v4185_v1  ;;  %4198 = vadd.xlane.f32.xlu1 %v4192_v23 }
0x1650   : > { %v4193_v24 = vmul.f32 %v4189_v28, %v4189_v28 }
0x1652   : > { %4200 = vadd.xlane.f32.xlu0 %v4193_v24 }
0x16d7   : > { %v4199_v26 = vpop.xlane.xlu1 %4198 }
0x16d8   : > { %v4204_v32 = vmul.f32 0.0078125, %v4199_v26 }
0x16da   : > { %v4208_v63 = vadd.f32 1e-05, %v4204_v32 }
0x16db   : > { %v4201_v27 = vpop.xlane.xlu0 %4200 }
0x16dc   : > { %7768 = vrsqrt.f32 %v4208_v63  ;;  %v4205_v36 = vmul.f32 0.0078125, %v4201_v27 }
0x16de   : > { %v4209_v47 = vadd.f32 1e-05, %v4205_v36 }
0x16e0   : > { %7770 = vrsqrt.f32 %v4209_v47 }
0x16e9   : > { %v7769_v59 = vpop.eup %7768 }
0x16ea   : > { %v4216_v41 = vmul.f32 %v7769_v59, %v4188_v10 }
0x16ec   : > { %v4226_v49 = vmul.f32 %v6471_v61, %v4216_v41 }
0x16ed   : > { %v7771_v37 = vpop.eup %7770 }
0x16ee   : > { %v4217_v30 = vmul.f32 %v7771_v37, %v4189_v28  ;;  %v8673_v51 = vadd.f32 %v6472_v35, %v4226_v49 }
0x16f0   : > { %v4453_v40 = vpop.f32.mrf.mxu0  ;;  %v4227_v43 = vmul.f32 %v6471_v61, %v4217_v30 }
0x16f1   : > { %v4454_v53 = vadd.f32 %v4453_v40, %v8671_v44 }
0x16f2   : > { %v4455_v46 = vpop.f32.mrf.mxu0  ;;  %v8675_v3 = vadd.f32 %v6472_v35, %v4227_v43 }
0x16f3   : > { %v4456_v42 = vadd.f32 %v4455_v46, %v8678_v56 }
0x16f4   : > { %v4457_v9 = vpop.f32.mrf.mxu0  ;;  %v4239_v6 = vpack.c.bf16 %v8675_v3, %v8673_v51 }
0x16f5   : > { %v4458_v52 = vadd.f32 %v4457_v9, %v8671_v44 }
0x16f6   : > { %v4459_v57 = vpop.f32.mrf.mxu0  ;;  %4462 = vmatmul.mubr.bf16.gmra.mxu0 %v4239_v6  ;;  %7168 = vmatmul.mubr.bf16.vlgmr.msra.gmra.mxu1 %v4239_v6 }
0x16f7   : > { %v4521_v39 = vpack.c.bf16 %v4458_v52, %v4454_v53  ;;  %v4460_v7 = vadd.f32 %v4459_v57, %v8678_v56  ;;  %7173 = vmatprep.mubr.msk.bf16.mxu1 %vm7929_vm0, %v7928_v31  ;;  %7179 = vmatprep.mubr.msk.bf16.mxu0 %vm7929_vm0, %v7928_v31 }
0x16f9   : > { %v4522_v58 = vpack.c.bf16 %v4460_v7, %v4456_v42  ;;  %4652 = vrot.lane.b32.xlu0 %v4521_v39, %s7930_s26 }
0x16fb   : > { %4655 = vrot.lane.b32.xlu1 %v4522_v58, %s7930_s26  ;;  %v4531_v8 = vsel %vm780_vm1, %v4522_v58, 0 }
0x16fc   : > { %7172 = vmatpush3.bf16.xpose.msra.mxu1 %v4531_v8 }
0x16fd   : > { %7183 = vmatprep.subr.bf16.mxu1 %v7928_v31 }
0x1703   : > { %7174 = vmatmul.mubr.msk.bf16.vlgmr.msra.gmra.mxu1 %vm780_vm1, %v4521_v39 }
0x1704   : > { %7185 = vmatprep.mubr.msk.bf16.mxu1 %vm7929_vm0, %v7928_v31 }
0x176b   : > { %v4653_v55 = vpop.permute.xlu0 %4652 }
0x176d   : > { %v4656_v4 = vpop.permute.xlu1 %4655 }
0x176e   : > { %v4661_v2 = vsel %vm780_vm1, %v4656_v4, 0 }
0x176f   : > { %7184 = vmatpush3.bf16.xpose.msra.mxu1 %v4661_v2 }
0x1770   : > { %7195 = vmatprep.subr.bf16.mxu1 %v7928_v31 }
0x1776   : > { %7186 = vmatmul.mubr.msk.bf16.vlgmr.msra.gmra.mxu1 %vm780_vm1, %v4653_v55 }
0x1777   : > { %7203 = vmatprep.mubr.msk.bf16.mxu1 %vm7929_vm0, %v7928_v31 }
0x17b6   : > { %v7169_v14 = vpop.f32.mrf.mxu1  ;;  %v4463_v57 = vpop.f32.mrf.mxu0 }
0x17b7   : > { %v4515_v61 = vadd.f32 %v7169_v14, %v4287_v54  ;;  %v4464_v58 = vadd.f32 %v4463_v57, %v8671_v44 }
0x17b8   : > { %v4506_v62 = vpop.f32.mrf.mxu1  ;;  %v4465_v42 = vpop.f32.mrf.mxu0 }
0x17b9   : > { %v4507_v5 = vadd.f32 %v4506_v62, %v4287_v54  ;;  %v4466_v55 = vadd.f32 %v4465_v42, %v8678_v56 }
0x17ba   : > { %v7170_v33 = vpop.f32.mrf.mxu1  ;;  %v4467_v39 = vpop.f32.mrf.mxu0 }
0x17bb   : > { %v4518_v11 = vadd.f32 %v7170_v33, %v4287_v54  ;;  %v4468_v7 = vadd.f32 %v4467_v39, %v8671_v44 }
0x17bc   : > { %v4509_v35 = vpop.f32.mrf.mxu1  ;;  %v4469_v8 = vpop.f32.mrf.mxu0 }
0x17bd   : > { %v8703_v16 = vpack.c.bf16 %v4518_v11, %v4515_v61  ;;  %v4510_v17 = vadd.f32 %v4509_v35, %v4287_v54  ;;  %v8717_v4 = vpack.c.bf16 %v4468_v7, %v4464_v58  ;;  %v4470_v2 = vadd.f32 %v4469_v8, %v8678_v56  ;;  %v8733_v56 = vld [vmem:[%s8953_s3 + $0xb8] sm:$0xff]  }
0x17be   : > { %7196 = vmatpush3.bf16.msra.mxu1 %v8733_v56 }
0x17bf   : > { %v4523_v18 = vpack.c.bf16 %v4510_v17, %v4507_v5  ;;  %v8723_v14 = vpack.c.bf16 %v4470_v2, %v4466_v55  ;;  %v8739_v5 = vld [vmem:[%s8953_s3 + $0xb0] sm:$0xff]   ;;  %7197 = vmatprep.subr.bf16.mxu1 %v7928_v31  ;;  %v8746_v17 = vld [vmem:[%s8953_s3 + $0xa8] sm:$0xff]  }
0x17c1   : > { %7178 = vmatpush3.bf16.msra.mxu0 %v4523_v18 }
0x17c2   : > { %7189 = vmatprep.subr.bf16.mxu0 %v7928_v31  ;;  %7198 = vmatpush3.bf16.msra.mxu1 %v8739_v5 }
0x17c3   : > { %v4567_v10 = vpop.f32.mrf.mxu1  ;;  %7199 = vmatprep.subr.bf16.mxu1 %v7928_v31 }
0x17c4   : > { %v4574_v19 = vsel %vm828_vm2, %v4567_v10, -inf }
0x17c5   : > { %4575 = vmax.xlane.f32.xlu1 %v4574_v19  ;;  %v7175_v1 = vpop.f32.mrf.mxu1 }
0x17c6   : > { %7200 = vmatpush3.bf16.msra.mxu1 %v8746_v17 }
0x17c7   : > { %v4570_v23 = vpop.f32.mrf.mxu1  ;;  %7201 = vmatprep.subr.bf16.mxu1 %v7928_v31 }
0x17c8   : > { %v4577_v28 = vsel %vm828_vm2, %v4570_v23, -inf }
0x17c9   : > { %4578 = vmax.xlane.f32.xlu0 %v4577_v28  ;;  %v7176_v24 = vpop.f32.mrf.mxu1 }
0x1836   : > { %v4697_v21 = vpop.f32.mrf.mxu1 }
0x1837   : > { %v4704_v20 = vsel %vm828_vm2, %v4697_v21, -inf }
0x1838   : > { %4705 = vmax.xlane.f32.xlu1 %v4704_v20  ;;  %v7187_v12 = vpop.f32.mrf.mxu1 }
0x1839   : > { %v8762_v12 = vld [vmem:[%s8953_s3 + $0x90] sm:$0xff]  }
0x183a   : > { %v4700_v13 = vpop.f32.mrf.mxu1 }
0x183b   : > { %v4707_v22 = vsel %vm828_vm2, %v4700_v13, -inf }
0x183c   : > { %4708 = vmax.xlane.f32.xlu0 %v4707_v22  ;;  %v7188_v45 = vpop.f32.mrf.mxu1  ;;  %v8778_v22 = vld [vmem:[%s8953_s3 + $0x80] sm:$0xff]  }
0x183d   : > { %v7595_v45 = vld [vmem:[%s8953_s3 + $0xa0] sm:$0xff]  }
0x183e   : > { %7202 = vmatpush3.bf16.msra.mxu1 %v7595_v45 }
0x183f   : > { %7219 = vmatprep.subr.bf16.mxu1 %v7928_v31 }
0x184e   : > { %v4576_v25 = vpop.xlane.xlu1 %4575 }
0x184f   : > { %v4580_v26 = vsub.f32 %v4567_v10, %v4576_v25 }
0x1851   : > { %v4582_v32 = vmul.f32 1.442695, %v4580_v26 }
0x1852   : > { %v4579_v63 = vpop.xlane.xlu0 %4578 }
0x1853   : > { %7772 = vpow2.f32 %v4582_v32  ;;  %v4581_v27 = vsub.f32 %v4570_v23, %v4579_v63 }
0x1855   : > { %v4584_v36 = vmul.f32 1.442695, %v4581_v27 }
0x1857   : > { %7774 = vpow2.f32 %v4584_v36 }
0x1860   : > { %v7773_v47 = vpop.eup %7772 }
0x1861   : > { %v4586_v59 = vsel %vm828_vm2, %v7773_v47, 0.0 }
0x1862   : > { %4587 = vadd.xlane.f32.xlu1 %v4586_v59 }
0x1864   : > { %v7775_v41 = vpop.eup %7774 }
0x1865   : > { %v4589_v37 = vsel %vm828_vm2, %v7775_v41, 0.0 }
0x1866   : > { %4590 = vadd.xlane.f32.xlu0 %v4589_v37 }
0x18c1   : > { %v4706_v48 = vpop.xlane.xlu1 %4705 }
0x18c2   : > { %v4710_v30 = vsub.f32 %v4697_v21, %v4706_v48  ;;  %v8755_v21 = vld [vmem:[%s8953_s3 + $0x98] sm:$0xff]   ;;  %v4924_v48 = vsel %vm780_vm1, %v8723_v14, 0 }
0x18c4   : > { %v4712_v49 = vmul.f32 1.442695, %v4710_v30 }
0x18c5   : > { %v4709_v40 = vpop.xlane.xlu0 %4708 }
0x18c6   : > { %7776 = vpow2.f32 %v4712_v49  ;;  %v4711_v43 = vsub.f32 %v4700_v13, %v4709_v40  ;;  %v8771_v13 = vld [vmem:[%s8953_s3 + $0x88] sm:$0xff]  }
0x18c8   : > { %v4714_v46 = vmul.f32 1.442695, %v4711_v43 }
0x18ca   : > { %7778 = vpow2.f32 %v4714_v46 }
0x18d3   : > { %v7777_v9 = vpop.eup %7776 }
0x18d4   : > { %v4716_v6 = vsel %vm828_vm2, %v7777_v9, 0.0 }
0x18d5   : > { %4717 = vadd.xlane.f32.xlu1 %v4716_v6 }
0x18d7   : > { %v7779_v53 = vpop.eup %7778 }
0x18d8   : > { %v4719_v52 = vsel %vm828_vm2, %v7779_v53, 0.0 }
0x18d9   : > { %4720 = vadd.xlane.f32.xlu0 %v4719_v52 }
0x18e6   : > { %4728 = vrot.lane.b32.xlu1 %v4523_v18, %s7930_s26 }
0x18ea   : > { %5036 = vrot.lane.b32.xlu1 %v8717_v4, %s7930_s26 }
0x18eb   : > { %v4588_v54 = vpop.xlane.xlu1 %4587 }
0x18ec   : > { %7780 = vrcp.f32 %v4588_v54 }
0x18ef   : > { %5039 = vrot.lane.b32.xlu0 %v8723_v14, %s7930_s26  ;;  %v4591_v44 = vpop.xlane.xlu0 %4590 }
0x18f0   : > { %7782 = vrcp.f32 %v4591_v44 }
0x18f9   : > { %v7781_v61 = vpop.eup %7780 }
0x18fa   : > { %v4594_v33 = vmul.f32 %v7781_v61, %v7773_v47 }
0x18fd   : > { %v7783_v62 = vpop.eup %7782 }
0x18fe   : > { %v4595_v11 = vmul.f32 %v7783_v62, %v7775_v41 }
0x1900   : > { %v4596_v35 = vpack.c.bf16 %v4595_v11, %v4594_v33 }
0x1902   : > { %7180 = vmatmul.mubr.msk.bf16.vlgmr.msra.gmra.mxu0 %vm828_vm2, %v4596_v35 }
0x1903   : > { %7191 = vmatprep.mubr.msk.bf16.mxu0 %vm7929_vm0, %v7928_v31 }
0x195e   : > { %v4718_v18 = vpop.xlane.xlu1 %4717 }
0x195f   : > { %7784 = vrcp.f32 %v4718_v18 }
0x1962   : > { %v4729_v10 = vpop.permute.xlu1 %4728  ;;  %v4721_v19 = vpop.xlane.xlu0 %4720 }
0x1963   : > { %7786 = vrcp.f32 %v4721_v19  ;;  %7190 = vmatpush3.bf16.msra.mxu0 %v4729_v10 }
0x1964   : > { %7207 = vmatprep.subr.bf16.mxu0 %v7928_v31 }
0x1966   : > { %v5040_v30 = vpop.permute.xlu0 %5039  ;;  %v5037_v40 = vpop.permute.xlu1 %5036 }
0x1967   : > { %v5045_v49 = vsel %vm780_vm1, %v5040_v30, 0 }
0x196c   : > { %v7785_v1 = vpop.eup %7784 }
0x196d   : > { %v4724_v28 = vmul.f32 %v7785_v1, %v7777_v9 }
0x1970   : > { %v7787_v23 = vpop.eup %7786 }
0x1971   : > { %v4725_v24 = vmul.f32 %v7787_v23, %v7779_v53 }
0x1973   : > { %v4726_v20 = vpack.c.bf16 %v4725_v24, %v4724_v28 }
0x1975   : > { %7192 = vmatmul.mubr.msk.bf16.vlgmr.msra.gmra.mxu0 %vm828_vm2, %v4726_v20 }
0x1976   : > { %7208 = vmatpush3.bf16.msra.mxu0 %v8755_v21  ;;  %7215 = vmatprep.mubr.msk.bf16.mxu0 %vm7929_vm0, %v7928_v31 }
0x1977   : > { %7209 = vmatprep.subr.bf16.mxu0 %v7928_v31 }
0x197a   : > { %7210 = vmatpush3.bf16.msra.mxu0 %v8762_v12 }
0x197b   : > { %7211 = vmatprep.subr.bf16.mxu0 %v7928_v31 }
0x197e   : > { %7212 = vmatpush3.bf16.msra.mxu0 %v8771_v13 }
0x197f   : > { %7213 = vmatprep.subr.bf16.mxu0 %v7928_v31 }
0x1982   : > { %7214 = vmatpush3.bf16.msra.mxu0 %v8778_v22 }
0x1983   : > { %7225 = vmatprep.subr.bf16.mxu0 %v7928_v31 }
0x19c2   : > { %v4634_v25 = vpop.f32.mrf.mxu0 }
0x19c4   : > { %v7181_v26 = vpop.f32.mrf.mxu0 }
0x19c6   : > { %v4637_v32 = vpop.f32.mrf.mxu0 }
0x19c7   : > { %v4641_v63 = vpack.c.bf16 %v4637_v32, %v4634_v25 }
0x19c8   : > { %v7182_v27 = vpop.f32.mrf.mxu0 }
0x19c9   : > { %7216 = vmatmul.mubr.msk.bf16.vlgmr.msra.gmra.mxu0 %vm780_vm1, %v4641_v63  ;;  %v8822_v63 = vld [vmem:[%s8954_s4 + $0x2] ss:$0 sm:$0xff] }
0x19ca   : > { %7226 = vmatpush3.bf16.msra.mxu0 %v8703_v16  ;;  %7227 = vmatprep.mubr.msk.bf16.mxu0 %vm7929_vm0, %v7928_v31 }
0x19cb   : > { %7237 = vmatprep.subr.bf16.mxu0 %v7928_v31 }
0x1a35   : > { %v4768_v36 = vpop.f32.mrf.mxu0 }
0x1a37   : > { %v7193_v47 = vpop.f32.mrf.mxu0 }
0x1a39   : > { %v4771_v59 = vpop.f32.mrf.mxu0 }
0x1a3a   : > { %v4775_v41 = vpack.c.bf16 %v4771_v59, %v4768_v36 }
0x1a3b   : > { %v7194_v37 = vpop.f32.mrf.mxu0 }
0x1a3c   : > { %7204 = vmatmul.mubr.msk.bf16.vlgmr.msra.gmra.mxu1 %vm780_vm1, %v4775_v41 }
0x1a3d   : > { %7220 = vmatpush3.bf16.xpose.msra.mxu1 %v4924_v48  ;;  %7221 = vmatprep.mubr.msk.bf16.mxu1 %vm7929_vm0, %v7928_v31 }
0x1a3e   : > { %7231 = vmatprep.subr.bf16.mxu1 %v7928_v31 }
0x1a44   : > { %7222 = vmatmul.mubr.msk.bf16.vlgmr.msra.gmra.mxu1 %vm780_vm1, %v8717_v4 }
0x1a45   : > { %7232 = vmatpush3.bf16.xpose.msra.mxu1 %v5045_v49  ;;  %7233 = vmatprep.mubr.msk.bf16.mxu1 %vm7929_vm0, %v7928_v31 }
0x1a46   : > { %7243 = vmatprep.subr.bf16.mxu1 %v7928_v31 }
0x1a4c   : > { %7234 = vmatmul.mubr.msk.bf16.vlgmr.msra.gmra.mxu1 %vm780_vm1, %v5037_v40 }
0x1a4d   : > { %7244 = vmatpush3.bf16.msra.mxu1 %v8733_v56  ;;  %7251 = vmatprep.mubr.msk.bf16.mxu1 %vm7929_vm0, %v7928_v31 }
0x1a4e   : > { %7245 = vmatprep.subr.bf16.mxu1 %v7928_v31 }
0x1a51   : > { %7246 = vmatpush3.bf16.msra.mxu1 %v8739_v5 }
0x1a52   : > { %7247 = vmatprep.subr.bf16.mxu1 %v7928_v31 }
0x1a55   : > { %7248 = vmatpush3.bf16.msra.mxu1 %v8746_v17 }
0x1a56   : > { %7249 = vmatprep.subr.bf16.mxu1 %v7928_v31 }
0x1a59   : > { %7250 = vmatpush3.bf16.msra.mxu1 %v7595_v45 }
0x1a89   : > { %v4913_v43 = vpop.f32.mrf.mxu0 }
0x1a8b   : > { %v7217_v46 = vpop.f32.mrf.mxu0 }
0x1a8d   : > { %v4916_v9 = vpop.f32.mrf.mxu0 }
0x1a8f   : > { %v7218_v6 = vpop.f32.mrf.mxu0 }
0x1afc   : > { %v4845_v53 = vpop.f32.mrf.mxu1 }
0x1afd   : > { %v4914_v32 = vadd.f32 %v4913_v43, %v4845_v53 }
0x1afe   : > { %v7205_v52 = vpop.f32.mrf.mxu1 }
0x1aff   : > { %v5256_v47 = vadd.f32 %v8822_v63, %v4914_v32  ;;  %v7601_v32 = vld [vmem:[#allocation4 + $0x2ec] ss:$16 sps:$4 sm:$0xff]  }
0x1b00   : > { %v4848_v57 = vpop.f32.mrf.mxu1 }
0x1b01   : > { %v4917_v59 = vadd.f32 %v4916_v9, %v4848_v57  ;;  %v8829_v48 = vadd.f32 %v5256_v47, %v8659_v15  ;;  %v7602_v47 = vld [vmem:[#allocation4 + $0x2c0] ss:$16 sps:$4 sm:$0xff]  }
0x1b02   : > { %v7206_v42 = vpop.f32.mrf.mxu1 }
0x1b03   : > { %v5257_v37 = vadd.f32 %v8822_v63, %v4917_v59  ;;  %v7605_v59 = vld [vmem:[#allocation4 + $0x2c8] ss:$16 sps:$4 sm:$0xff]  }
0x1b04   : > { %v4960_v39 = vpop.f32.mrf.mxu1 }
0x1b05   : > { %v4967_v7 = vsel %vm828_vm2, %v4960_v39, -inf  ;;  %v8833_v30 = vadd.f32 %v5257_v37, %v8661_v29  ;;  %v7613_v37 = vld [vmem:[#allocation4 + $0x2ac] ss:$16 sps:$4 sm:$0xff]  }
0x1b06   : > { %4968 = vmax.xlane.f32.xlu1 %v4967_v7  ;;  %v7223_v58 = vpop.f32.mrf.mxu1 }
0x1b08   : > { %v4963_v8 = vpop.f32.mrf.mxu1 }
0x1b09   : > { %v4970_v4 = vsel %vm828_vm2, %v4963_v8, -inf }
0x1b0a   : > { %4971 = vmax.xlane.f32.xlu0 %v4970_v4  ;;  %v7224_v2 = vpop.f32.mrf.mxu1 }
0x1b0c   : > { %v5081_v55 = vpop.f32.mrf.mxu1 }
0x1b0d   : > { %v5088_v54 = vsel %vm828_vm2, %v5081_v55, -inf }
0x1b0e   : > { %5089 = vmax.xlane.f32.xlu0 %v5088_v54  ;;  %v7235_v14 = vpop.f32.mrf.mxu1 }
0x1b10   : > { %v5084_v44 = vpop.f32.mrf.mxu1 }
0x1b11   : > { %v5091_v61 = vsel %vm828_vm2, %v5084_v44, -inf }
0x1b12   : > { %5092 = vmax.xlane.f32.xlu1 %v5091_v61  ;;  %v7236_v62 = vpop.f32.mrf.mxu1 }
0x1b8f   : > { %v4969_v33 = vpop.xlane.xlu1 %4968 }
0x1b90   : > { %v4973_v11 = vsub.f32 %v4960_v39, %v4969_v33 }
0x1b92   : > { %v4975_v35 = vmul.f32 1.442695, %v4973_v11 }
0x1b93   : > { %v4972_v56 = vpop.xlane.xlu0 %4971 }
0x1b94   : > { %7788 = vpow2.f32 %v4975_v35  ;;  %v4974_v5 = vsub.f32 %v4963_v8, %v4972_v56 }
0x1b96   : > { %v4977_v17 = vmul.f32 1.442695, %v4974_v5 }
0x1b97   : > { %v5090_v18 = vpop.xlane.xlu0 %5089 }
0x1b98   : > { %7790 = vpow2.f32 %v4977_v17  ;;  %v5094_v10 = vsub.f32 %v5081_v55, %v5090_v18 }
0x1b9a   : > { %v5096_v19 = vmul.f32 1.442695, %v5094_v10 }
0x1b9b   : > { %v5093_v1 = vpop.xlane.xlu1 %5092 }
0x1b9c   : > { %7792 = vpow2.f32 %v5096_v19  ;;  %v5095_v23 = vsub.f32 %v5084_v44, %v5093_v1 }
0x1b9e   : > { %v5098_v28 = vmul.f32 1.442695, %v5095_v23 }
0x1ba0   : > { %7794 = vpow2.f32 %v5098_v28 }
0x1ba1   : > { %v7789_v24 = vpop.eup %7788 }
0x1ba2   : > { %v4979_v20 = vsel %vm828_vm2, %v7789_v24, 0.0 }
0x1ba3   : > { %4980 = vadd.xlane.f32.xlu0 %v4979_v20 }
0x1ba5   : > { %v7791_v45 = vpop.eup %7790 }
0x1ba6   : > { %v4982_v25 = vsel %vm828_vm2, %v7791_v45, 0.0 }
0x1ba7   : > { %4983 = vadd.xlane.f32.xlu1 %v4982_v25 }
0x1ba9   : > { %v7793_v26 = vpop.eup %7792 }
0x1baa   : > { %v5100_v27 = vsel %vm828_vm2, %v7793_v26, 0.0 }
0x1bab   : > { %5101 = vadd.xlane.f32.xlu0 %v5100_v27  ;;  %v7599_v27 = vld [vmem:[#allocation4 + $0x2e8] ss:$16 sps:$4 sm:$0xff]  }
0x1bad   : > { %v7795_v36 = vpop.eup %7794 }
0x1bae   : > { %v5103_v41 = vsel %vm828_vm2, %v7795_v36, 0.0 }
0x1baf   : > { %5104 = vadd.xlane.f32.xlu1 %v5103_v41  ;;  %v7610_v41 = vld [vmem:[#allocation4 + $0x2a4] ss:$16 sps:$4 sm:$0xff]  }
0x1bb3   : > { %5268 = vadd.xlane.f32.xlu1 %v8829_v48 }
0x1bb7   : > { %5270 = vadd.xlane.f32.xlu1 %v8833_v30 }
0x1bc1   : > { %5112 = vrot.lane.b32.xlu0 %v8703_v16, %s7930_s26  ;;  %s486_s26 = scalar_lea.vmem %s8963_s13, %s6218_s29 }
0x1c2c   : > { %v4981_v49 = vpop.xlane.xlu0 %4980 }
0x1c2d   : > { %7796 = vrcp.f32 %v4981_v49  ;;  %v7616_v49 = vld [vmem:[#allocation4 + $0x284] ss:$16 sps:$4 sm:$0xff]  }
0x1c30   : > { %v4984_v40 = vpop.xlane.xlu1 %4983 }
0x1c31   : > { %7798 = vrcp.f32 %v4984_v40  ;;  %v7619_v40 = vld [vmem:[#allocation4 + $0x28c] ss:$16 sps:$4 sm:$0xff]  }
0x1c34   : > { %v5102_v43 = vpop.xlane.xlu0 %5101 }
0x1c35   : > { %7800 = vrcp.f32 %v5102_v43  ;;  %v7614_v43 = vld [vmem:[#allocation4 + $0x280] ss:$16 sps:$4 sm:$0xff]  }
0x1c38   : > { %v5105_v46 = vpop.xlane.xlu1 %5104  ;;  %v5113_v29 = vpop.permute.xlu0 %5112 }
0x1c39   : > { %7802 = vrcp.f32 %v5105_v46  ;;  %v7617_v46 = vld [vmem:[#allocation4 + $0x288] ss:$16 sps:$4 sm:$0xff]  }
0x1c3a   : > { %v7797_v15 = vpop.eup %7796 }
0x1c3b   : > { %v4987_v6 = vmul.f32 %v7797_v15, %v7789_v24  ;;  %v7622_v15 = vld [vmem:[#allocation4 + $0x264] ss:$16 sps:$4 sm:$0xff]  }
0x1c3c   : > { %v5269_v62 = vpop.xlane.xlu1 %5268 }
0x1c3d   : > { %v5276_v17 = vmul.f32 0.0078125, %v5269_v62 }
0x1c3e   : > { %v7799_v9 = vpop.eup %7798 }
0x1c3f   : > { %v4988_v53 = vmul.f32 %v7799_v9, %v7791_v45  ;;  %v8863_v28 = vsub.f32 %v8829_v48, %v5276_v17  ;;  %v7608_v48 = vld [vmem:[#allocation4 + $0x2a0] ss:$16 sps:$4 sm:$0xff]   ;;  %v7625_v9 = vld [vmem:[#allocation4 + $0x26c] ss:$16 sps:$4 sm:$0xff]  }
0x1c40   : > { %v5271_v19 = vpop.xlane.xlu1 %5270 }
0x1c41   : > { %v4989_v52 = vpack.c.bf16 %v4988_v53, %v4987_v6  ;;  %v5277_v24 = vmul.f32 0.0078125, %v5271_v19  ;;  %v7620_v6 = vld [vmem:[#allocation4 + $0x260] ss:$16 sps:$4 sm:$0xff]   ;;  %v7623_v53 = vld [vmem:[#allocation4 + $0x268] ss:$16 sps:$4 sm:$0xff]  }
0x1c42   : > { %v7801_v57 = vpop.eup %7800 }
0x1c43   : > { %7228 = vmatmul.mubr.msk.bf16.vlgmr.msra.gmra.mxu0 %vm828_vm2, %v4989_v52  ;;  %v5108_v42 = vmul.f32 %v7801_v57, %v7793_v26  ;;  %v8870_v45 = vsub.f32 %v8833_v30, %v5277_v24  ;;  %v7598_v26 = vld [vmem:[#allocation4 + $0x2e4] ss:$16 sps:$4 sm:$0xff]   ;;  %v7611_v30 = vld [vmem:[#allocation4 + $0x2a8] ss:$16 sps:$4 sm:$0xff]   ;;  %v7626_v57 = vld [vmem:[#allocation4 + $0x240] ss:$16 sps:$4 sm:$0xff]  }
0x1c44   : > { %7238 = vmatpush3.bf16.msra.mxu0 %v5113_v29  ;;  %7239 = vmatprep.mubr.msk.bf16.mxu0 %vm7929_vm0, %v7928_v31  ;;  %v7628_v52 = vld [vmem:[#allocation4 + $0x244] ss:$16 sps:$4 sm:$0xff]   ;;  %v7631_v29 = vld [vmem:[#allocation4 + $0x24c] ss:$16 sps:$4 sm:$0xff]  }
0x1c45   : > { %7255 = vmatprep.subr.bf16.mxu0 %v7928_v31  ;;  %v5285_v25 = vmul.f32 %v8870_v45, %v8870_v45  ;;  %5550 = vmatprep.subr.bf16.mxu1 %v7598_v26  ;;  %v7646_v26 = vld [vmem:[#allocation6 + $0x238] sm:$0xff]  }
0x1c46   : > { %v7803_v16 = vpop.eup %7802 }
0x1c47   : > { %v5109_v39 = vmul.f32 %v7803_v16, %v7795_v36  ;;  %v7607_v36 = vld [vmem:[#allocation4 + $0x2cc] ss:$16 sps:$4 sm:$0xff]   ;;  %v7629_v16 = vld [vmem:[#allocation4 + $0x248] ss:$16 sps:$4 sm:$0xff]  }
0x1c49   : > { %v5110_v7 = vpack.c.bf16 %v5109_v39, %v5108_v42  ;;  %v7634_v42 = vld [vmem:[#allocation4 + $0x224] ss:$16 sps:$4 sm:$0xff]   ;;  %v7637_v39 = vld [vmem:[#allocation4 + $0x22c] ss:$16 sps:$4 sm:$0xff]  }
0x1c4b   : > { %7240 = vmatmul.mubr.msk.bf16.vlgmr.msra.gmra.mxu0 %vm828_vm2, %v5110_v7  ;;  %v7632_v7 = vld [vmem:[#allocation4 + $0x220] ss:$16 sps:$4 sm:$0xff]  }
0x1c4c   : > { %7256 = vmatpush3.bf16.msra.mxu0 %v8755_v21  ;;  %7263 = vmatprep.mubr.msk.bf16.mxu0 %vm7929_vm0, %v7928_v31 }
0x1c4d   : > { %7257 = vmatprep.subr.bf16.mxu0 %v7928_v31 }
0x1c50   : > { %7258 = vmatpush3.bf16.msra.mxu0 %v8762_v12 }
0x1c51   : > { %7259 = vmatprep.subr.bf16.mxu0 %v7928_v31 }
0x1c54   : > { %7260 = vmatpush3.bf16.msra.mxu0 %v8771_v13 }
0x1c55   : > { %7261 = vmatprep.subr.bf16.mxu0 %v7928_v31 }
0x1c58   : > { %7262 = vmatpush3.bf16.msra.mxu0 %v8778_v22 }
0x1c59   : > { %5603 = vmatprep.subr.bf16.mxu0 %v7601_v32  ;;  %v7647_v32 = vld [vmem:[#allocation6 + $0x2b8] sm:$0xff]  }
0x1d03   : > { %v5027_v58 = vpop.f32.mrf.mxu0 }
0x1d05   : > { %v7229_v8 = vpop.f32.mrf.mxu0 }
0x1d06   : > { %v7640_v8 = vld [vmem:[#allocation4 + $0x204] ss:$16 sps:$4 sm:$0xff]  }
0x1d07   : > { %v5030_v4 = vpop.f32.mrf.mxu0 }
0x1d08   : > { %v5034_v2 = vpack.c.bf16 %v5030_v4, %v5027_v58  ;;  %v7635_v58 = vld [vmem:[#allocation4 + $0x228] ss:$16 sps:$4 sm:$0xff]   ;;  %v7643_v4 = vld [vmem:[#allocation4 + $0x20c] ss:$16 sps:$4 sm:$0xff]  }
0x1d09   : > { %v7230_v21 = vpop.f32.mrf.mxu0 }
0x1d0a   : > { %7264 = vmatmul.mubr.msk.bf16.vlgmr.msra.gmra.mxu0 %vm780_vm1, %v5034_v2  ;;  %v7638_v2 = vld [vmem:[#allocation4 + $0x200] ss:$16 sps:$4 sm:$0xff]   ;;  %v7641_v21 = vld [vmem:[#allocation4 + $0x208] ss:$16 sps:$4 sm:$0xff]  }
0x1d0b   : > { %v5152_v55 = vpop.f32.mrf.mxu0  ;;  %5635 = vmatprep.mubr.bf16.mxu0 %v7927_v0  ;;  %5604 = vmatpush1.bf16.msra.mxu0 %v7599_v27  ;;  %v7649_v27 = vld [vmem:[#allocation6 + $0x2f0] sm:$0xff]  }
0x1d0c   : > { %5605 = vmatprep.subr.bf16.mxu0 %v7607_v36  ;;  %v7651_v36 = vld [vmem:[#allocation6 + $0x2b0] sm:$0xff]  }
0x1d0d   : > { %v7241_v54 = vpop.f32.mrf.mxu0 }
0x1d0f   : > { %v5155_v12 = vpop.f32.mrf.mxu0  ;;  %5606 = vmatpush1.bf16.msra.mxu0 %v7605_v59  ;;  %v7653_v59 = vld [vmem:[#allocation6 + $0x2e8] sm:$0xff]  }
0x1d10   : > { %v5159_v14 = vpack.c.bf16 %v5155_v12, %v5152_v55  ;;  %5607 = vmatprep.subr.bf16.mxu0 %v7613_v37  ;;  %v7656_v37 = vld [vmem:[#allocation6 + $0x260] sm:$0xff]  }
0x1d11   : > { %v7242_v44 = vpop.f32.mrf.mxu0 }
0x1d12   : > { %7252 = vmatmul.mubr.msk.bf16.vlgmr.msra.gmra.mxu1 %vm780_vm1, %v5159_v14 }
0x1d13   : > { %5582 = vmatprep.mubr.bf16.mxu1 %v7927_v0  ;;  %5608 = vmatpush1.bf16.msra.mxu0 %v7611_v30  ;;  %v7658_v30 = vld [vmem:[#allocation6 + $0x220] sm:$0xff]  }
0x1d14   : > { %5609 = vmatprep.subr.bf16.mxu0 %v7619_v40  ;;  %v7660_v40 = vld [vmem:[#allocation6 + $0x258] sm:$0xff]  }
0x1d17   : > { %5610 = vmatpush1.bf16.msra.mxu0 %v7617_v46  ;;  %v7662_v46 = vld [vmem:[#allocation6 + $0x218] sm:$0xff]  }
0x1d18   : > { %5611 = vmatprep.subr.bf16.mxu0 %v7625_v9  ;;  %v7664_v9 = vld [vmem:[#allocation6 + $0x250] sm:$0xff]  }
0x1d1b   : > { %5612 = vmatpush1.bf16.msra.mxu0 %v7623_v53  ;;  %v7666_v53 = vld [vmem:[#allocation6 + $0x210] sm:$0xff]  }
0x1d1c   : > { %5613 = vmatprep.subr.bf16.mxu0 %v7631_v29  ;;  %v7668_v29 = vld [vmem:[#allocation6 + $0x248] sm:$0xff]  }
0x1d1f   : > { %5614 = vmatpush1.bf16.msra.mxu0 %v7629_v16  ;;  %v7670_v16 = vld [vmem:[#allocation6 + $0x208] sm:$0xff]  }
0x1d20   : > { %5615 = vmatprep.subr.bf16.mxu0 %v7637_v39  ;;  %v7672_v39 = vld [vmem:[#allocation6 + $0x240] sm:$0xff]  }
0x1d23   : > { %5616 = vmatpush1.bf16.msra.mxu0 %v7635_v58  ;;  %v7674_v58 = vld [vmem:[#allocation6 + $0x200] sm:$0xff]  }
0x1d24   : > { %5617 = vmatprep.subr.bf16.mxu0 %v7643_v4 }
0x1d27   : > { %5618 = vmatpush1.bf16.msra.mxu0 %v7641_v21 }
0x1dca   : > { %v5241_v31 = vpop.f32.mrf.mxu0 }
0x1dcc   : > { %v7265_v13 = vpop.f32.mrf.mxu0 }
0x1dce   : > { %v5244_v22 = vpop.f32.mrf.mxu0 }
0x1dd0   : > { %v7266_v61 = vpop.f32.mrf.mxu0 }
0x1dd2   : > { %v5197_v33 = vpop.f32.mrf.mxu1 }
0x1dd3   : > { %v5242_v11 = vadd.f32 %v5241_v31, %v5197_v33 }
0x1dd4   : > { %v7253_v35 = vpop.f32.mrf.mxu1 }
0x1dd5   : > { %v5258_v56 = vadd.f32 %v8822_v63, %v5242_v11 }
0x1dd6   : > { %v5200_v5 = vpop.f32.mrf.mxu1 }
0x1dd7   : > { %v5245_v18 = vadd.f32 %v5244_v22, %v5200_v5  ;;  %v8858_v10 = vadd.f32 %v5258_v56, %v8673_v51  ;;  %v5284_v51 = vmul.f32 %v8863_v28, %v8863_v28 }
0x1dd8   : > { %v7254_v1 = vpop.f32.mrf.mxu1 }
0x1dd9   : > { %v5259_v23 = vadd.f32 %v8822_v63, %v5245_v18  ;;  %5272 = vadd.xlane.f32.xlu1 %v8858_v10  ;;  %v7596_v63 = vld [vmem:[#allocation4 + $0x2e0] ss:$16 sps:$4 sm:$0xff]  }
0x1dda   : > { %5551 = vmatpush1.bf16.msra.mxu1 %v7596_v63  ;;  %v8890_v18 = vld [vmem:[%s8959_s9 + $0x2] ss:$0 sm:$0xff]  ;;  %v7648_v63 = vld [vmem:[#allocation6 + $0x270] sm:$0xff]  }
0x1ddb   : > { %v8866_v20 = vadd.f32 %v5259_v23, %v8675_v3  ;;  %v7604_v3 = vld [vmem:[#allocation4 + $0x2c4] ss:$16 sps:$4 sm:$0xff]   ;;  %v8897_v23 = vld [vmem:[%s8960_s10 + $0x2] ss:$0 sm:$0xff] }
0x1ddc   : > { %5552 = vmatprep.subr.bf16.mxu1 %v7604_v3  ;;  %v7650_v3 = vld [vmem:[#allocation6 + $0x230] sm:$0xff]  }
0x1ddd   : > { %5274 = vadd.xlane.f32.xlu1 %v8866_v20 }
0x1dde   : > { %5553 = vmatpush1.bf16.msra.mxu1 %v7602_v47  ;;  %v7652_v47 = vld [vmem:[#allocation6 + $0x268] sm:$0xff]  }
0x1ddf   : > { %5554 = vmatprep.subr.bf16.mxu1 %v7610_v41  ;;  %v7654_v41 = vld [vmem:[#allocation6 + $0x228] sm:$0xff]  }
0x1de1   : > { %5288 = vadd.xlane.f32.xlu1 %v5284_v51 }
0x1de2   : > { %5555 = vmatpush1.bf16.msra.mxu1 %v7608_v48  ;;  %v7657_v48 = vld [vmem:[#allocation6 + $0x2e0] sm:$0xff]  }
0x1de3   : > { %5556 = vmatprep.subr.bf16.mxu1 %v7616_v49  ;;  %v7659_v49 = vld [vmem:[#allocation6 + $0x2a0] sm:$0xff]  }
0x1de5   : > { %5290 = vadd.xlane.f32.xlu1 %v5285_v25  ;;  %v7645_v25 = vld [vmem:[#allocation6 + $0x2f8] sm:$0xff]  }
0x1de6   : > { %5557 = vmatpush1.bf16.msra.mxu1 %v7614_v43  ;;  %6891 = vmatprep.subr.bf16.mxu0 %v7645_v25  ;;  %v7661_v43 = vld [vmem:[#allocation6 + $0x2d8] sm:$0xff]  }
0x1de7   : > { %5558 = vmatprep.subr.bf16.mxu1 %v7622_v15  ;;  %v7663_v15 = vld [vmem:[#allocation6 + $0x298] sm:$0xff]  }
0x1dea   : > { %5559 = vmatpush1.bf16.msra.mxu1 %v7620_v6  ;;  %v7665_v6 = vld [vmem:[#allocation6 + $0x2d0] sm:$0xff]  }
0x1deb   : > { %5560 = vmatprep.subr.bf16.mxu1 %v7628_v52  ;;  %v7667_v52 = vld [vmem:[#allocation6 + $0x290] sm:$0xff]  }
0x1dee   : > { %5561 = vmatpush1.bf16.msra.mxu1 %v7626_v57  ;;  %v7669_v57 = vld [vmem:[#allocation6 + $0x2c8] sm:$0xff]  }
0x1def   : > { %5562 = vmatprep.subr.bf16.mxu1 %v7634_v42  ;;  %v7671_v42 = vld [vmem:[#allocation6 + $0x288] sm:$0xff]  }
0x1df2   : > { %5563 = vmatpush1.bf16.msra.mxu1 %v7632_v7  ;;  %v7673_v7 = vld [vmem:[#allocation6 + $0x2c0] sm:$0xff]  }
0x1df3   : > { %5564 = vmatprep.subr.bf16.mxu1 %v7640_v8  ;;  %v7675_v8 = vld [vmem:[#allocation6 + $0x280] sm:$0xff]  }
0x1df6   : > { %5565 = vmatpush1.bf16.msra.mxu1 %v7638_v2 }
0x1e62   : > { %v5273_v55 = vpop.xlane.xlu1 %5272 }
0x1e63   : > { %v5278_v54 = vmul.f32 0.0078125, %v5273_v55 }
0x1e65   : > { %v8877_v12 = vsub.f32 %v8858_v10, %v5278_v54 }
0x1e66   : > { %v5275_v14 = vpop.xlane.xlu1 %5274 }
0x1e67   : > { %v5279_v44 = vmul.f32 0.0078125, %v5275_v14  ;;  %v5286_v31 = vmul.f32 %v8877_v12, %v8877_v12 }
0x1e69   : > { %v8882_v13 = vsub.f32 %v8866_v20, %v5279_v44  ;;  %5292 = vadd.xlane.f32.xlu0 %v5286_v31 }
0x1e6a   : > { %v5289_v22 = vpop.xlane.xlu1 %5288 }
0x1e6b   : > { %v5296_v61 = vmul.f32 0.0078125, %v5289_v22  ;;  %v5287_v62 = vmul.f32 %v8882_v13, %v8882_v13 }
0x1e6d   : > { %v5300_v33 = vadd.f32 1e-05, %v5296_v61  ;;  %5294 = vadd.xlane.f32.xlu1 %v5287_v62 }
0x1e6e   : > { %v5291_v11 = vpop.xlane.xlu1 %5290 }
0x1e6f   : > { %7804 = vrsqrt.f32 %v5300_v33  ;;  %v5297_v35 = vmul.f32 0.0078125, %v5291_v11 }
0x1e71   : > { %v5301_v56 = vadd.f32 1e-05, %v5297_v35 }
0x1e73   : > { %7806 = vrsqrt.f32 %v5301_v56 }
0x1e7c   : > { %v7805_v5 = vpop.eup %7804 }
0x1e7d   : > { %v5308_v17 = vmul.f32 %v7805_v5, %v8863_v28 }
0x1e7f   : > { %v5318_v1 = vmul.f32 %v8890_v18, %v5308_v17 }
0x1e80   : > { %v7807_v10 = vpop.eup %7806 }
0x1e81   : > { %v5309_v19 = vmul.f32 %v7807_v10, %v8870_v45  ;;  %v8901_v20 = vadd.f32 %v8897_v23, %v5318_v1  ;;  %v7644_v45 = vld [vmem:[#allocation6 + $0x278] sm:$0xff]  }
0x1e82   : > { %6863 = vmatprep.subr.bf16.mxu1 %v7644_v45 }
0x1e83   : > { %v5319_v24 = vmul.f32 %v8890_v18, %v5309_v19 }
0x1e85   : > { %v8904_v28 = vadd.f32 %v8897_v23, %v5319_v24 }
0x1e87   : > { %v5332_v51 = vpack.c.bf16 %v8904_v28, %v8901_v20 }
0x1e89   : > { %5583 = vmatmul.mubr.bf16.vlgmr.msra.gmra.mxu1 %v5332_v51  ;;  %5636 = vmatmul.mubr.bf16.vlgmr.msra.gmra.mxu0 %v5332_v51 }
0x1e8a   : > { %5592 = vmatprep.mubr.bf16.mxu1 %v7927_v0  ;;  %5645 = vmatprep.mubr.bf16.mxu0 %v7927_v0  ;;  %v7655_v0 = vld [vmem:[#allocation6 + $0x2a8] sm:$0xff]  }
0x1e8b   : > { %6864 = vmatpush3.bf16.msra.mxu1 %v7646_v26  ;;  %6892 = vmatpush3.bf16.msra.mxu0 %v7647_v32 }
0x1e8c   : > { %6865 = vmatprep.subr.bf16.mxu1 %v7648_v63  ;;  %6893 = vmatprep.subr.bf16.mxu0 %v7649_v27 }
0x1e8f   : > { %6866 = vmatpush3.bf16.msra.mxu1 %v7650_v3  ;;  %6894 = vmatpush3.bf16.msra.mxu0 %v7651_v36 }
0x1e90   : > { %6867 = vmatprep.subr.bf16.mxu1 %v7652_v47  ;;  %6895 = vmatprep.subr.bf16.mxu0 %v7653_v59 }
0x1e93   : > { %6868 = vmatpush3.bf16.msra.mxu1 %v7654_v41  ;;  %6896 = vmatpush3.bf16.msra.mxu0 %v7655_v0 }
0x1e94   : > { %6869 = vmatprep.subr.bf16.mxu1 %v7656_v37  ;;  %6897 = vmatprep.subr.bf16.mxu0 %v7657_v48 }
0x1e97   : > { %6870 = vmatpush3.bf16.msra.mxu1 %v7658_v30  ;;  %6898 = vmatpush3.bf16.msra.mxu0 %v7659_v49 }
0x1e98   : > { %6871 = vmatprep.subr.bf16.mxu1 %v7660_v40  ;;  %6899 = vmatprep.subr.bf16.mxu0 %v7661_v43 }
0x1e9b   : > { %6872 = vmatpush3.bf16.msra.mxu1 %v7662_v46  ;;  %6900 = vmatpush3.bf16.msra.mxu0 %v7663_v15 }
0x1e9c   : > { %6873 = vmatprep.subr.bf16.mxu1 %v7664_v9  ;;  %6901 = vmatprep.subr.bf16.mxu0 %v7665_v6 }
0x1e9f   : > { %6874 = vmatpush3.bf16.msra.mxu1 %v7666_v53  ;;  %6902 = vmatpush3.bf16.msra.mxu0 %v7667_v52 }
0x1ea0   : > { %6875 = vmatprep.subr.bf16.mxu1 %v7668_v29  ;;  %6903 = vmatprep.subr.bf16.mxu0 %v7669_v57 }
0x1ea3   : > { %6876 = vmatpush3.bf16.msra.mxu1 %v7670_v16  ;;  %6904 = vmatpush3.bf16.msra.mxu0 %v7671_v42 }
0x1ea4   : > { %6877 = vmatprep.subr.bf16.mxu1 %v7672_v39  ;;  %6905 = vmatprep.subr.bf16.mxu0 %v7673_v7 }
0x1ea7   : > { %6878 = vmatpush3.bf16.msra.mxu1 %v7674_v58  ;;  %6906 = vmatpush3.bf16.msra.mxu0 %v7675_v8 }
0x1ef2   : > { %v5293_v4 = vpop.xlane.xlu0 %5292 }
0x1ef3   : > { %v5298_v2 = vmul.f32 0.0078125, %v5293_v4 }
0x1ef5   : > { %v5302_v21 = vadd.f32 1e-05, %v5298_v2 }
0x1ef6   : > { %v5295_v55 = vpop.xlane.xlu1 %5294 }
0x1ef7   : > { %7808 = vrsqrt.f32 %v5302_v21  ;;  %v5299_v54 = vmul.f32 0.0078125, %v5295_v55 }
0x1ef9   : > { %v5303_v14 = vadd.f32 1e-05, %v5299_v54 }
0x1efb   : > { %7810 = vrsqrt.f32 %v5303_v14 }
0x1f04   : > { %v7809_v44 = vpop.eup %7808 }
0x1f05   : > { %v5310_v31 = vmul.f32 %v7809_v44, %v8877_v12  ;;  %v6540_v12 = vld [vmem:[%s8956_s6 + $0x8] sm:$0xf] }
0x1f06   : > { %v5377_v17 = vrot.slane %v6540_v12, %v8100_v34  ;;  %v5373_v10 = vrot.slane %v6540_v12, %v8106_v38  ;;  %v5381_v19 = vrot.slane %v6540_v12, %v8126_v50 }
0x1f07   : > { %v5320_v62 = vmul.f32 %v8890_v18, %v5310_v31 }
0x1f08   : > { %v7811_v22 = vpop.eup %7810 }
0x1f09   : > { %v5311_v61 = vmul.f32 %v7811_v22, %v8882_v13  ;;  %v8915_v11 = vadd.f32 %v8897_v23, %v5320_v62 }
0x1f0b   : > { %v5321_v33 = vmul.f32 %v8890_v18, %v5311_v61  ;;  %v5385_v18 = vrot.slane %v6540_v12, %v8322_v60 }
0x1f0d   : > { %v8918_v35 = vadd.f32 %v8897_v23, %v5321_v33 }
0x1f0f   : > { %v5333_v56 = vpack.c.bf16 %v8918_v35, %v8915_v11 }
0x1f11   : > { %5593 = vmatmul.mubr.bf16.gmra.mxu1 %v5333_v56  ;;  %5646 = vmatmul.mubr.bf16.gmra.mxu0 %v5333_v56 }
0x1f49   : > { %v5584_v13 = vpop.f32.mrf.mxu1  ;;  %v5637_v5 = vpop.f32.mrf.mxu0 }
0x1f4a   : > { %v5585_v63 = vadd.f32 %v5584_v13, %v5373_v10  ;;  %v5638_v27 = vadd.f32 %v5637_v5, %v5381_v19 }
0x1f4b   : > { %v5586_v1 = vpop.f32.mrf.mxu1  ;;  %v5639_v23 = vpop.f32.mrf.mxu0 }
0x1f4c   : > { %v5587_v45 = vadd.f32 %v5586_v1, %v5377_v17  ;;  %v5640_v25 = vadd.f32 %v5639_v23, %v5385_v18  ;;  %v5656_v37 = vmax.f32 %v5585_v63, 0.0  ;;  %v5658_v48 = vmax.f32 %v5638_v27, 0.0 }
0x1f4d   : > { %v5588_v24 = vpop.f32.mrf.mxu1  ;;  %v5641_v51 = vpop.f32.mrf.mxu0 }
0x1f4e   : > { %v5589_v26 = vadd.f32 %v5588_v24, %v5373_v10  ;;  %v5642_v32 = vadd.f32 %v5641_v51, %v5381_v19  ;;  %v5657_v41 = vmax.f32 %v5587_v45, 0.0  ;;  %v5659_v38 = vmax.f32 %v5640_v25, 0.0 }
0x1f4f   : > { %v5590_v3 = vpop.f32.mrf.mxu1  ;;  %v5643_v36 = vpop.f32.mrf.mxu0 }
0x1f50   : > { %v5591_v47 = vadd.f32 %v5590_v3, %v5377_v17  ;;  %v5644_v34 = vadd.f32 %v5643_v36, %v5385_v18  ;;  %v5660_v59 = vmax.f32 %v5589_v26, 0.0  ;;  %v5662_v60 = vmax.f32 %v5642_v32, 0.0 }
0x1f52   : > { %v5661_v0 = vmax.f32 %v5591_v47, 0.0  ;;  %v5663_v50 = vmax.f32 %v5644_v34, 0.0  ;;  %v5672_v40 = vpack.c.bf16 %v5660_v59, %v5656_v37  ;;  %v5674_v43 = vpack.c.bf16 %v5662_v60, %v5658_v48 }
0x1f54   : > { %v5673_v30 = vpack.c.bf16 %v5661_v0, %v5657_v41  ;;  %v5675_v49 = vpack.c.bf16 %v5663_v50, %v5659_v38 }
0x1f56   : > { %5977 = vmatprep.mubr.bf16.mxu1 %v5673_v30  ;;  %6026 = vmatprep.mubr.bf16.mxu0 %v5675_v49 }
0x1f57   : > { %5978 = vmatmul.mubr.bf16.vlgmr.msra.gmra.mxu1 %v5672_v40  ;;  %6027 = vmatmul.mubr.bf16.vlgmr.msra.gmra.mxu0 %v5674_v43 }
0x1fd1   : > { %v5594_v46 = vpop.f32.mrf.mxu1  ;;  %v5647_v15 = vpop.f32.mrf.mxu0 }
0x1fd2   : > { %v5595_v39 = vadd.f32 %v5594_v46, %v5373_v10  ;;  %v5648_v7 = vadd.f32 %v5647_v15, %v5381_v19 }
0x1fd3   : > { %v5596_v9 = vpop.f32.mrf.mxu1  ;;  %v5649_v6 = vpop.f32.mrf.mxu0 }
0x1fd4   : > { %v5597_v29 = vadd.f32 %v5596_v9, %v5377_v17  ;;  %v5650_v57 = vadd.f32 %v5649_v6, %v5385_v18  ;;  %v5664_v22 = vmax.f32 %v5595_v39, 0.0  ;;  %v5666_v61 = vmax.f32 %v5648_v7, 0.0 }
0x1fd5   : > { %v5598_v53 = vpop.f32.mrf.mxu1  ;;  %v5651_v52 = vpop.f32.mrf.mxu0 }
0x1fd6   : > { %v5599_v16 = vadd.f32 %v5598_v53, %v5373_v10  ;;  %v5652_v42 = vadd.f32 %v5651_v52, %v5381_v19  ;;  %v5665_v54 = vmax.f32 %v5597_v29, 0.0  ;;  %v5667_v14 = vmax.f32 %v5650_v57, 0.0 }
0x1fd7   : > { %v5600_v58 = vpop.f32.mrf.mxu1  ;;  %v5653_v8 = vpop.f32.mrf.mxu0 }
0x1fd8   : > { %v5601_v4 = vadd.f32 %v5600_v58, %v5377_v17  ;;  %v5654_v2 = vadd.f32 %v5653_v8, %v5385_v18  ;;  %v5668_v21 = vmax.f32 %v5599_v16, 0.0  ;;  %v5670_v55 = vmax.f32 %v5652_v42, 0.0  ;;  %v6574_v17 = vld [vmem:[%s8958_s8 + $0x2] ss:$0 sm:$0xff] }
0x1fda   : > { %v5669_v44 = vmax.f32 %v5601_v4, 0.0  ;;  %v5671_v31 = vmax.f32 %v5654_v2, 0.0  ;;  %v5676_v56 = vpack.c.bf16 %v5668_v21, %v5664_v22  ;;  %v5678_v12 = vpack.c.bf16 %v5670_v55, %v5666_v61 }
0x1fdc   : > { %v5677_v62 = vpack.c.bf16 %v5669_v44, %v5665_v54  ;;  %v5679_v33 = vpack.c.bf16 %v5671_v31, %v5667_v14 }
0x1fde   : > { %5985 = vmatprep.mubr.bf16.mxu1 %v5677_v62  ;;  %6034 = vmatprep.mubr.bf16.mxu0 %v5679_v33  ;;  %v6609_v62 = vld [vmem:[%s8961_s11 + $0x2] ss:$0 sm:$0xff] }
0x1fdf   : > { %5986 = vmatmul.mubr.bf16.gmra.mxu1 %v5676_v56  ;;  %6035 = vmatmul.mubr.bf16.gmra.mxu0 %v5678_v12  ;;  %v6610_v56 = vld [vmem:[%s8962_s12 + $0x2] ss:$0 sm:$0xff] }
0x2017   : > { %v6879_v13 = vpop.f32.mrf.mxu1  ;;  %v6907_v5 = vpop.f32.mrf.mxu0 }
0x2019   : > { %v6880_v18 = vpop.f32.mrf.mxu1  ;;  %v6908_v10 = vpop.f32.mrf.mxu0 }
0x201a   : > { %v6881_v19 = vadd.f32 %v6880_v18, %v6879_v13  ;;  %v6909_v51 = vadd.f32 %v6908_v10, %v6907_v5 }
0x201b   : > { %v6882_v1 = vpop.f32.mrf.mxu1  ;;  %v6910_v23 = vpop.f32.mrf.mxu0 }
0x201c   : > { %v5980_v24 = vadd.f32 %v6881_v19, %v6574_v17 }
0x201d   : > { %v6883_v45 = vpop.f32.mrf.mxu1  ;;  %v6911_v25 = vpop.f32.mrf.mxu0 }
0x201e   : > { %v6029_v26 = vadd.f32 %v6909_v51, %v5980_v24  ;;  %v6884_v32 = vadd.f32 %v6883_v45, %v6882_v1  ;;  %v6912_v27 = vadd.f32 %v6911_v25, %v6910_v23 }
0x2020   : > { %v5983_v63 = vadd.f32 %v6884_v32, %v6574_v17  ;;  %v6043_v3 = vadd.f32 %v6029_v26, %v8901_v20 }
0x2022   : > { %v6032_v36 = vadd.f32 %v6912_v27, %v5983_v63  ;;  %6051 = vadd.xlane.f32.xlu1 %v6043_v3 }
0x2024   : > { %v6044_v47 = vadd.f32 %v6032_v36, %v8904_v28 }
0x2026   : > { %6053 = vadd.xlane.f32.xlu1 %v6044_v47 }
0x209f   : > { %v6885_v34 = vpop.f32.mrf.mxu1  ;;  %v6913_v59 = vpop.f32.mrf.mxu0 }
0x20a1   : > { %v6886_v60 = vpop.f32.mrf.mxu1  ;;  %v6914_v41 = vpop.f32.mrf.mxu0 }
0x20a2   : > { %v6887_v38 = vadd.f32 %v6886_v60, %v6885_v34  ;;  %v6915_v48 = vadd.f32 %v6914_v41, %v6913_v59 }
0x20a3   : > { %v6888_v0 = vpop.f32.mrf.mxu1  ;;  %v6916_v50 = vpop.f32.mrf.mxu0 }
0x20a4   : > { %v5988_v37 = vadd.f32 %v6887_v38, %v6574_v17 }
0x20a5   : > { %v6889_v30 = vpop.f32.mrf.mxu1  ;;  %v6917_v49 = vpop.f32.mrf.mxu0 }
0x20a6   : > { %v6037_v40 = vadd.f32 %v6915_v48, %v5988_v37  ;;  %v6890_v43 = vadd.f32 %v6889_v30, %v6888_v0  ;;  %v6918_v20 = vadd.f32 %v6917_v49, %v6916_v50 }
0x20a8   : > { %v5991_v46 = vadd.f32 %v6890_v43, %v6574_v17  ;;  %v6045_v15 = vadd.f32 %v6037_v40, %v8915_v11 }
0x20aa   : > { %v6040_v9 = vadd.f32 %v6918_v20, %v5991_v46  ;;  %6055 = vadd.xlane.f32.xlu1 %v6045_v15 }
0x20ab   : > { %v6052_v28 = vpop.xlane.xlu1 %6051 }
0x20ac   : > { %v6059_v6 = vmul.f32 0.0078125, %v6052_v28  ;;  %v6046_v53 = vadd.f32 %v6040_v9, %v8918_v35 }
0x20ae   : > { %v6063_v52 = vsub.f32 %v6043_v3, %v6059_v6  ;;  %6057 = vadd.xlane.f32.xlu1 %v6046_v53 }
0x20af   : > { %v6054_v29 = vpop.xlane.xlu1 %6053 }
0x20b0   : > { %v6060_v57 = vmul.f32 0.0078125, %v6054_v29  ;;  %v6067_v16 = vmul.f32 %v6063_v52, %v6063_v52 }
0x20b2   : > { %v6064_v42 = vsub.f32 %v6044_v47, %v6060_v57  ;;  %6071 = vadd.xlane.f32.xlu1 %v6067_v16 }
0x20b4   : > { %v6068_v39 = vmul.f32 %v6064_v42, %v6064_v42 }
0x20b6   : > { %6073 = vadd.xlane.f32.xlu1 %v6068_v39 }
0x2133   : > { %v6056_v7 = vpop.xlane.xlu1 %6055 }
0x2134   : > { %v6061_v58 = vmul.f32 0.0078125, %v6056_v7 }
0x2136   : > { %v6065_v8 = vsub.f32 %v6045_v15, %v6061_v58 }
0x2137   : > { %v6058_v4 = vpop.xlane.xlu1 %6057 }
0x2138   : > { %v6062_v11 = vmul.f32 0.0078125, %v6058_v4  ;;  %v6069_v2 = vmul.f32 %v6065_v8, %v6065_v8 }
0x213a   : > { %v6066_v21 = vsub.f32 %v6046_v53, %v6062_v11  ;;  %6075 = vadd.xlane.f32.xlu0 %v6069_v2 }
0x213b   : > { %v6072_v55 = vpop.xlane.xlu1 %6071 }
0x213c   : > { %v6079_v35 = vmul.f32 0.0078125, %v6072_v55  ;;  %v6070_v54 = vmul.f32 %v6066_v21, %v6066_v21 }
0x213e   : > { %v6083_v14 = vadd.f32 1e-05, %v6079_v35  ;;  %6077 = vadd.xlane.f32.xlu1 %v6070_v54 }
0x213f   : > { %v6074_v44 = vpop.xlane.xlu1 %6073 }
0x2140   : > { %7812 = vrsqrt.f32 %v6083_v14  ;;  %v6080_v31 = vmul.f32 0.0078125, %v6074_v44 }
0x2142   : > { %v6084_v22 = vadd.f32 1e-05, %v6080_v31 }
0x2144   : > { %7814 = vrsqrt.f32 %v6084_v22 }
0x214d   : > { %v7813_v61 = vpop.eup %7812 }
0x214e   : > { %v6091_v33 = vmul.f32 %v7813_v61, %v6063_v52 }
0x2150   : > { %v6101_v12 = vmul.f32 %v6609_v62, %v6091_v33 }
0x2151   : > { %v7815_v13 = vpop.eup %7814 }
0x2152   : > { %v6111_v5 = vadd.f32 %v6610_v56, %v6101_v12  ;;  %v6092_v17 = vmul.f32 %v7815_v13, %v6064_v42 }
0x2154   : > { %6115 = vst [vmem:[%s486_s26] sm:$0xff] %v6111_v5  ;;  %v6102_v18 = vmul.f32 %v6609_v62, %v6092_v17 }
0x2156   : > { %v6112_v10 = vadd.f32 %v6610_v56, %v6102_v18 }
0x2158   : > { %6116 = vst [vmem:[%s486_s26 + $0x8] sm:$0xff] %v6112_v10 }
0x21c3   : > { %v6076_v19 = vpop.xlane.xlu0 %6075 }
0x21c4   : > { %v6081_v1 = vmul.f32 0.0078125, %v6076_v19 }
0x21c6   : > { %v6085_v23 = vadd.f32 1e-05, %v6081_v1 }
0x21c7   : > { %v6078_v24 = vpop.xlane.xlu1 %6077 }
0x21c8   : > { %7816 = vrsqrt.f32 %v6085_v23  ;;  %v6082_v51 = vmul.f32 0.0078125, %v6078_v24 }
0x21ca   : > { %v6086_v45 = vadd.f32 1e-05, %v6082_v51 }
0x21cc   : > { %7818 = vrsqrt.f32 %v6086_v45 }
0x21d5   : > { %v7817_v25 = vpop.eup %7816 }
0x21d6   : > { %v6093_v26 = vmul.f32 %v7817_v25, %v6065_v8 }
0x21d8   : > { %v6103_v32 = vmul.f32 %v6609_v62, %v6093_v26 }
0x21d9   : > { %v7819_v63 = vpop.eup %7818 }
0x21da   : > { %v6113_v27 = vadd.f32 %v6610_v56, %v6103_v32  ;;  %v6094_v3 = vmul.f32 %v7819_v63, %v6066_v21 }
0x21dc   : > { %6117 = vst [vmem:[%s486_s26 + $0x10] sm:$0xff] %v6113_v27  ;;  %v6104_v36 = vmul.f32 %v6609_v62, %v6094_v3 }
0x21de   : > { %v6114_v47 = vadd.f32 %v6610_v56, %v6104_v36 }
0x21e0   : > { %6118 = vst [vmem:[%s486_s26 + $0x18] sm:$0xff] %v6114_v47 }
0x21e1 PF: > { %s25_s25 = sadd.s32 1, %s7916_s25  }
0x21e2   : > { %p22_p2 = scmp.ge.s32.totalorder %s25_s25, 4  }
0x21e4   :  { %24 = sbr.rel (!%p22_p2) target bundleno = 2 (0x2), region = 139 }
0x21e9   :  { %6141 = vsyncpa [#allocation3], 1 }
0x21ea   :  { %6143 = vsyncpa [#allocation3 + $0x1], 1 }
0x21eb   :  { %6144 = vsyncpa [#allocation5], 1 }

</bundles_post_ra>
